<compile_context>
chip_gen: v7x
topology: tpu7x:2x2x1
jax: 0.10.0
libtpu: 0.0.40
codegen_flags: <defaults>
</compile_context>

<pallas_src>
import functools

import jax
import jax.numpy as jnp
from jax.experimental import pallas as pl
from jax.experimental.pallas import tpu as pltpu


# ----------------------------------------------------------------------------
# LSTM cell update.  Kernel-side gate layout is (i, f, o, g) -- permuted at
# weight-prep time from PyTorch's (i, f, g, o) -- so the three sigmoids fuse
# into one wide sigmoid over [:, :3H] plus one tanh over [:, 3H:].
# ----------------------------------------------------------------------------
def _lstm_cell(gates, c_prev, H):
    ifo = jax.nn.sigmoid(gates[:, :3 * H])
    g_g = jnp.tanh(gates[:, 3 * H:])
    i_g = ifo[:, 0 * H:1 * H]
    f_g = ifo[:, 1 * H:2 * H]
    o_g = ifo[:, 2 * H:3 * H]
    c_new = f_g * c_prev + i_g * g_g
    h_new = o_g * jnp.tanh(c_new)
    return h_new, c_new


# ----------------------------------------------------------------------------
# Fused decoder kernel: 4 stacked LSTM layers + final Linear in one no-grid
# pallas_call.  Fully unrolled wavefront; everything lives in vregs/VMEM.
# ----------------------------------------------------------------------------
def _make_decoder_kernel(T, BP, H1, H2, O):
    NL = 4
    Hs = (H1, H1, H2, H2)

    def kernel(x_ref,
               wih1a_ref, whh1a_ref, b1a_ref,
               wih1b_ref, whh1b_ref, b1b_ref,
               wih2a_ref, whh2a_ref, b2a_ref,
               wih2b_ref, whh2b_ref, b2b_ref,
               fcw_ref, fcb_ref,
               out_ref):
        bf16 = jnp.bfloat16

        def mm(a, b):  # bf16 MXU operands, f32 accumulation
            return jnp.dot(a.astype(bf16), b, preferred_element_type=jnp.float32)

        # Hoist every weight / bias load out of the unrolled recurrence
        # (one vld each; regalloc decides residency).
        whh = (whh1a_ref[...], whh1b_ref[...], whh2a_ref[...], whh2b_ref[...])
        wih = (None, wih1b_ref[...], wih2a_ref[...], wih2b_ref[...])
        bias = (None, b1b_ref[...], b2a_ref[...], b2b_ref[...])
        fcw = fcw_ref[...]
        fcb = fcb_ref[...]

        # Layer-0 input is x repeated over time, so its input->hidden
        # projection (+ fused bias) is one matmul shared by every timestep.
        g0 = mm(x_ref[...], wih1a_ref[...]) + b1a_ref[...]

        h = [jnp.zeros((BP, Hs[k]), jnp.float32) for k in range(NL)]
        c = [jnp.zeros((BP, Hs[k]), jnp.float32) for k in range(NL)]

        # Wavefront / diagonal schedule: step s updates cell (layer k, t=s-k).
        # Layers are processed in DESCENDING k inside a step so that layer k
        # reads h[k-1] as produced at the previous wavefront step.
        for s in range(T + NL - 1):
            for k in reversed(range(NL)):
                t = s - k
                if t < 0 or t >= T:
                    continue
                if k == 0:
                    gates = g0 + mm(h[0], whh[0])
                else:
                    gates = mm(h[k - 1], wih[k]) + bias[k] + mm(h[k], whh[k])
                h[k], c[k] = _lstm_cell(gates, c[k], Hs[k])
                if k == NL - 1:
                    # fc epilogue hangs off the wavefront (not on the critical
                    # path); write straight into the flat 2-D output slab.
                    out_ref[t * BP:(t + 1) * BP, :] = mm(h[k], fcw) + fcb

    return kernel


# ----------------------------------------------------------------------------
# One-time parameter preparation (outside the per-call path).
# ----------------------------------------------------------------------------
def _prep_lstm_layer(w_ih, w_hh, b_ih, b_hh):
    """PyTorch layout -> kernel layout.

    * gate blocks permuted from (i, f, g, o) to (i, f, o, g)
    * weights pre-transposed to (in, 4H) and cast to bf16 (MXU operands)
    * the two biases fused into a single f32 row vector
    """
    w_ih = jnp.asarray(w_ih, jnp.float32)
    w_hh = jnp.asarray(w_hh, jnp.float32)
    H = w_hh.shape[1]
    perm = jnp.concatenate([jnp.arange(0, H), jnp.arange(H, 2 * H),
                            jnp.arange(3 * H, 4 * H), jnp.arange(2 * H, 3 * H)])
    wih_t = w_ih[perm].T.astype(jnp.bfloat16)                        # (I, 4H)
    whh_t = w_hh[perm].T.astype(jnp.bfloat16)                        # (H, 4H)
    bias = (jnp.asarray(b_ih, jnp.float32)
            + jnp.asarray(b_hh, jnp.float32))[perm][None, :]          # (1, 4H)
    return wih_t, whh_t, bias


def prepare_decoder_params(params):
    flat = []
    for layer in list(params["lstm1"]) + list(params["lstm2"]):
        flat.extend(_prep_lstm_layer(*layer))
    flat.append(jnp.asarray(params["fc_w"], jnp.float32).T
                .astype(jnp.bfloat16))                                # (2E, O)
    flat.append(jnp.asarray(params["fc_b"], jnp.float32)[None, :])    # (1, O)
    return tuple(flat)


# ----------------------------------------------------------------------------
# Decoder forward (matches the PyTorch module's forward).
# ----------------------------------------------------------------------------
def decoder_forward(prepped, x, seq_length, embedding_size, output_size):
    B, E = x.shape
    assert E == embedding_size
    T, H1, H2, O = seq_length, embedding_size, 2 * embedding_size, output_size
    BP = max(8, -(-B // 8) * 8)                       # sublane-pad the batch
    x_p = jnp.zeros((BP, E), jnp.float32).at[:B, :].set(x.astype(jnp.float32))

    vmem = pltpu.MemorySpace.VMEM
    n_in = 1 + len(prepped)
    out = pl.pallas_call(
        _make_decoder_kernel(T, BP, H1, H2, O),
        out_shape=jax.ShapeDtypeStruct((T * BP, O), jnp.float32),
        in_specs=[pl.BlockSpec(memory_space=vmem)] * n_in,
        out_specs=pl.BlockSpec(memory_space=vmem),
    )(x_p, *prepped)

    # flat (T*BP, O) -> (B, T, O): cheap XLA reshape/transpose + batch-unpad.
    return out.reshape(T, BP, O).transpose(1, 0, 2)[:B]


# ----------------------------------------------------------------------------
# Parameter construction (deterministic, PyTorch-style shapes).
# ----------------------------------------------------------------------------
def make_lstm_params(key, input_size, hidden_size, num_layers):
    params = []
    scale = 1.0 / jnp.sqrt(float(hidden_size))
    for layer in range(num_layers):
        in_sz = input_size if layer == 0 else hidden_size
        key, k1, k2, k3, k4 = jax.random.split(key, 5)
        w_ih = jax.random.uniform(k1, (4 * hidden_size, in_sz),
                                  jnp.float32, -scale, scale)
        w_hh = jax.random.uniform(k2, (4 * hidden_size, hidden_size),
                                  jnp.float32, -scale, scale)
        b_ih = jax.random.uniform(k3, (4 * hidden_size,),
                                  jnp.float32, -scale, scale)
        b_hh = jax.random.uniform(k4, (4 * hidden_size,),
                                  jnp.float32, -scale, scale)
        params.append((w_ih, w_hh, b_ih, b_hh))
    return params, key


def make_decoder_params(key, embedding_size, output_size):
    lstm1, key = make_lstm_params(key, embedding_size, embedding_size, 2)
    lstm2, key = make_lstm_params(key, embedding_size, 2 * embedding_size, 2)
    scale = 1.0 / jnp.sqrt(float(2 * embedding_size))
    key, k1, k2 = jax.random.split(key, 3)
    fc_w = jax.random.uniform(k1, (output_size, 2 * embedding_size),
                              jnp.float32, -scale, scale)
    fc_b = jax.random.uniform(k2, (output_size,), jnp.float32, -scale, scale)
    return {"lstm1": lstm1, "lstm2": lstm2, "fc_w": fc_w, "fc_b": fc_b}


# ----------------------------------------------------------------------------
# Pure-JAX reference (mirrors the PyTorch module, standard gate order, f32).
# ----------------------------------------------------------------------------
def _lstm_cell_ref(gates, c_prev, H):
    i_g = jax.nn.sigmoid(gates[:, 0 * H:1 * H])
    f_g = jax.nn.sigmoid(gates[:, 1 * H:2 * H])
    g_g = jnp.tanh(gates[:, 2 * H:3 * H])
    o_g = jax.nn.sigmoid(gates[:, 3 * H:4 * H])
    c_new = f_g * c_prev + i_g * g_g
    h_new = o_g * jnp.tanh(c_new)
    return h_new, c_new


def _lstm_layer_ref(x, w_ih, w_hh, b_ih, b_hh):
    B, T, _ = x.shape
    H = w_hh.shape[1]
    h = jnp.zeros((B, H), jnp.float32)
    c = jnp.zeros((B, H), jnp.float32)
    outs = []
    for t in range(T):
        gates = x[:, t, :] @ w_ih.T + h @ w_hh.T + b_ih + b_hh
        h, c = _lstm_cell_ref(gates, c, H)
        outs.append(h)
    return jnp.stack(outs, axis=1)


def decoder_forward_ref(params, x, seq_length, embedding_size, output_size):
    B, E = x.shape
    h = jnp.broadcast_to(x[:, None, :], (B, seq_length, E)).astype(jnp.float32)
    for layer in params["lstm1"]:
        h = _lstm_layer_ref(h, *layer)
    for layer in params["lstm2"]:
        h = _lstm_layer_ref(h, *layer)
    out = h.reshape(B * seq_length, 2 * E) @ params["fc_w"].T + params["fc_b"]
    return out.reshape(B, seq_length, output_size)


if __name__ == "__main__":
    embedding_size = 32
    output_size = 8
    batch = 4
    seq_length = 8

    key = jax.random.PRNGKey(0)
    key, kx = jax.random.split(key)
    x = jax.random.normal(kx, (batch, embedding_size), jnp.float32)

    params = make_decoder_params(key, embedding_size, output_size)
    prepped = prepare_decoder_params(params)     # one-time weight prep

    fwd = jax.jit(functools.partial(decoder_forward,
                                    seq_length=seq_length,
                                    embedding_size=embedding_size,
                                    output_size=output_size))
    out = fwd(prepped, x)
    jax.block_until_ready(out)
    assert out.shape == (batch, seq_length, output_size)

    ref = decoder_forward_ref(params, x, seq_length, embedding_size, output_size)
    err = float(jnp.max(jnp.abs(out - ref)))
    # bf16 MXU operands with f32 accumulation -> ~1e-2-scale deviation expected.
    assert err < 5e-2, f"max abs err too large: {err}"

    print("KERNEL_OK")
</pallas_src>

<mosaic_0001>
module attributes {stable_mosaic.version = 11 : i64} {
  func.func @kernel(%arg0: memref<8x32xf32, #tpu.memory_space<vmem>>, %arg1: memref<32x128xbf16, #tpu.memory_space<vmem>>, %arg2: memref<32x128xbf16, #tpu.memory_space<vmem>>, %arg3: memref<1x128xf32, #tpu.memory_space<vmem>>, %arg4: memref<32x128xbf16, #tpu.memory_space<vmem>>, %arg5: memref<32x128xbf16, #tpu.memory_space<vmem>>, %arg6: memref<1x128xf32, #tpu.memory_space<vmem>>, %arg7: memref<32x256xbf16, #tpu.memory_space<vmem>>, %arg8: memref<64x256xbf16, #tpu.memory_space<vmem>>, %arg9: memref<1x256xf32, #tpu.memory_space<vmem>>, %arg10: memref<64x256xbf16, #tpu.memory_space<vmem>>, %arg11: memref<64x256xbf16, #tpu.memory_space<vmem>>, %arg12: memref<1x256xf32, #tpu.memory_space<vmem>>, %arg13: memref<64x8xbf16, #tpu.memory_space<vmem>>, %arg14: memref<1x8xf32, #tpu.memory_space<vmem>>, %arg15: memref<64x8xf32, #tpu.memory_space<vmem>>) attributes {dimension_semantics = [], scalar_prefetch = 0 : i64, scratch_operands = 0 : i64, tpu.core_type = #tpu.core_type<tc>} {
    %c0 = arith.constant 0 : index
    %c0_0 = arith.constant 0 : index
    %0 = vector.load %arg2[%c0, %c0_0] : memref<32x128xbf16, #tpu.memory_space<vmem>>, vector<32x128xbf16>
    %c0_1 = arith.constant 0 : index
    %c0_2 = arith.constant 0 : index
    %1 = vector.load %arg5[%c0_1, %c0_2] : memref<32x128xbf16, #tpu.memory_space<vmem>>, vector<32x128xbf16>
    %c0_3 = arith.constant 0 : index
    %c0_4 = arith.constant 0 : index
    %2 = vector.load %arg8[%c0_3, %c0_4] : memref<64x256xbf16, #tpu.memory_space<vmem>>, vector<64x256xbf16>
    %c0_5 = arith.constant 0 : index
    %c0_6 = arith.constant 0 : index
    %3 = vector.load %arg11[%c0_5, %c0_6] : memref<64x256xbf16, #tpu.memory_space<vmem>>, vector<64x256xbf16>
    %c0_7 = arith.constant 0 : index
    %c0_8 = arith.constant 0 : index
    %4 = vector.load %arg4[%c0_7, %c0_8] : memref<32x128xbf16, #tpu.memory_space<vmem>>, vector<32x128xbf16>
    %c0_9 = arith.constant 0 : index
    %c0_10 = arith.constant 0 : index
    %5 = vector.load %arg7[%c0_9, %c0_10] : memref<32x256xbf16, #tpu.memory_space<vmem>>, vector<32x256xbf16>
    %c0_11 = arith.constant 0 : index
    %c0_12 = arith.constant 0 : index
    %6 = vector.load %arg10[%c0_11, %c0_12] : memref<64x256xbf16, #tpu.memory_space<vmem>>, vector<64x256xbf16>
    %c0_13 = arith.constant 0 : index
    %c0_14 = arith.constant 0 : index
    %7 = vector.load %arg6[%c0_13, %c0_14] : memref<1x128xf32, #tpu.memory_space<vmem>>, vector<1x128xf32>
    %c0_15 = arith.constant 0 : index
    %c0_16 = arith.constant 0 : index
    %8 = vector.load %arg9[%c0_15, %c0_16] : memref<1x256xf32, #tpu.memory_space<vmem>>, vector<1x256xf32>
    %c0_17 = arith.constant 0 : index
    %c0_18 = arith.constant 0 : index
    %9 = vector.load %arg12[%c0_17, %c0_18] : memref<1x256xf32, #tpu.memory_space<vmem>>, vector<1x256xf32>
    %c0_19 = arith.constant 0 : index
    %c0_20 = arith.constant 0 : index
    %10 = vector.load %arg13[%c0_19, %c0_20] : memref<64x8xbf16, #tpu.memory_space<vmem>>, vector<64x8xbf16>
    %c0_21 = arith.constant 0 : index
    %c0_22 = arith.constant 0 : index
    %11 = vector.load %arg14[%c0_21, %c0_22] : memref<1x8xf32, #tpu.memory_space<vmem>>, vector<1x8xf32>
    %c0_23 = arith.constant 0 : index
    %c0_24 = arith.constant 0 : index
    %12 = vector.load %arg0[%c0_23, %c0_24] : memref<8x32xf32, #tpu.memory_space<vmem>>, vector<8x32xf32>
    %c0_25 = arith.constant 0 : index
    %c0_26 = arith.constant 0 : index
    %13 = vector.load %arg1[%c0_25, %c0_26] : memref<32x128xbf16, #tpu.memory_space<vmem>>, vector<32x128xbf16>
    %14 = arith.truncf %12 : vector<8x32xf32> to vector<8x32xbf16>
    %cst = arith.constant dense<0.000000e+00> : vector<8x128xf32>
    %15 = tpu.matmul %14, %13, %cst {dimension_numbers = #tpu.dot_dimension_numbers<[1], [0], [0], [1], [0, 0, 1, 1], [], []>} : vector<8x32xbf16>, vector<32x128xbf16>, vector<8x128xf32> -> vector<8x128xf32>
    %c0_27 = arith.constant 0 : index
    %c0_28 = arith.constant 0 : index
    %16 = vector.load %arg3[%c0_27, %c0_28] : memref<1x128xf32, #tpu.memory_space<vmem>>, vector<1x128xf32>
    %17 = vector.broadcast %16 : vector<1x128xf32> to vector<8x128xf32>
    %18 = arith.addf %15, %17 : vector<8x128xf32>
    %cst_29 = arith.constant 0.000000e+00 : f32
    %19 = vector.broadcast %cst_29 : f32 to vector<8x32xf32>
    %cst_30 = arith.constant 0.000000e+00 : f32
    %20 = vector.broadcast %cst_30 : f32 to vector<8x32xf32>
    %cst_31 = arith.constant 0.000000e+00 : f32
    %21 = vector.broadcast %cst_31 : f32 to vector<8x64xf32>
    %cst_32 = arith.constant 0.000000e+00 : f32
    %22 = vector.broadcast %cst_32 : f32 to vector<8x64xf32>
    %cst_33 = arith.constant 0.000000e+00 : f32
    %23 = vector.broadcast %cst_33 : f32 to vector<8x32xf32>
    %cst_34 = arith.constant 0.000000e+00 : f32
    %24 = vector.broadcast %cst_34 : f32 to vector<8x32xf32>
    %cst_35 = arith.constant 0.000000e+00 : f32
    %25 = vector.broadcast %cst_35 : f32 to vector<8x64xf32>
    %cst_36 = arith.constant 0.000000e+00 : f32
    %26 = vector.broadcast %cst_36 : f32 to vector<8x64xf32>
    %27 = arith.truncf %19 : vector<8x32xf32> to vector<8x32xbf16>
    %cst_37 = arith.constant dense<0.000000e+00> : vector<8x128xf32>
    %28 = tpu.matmul %27, %0, %cst_37 {dimension_numbers = #tpu.dot_dimension_numbers<[1], [0], [0], [1], [0, 0, 1, 1], [], []>} : vector<8x32xbf16>, vector<32x128xbf16>, vector<8x128xf32> -> vector<8x128xf32>
    %29 = arith.addf %18, %28 : vector<8x128xf32>
    %30 = vector.extract_strided_slice %29 {offsets = [0, 0], sizes = [8, 96], strides = [1, 1]} : vector<8x128xf32> to vector<8x96xf32>
    %31 = arith.negf %30 : vector<8x96xf32>
    %32 = math.exp %31 : vector<8x96xf32>
    %cst_38 = arith.constant 1.000000e+00 : f32
    %33 = vector.broadcast %cst_38 : f32 to vector<8x96xf32>
    %34 = arith.addf %33, %32 : vector<8x96xf32>
    %35 = arith.divf %33, %34 : vector<8x96xf32>
    %36 = vector.extract_strided_slice %29 {offsets = [0, 96], sizes = [8, 32], strides = [1, 1]} : vector<8x128xf32> to vector<8x32xf32>
    %37 = math.tanh %36 : vector<8x32xf32>
    %38 = vector.extract_strided_slice %35 {offsets = [0, 0], sizes = [8, 32], strides = [1, 1]} : vector<8x96xf32> to vector<8x32xf32>
    %39 = vector.extract_strided_slice %35 {offsets = [0, 32], sizes = [8, 32], strides = [1, 1]} : vector<8x96xf32> to vector<8x32xf32>
    %40 = vector.extract_strided_slice %35 {offsets = [0, 64], sizes = [8, 32], strides = [1, 1]} : vector<8x96xf32> to vector<8x32xf32>
    %41 = arith.mulf %39, %23 : vector<8x32xf32>
    %42 = arith.mulf %38, %37 : vector<8x32xf32>
    %43 = arith.addf %41, %42 : vector<8x32xf32>
    %44 = math.tanh %43 : vector<8x32xf32>
    %45 = arith.mulf %40, %44 : vector<8x32xf32>
    %46 = arith.truncf %45 : vector<8x32xf32> to vector<8x32xbf16>
    %cst_39 = arith.constant dense<0.000000e+00> : vector<8x128xf32>
    %47 = tpu.matmul %46, %4, %cst_39 {dimension_numbers = #tpu.dot_dimension_numbers<[1], [0], [0], [1], [0, 0, 1, 1], [], []>} : vector<8x32xbf16>, vector<32x128xbf16>, vector<8x128xf32> -> vector<8x128xf32>
    %48 = vector.broadcast %7 : vector<1x128xf32> to vector<8x128xf32>
    %49 = arith.addf %47, %48 : vector<8x128xf32>
    %50 = arith.truncf %20 : vector<8x32xf32> to vector<8x32xbf16>
    %cst_40 = arith.constant dense<0.000000e+00> : vector<8x128xf32>
    %51 = tpu.matmul %50, %1, %cst_40 {dimension_numbers = #tpu.dot_dimension_numbers<[1], [0], [0], [1], [0, 0, 1, 1], [], []>} : vector<8x32xbf16>, vector<32x128xbf16>, vector<8x128xf32> -> vector<8x128xf32>
    %52 = arith.addf %49, %51 : vector<8x128xf32>
    %53 = vector.extract_strided_slice %52 {offsets = [0, 0], sizes = [8, 96], strides = [1, 1]} : vector<8x128xf32> to vector<8x96xf32>
    %54 = arith.negf %53 : vector<8x96xf32>
    %55 = math.exp %54 : vector<8x96xf32>
    %cst_41 = arith.constant 1.000000e+00 : f32
    %56 = vector.broadcast %cst_41 : f32 to vector<8x96xf32>
    %57 = arith.addf %56, %55 : vector<8x96xf32>
    %58 = arith.divf %56, %57 : vector<8x96xf32>
    %59 = vector.extract_strided_slice %52 {offsets = [0, 96], sizes = [8, 32], strides = [1, 1]} : vector<8x128xf32> to vector<8x32xf32>
    %60 = math.tanh %59 : vector<8x32xf32>
    %61 = vector.extract_strided_slice %58 {offsets = [0, 0], sizes = [8, 32], strides = [1, 1]} : vector<8x96xf32> to vector<8x32xf32>
    %62 = vector.extract_strided_slice %58 {offsets = [0, 32], sizes = [8, 32], strides = [1, 1]} : vector<8x96xf32> to vector<8x32xf32>
    %63 = vector.extract_strided_slice %58 {offsets = [0, 64], sizes = [8, 32], strides = [1, 1]} : vector<8x96xf32> to vector<8x32xf32>
    %64 = arith.mulf %62, %24 : vector<8x32xf32>
    %65 = arith.mulf %61, %60 : vector<8x32xf32>
    %66 = arith.addf %64, %65 : vector<8x32xf32>
    %67 = math.tanh %66 : vector<8x32xf32>
    %68 = arith.mulf %63, %67 : vector<8x32xf32>
    %69 = arith.truncf %45 : vector<8x32xf32> to vector<8x32xbf16>
    %cst_42 = arith.constant dense<0.000000e+00> : vector<8x128xf32>
    %70 = tpu.matmul %69, %0, %cst_42 {dimension_numbers = #tpu.dot_dimension_numbers<[1], [0], [0], [1], [0, 0, 1, 1], [], []>} : vector<8x32xbf16>, vector<32x128xbf16>, vector<8x128xf32> -> vector<8x128xf32>
    %71 = arith.addf %18, %70 : vector<8x128xf32>
    %72 = vector.extract_strided_slice %71 {offsets = [0, 0], sizes = [8, 96], strides = [1, 1]} : vector<8x128xf32> to vector<8x96xf32>
    %73 = arith.negf %72 : vector<8x96xf32>
    %74 = math.exp %73 : vector<8x96xf32>
    %cst_43 = arith.constant 1.000000e+00 : f32
    %75 = vector.broadcast %cst_43 : f32 to vector<8x96xf32>
    %76 = arith.addf %75, %74 : vector<8x96xf32>
    %77 = arith.divf %75, %76 : vector<8x96xf32>
    %78 = vector.extract_strided_slice %71 {offsets = [0, 96], sizes = [8, 32], strides = [1, 1]} : vector<8x128xf32> to vector<8x32xf32>
    %79 = math.tanh %78 : vector<8x32xf32>
    %80 = vector.extract_strided_slice %77 {offsets = [0, 0], sizes = [8, 32], strides = [1, 1]} : vector<8x96xf32> to vector<8x32xf32>
    %81 = vector.extract_strided_slice %77 {offsets = [0, 32], sizes = [8, 32], strides = [1, 1]} : vector<8x96xf32> to vector<8x32xf32>
    %82 = vector.extract_strided_slice %77 {offsets = [0, 64], sizes = [8, 32], strides = [1, 1]} : vector<8x96xf32> to vector<8x32xf32>
    %83 = arith.mulf %81, %43 : vector<8x32xf32>
    %84 = arith.mulf %80, %79 : vector<8x32xf32>
    %85 = arith.addf %83, %84 : vector<8x32xf32>
    %86 = math.tanh %85 : vector<8x32xf32>
    %87 = arith.mulf %82, %86 : vector<8x32xf32>
    %88 = arith.truncf %68 : vector<8x32xf32> to vector<8x32xbf16>
    %cst_44 = arith.constant dense<0.000000e+00> : vector<8x256xf32>
    %89 = tpu.matmul %88, %5, %cst_44 {dimension_numbers = #tpu.dot_dimension_numbers<[1], [0], [0], [1], [0, 0, 1, 1], [], []>} : vector<8x32xbf16>, vector<32x256xbf16>, vector<8x256xf32> -> vector<8x256xf32>
    %90 = vector.broadcast %8 : vector<1x256xf32> to vector<8x256xf32>
    %91 = arith.addf %89, %90 : vector<8x256xf32>
    %92 = arith.truncf %21 : vector<8x64xf32> to vector<8x64xbf16>
    %cst_45 = arith.constant dense<0.000000e+00> : vector<8x256xf32>
    %93 = tpu.matmul %92, %2, %cst_45 {dimension_numbers = #tpu.dot_dimension_numbers<[1], [0], [0], [1], [0, 0, 1, 1], [], []>} : vector<8x64xbf16>, vector<64x256xbf16>, vector<8x256xf32> -> vector<8x256xf32>
    %94 = arith.addf %91, %93 : vector<8x256xf32>
    %95 = vector.extract_strided_slice %94 {offsets = [0, 0], sizes = [8, 192], strides = [1, 1]} : vector<8x256xf32> to vector<8x192xf32>
    %96 = arith.negf %95 : vector<8x192xf32>
    %97 = math.exp %96 : vector<8x192xf32>
    %cst_46 = arith.constant 1.000000e+00 : f32
    %98 = vector.broadcast %cst_46 : f32 to vector<8x192xf32>
    %99 = arith.addf %98, %97 : vector<8x192xf32>
    %100 = arith.divf %98, %99 : vector<8x192xf32>
    %101 = vector.extract_strided_slice %94 {offsets = [0, 192], sizes = [8, 64], strides = [1, 1]} : vector<8x256xf32> to vector<8x64xf32>
    %102 = math.tanh %101 : vector<8x64xf32>
    %103 = vector.extract_strided_slice %100 {offsets = [0, 0], sizes = [8, 64], strides = [1, 1]} : vector<8x192xf32> to vector<8x64xf32>
    %104 = vector.extract_strided_slice %100 {offsets = [0, 64], sizes = [8, 64], strides = [1, 1]} : vector<8x192xf32> to vector<8x64xf32>
    %105 = vector.extract_strided_slice %100 {offsets = [0, 128], sizes = [8, 64], strides = [1, 1]} : vector<8x192xf32> to vector<8x64xf32>
    %106 = arith.mulf %104, %25 : vector<8x64xf32>
    %107 = arith.mulf %103, %102 : vector<8x64xf32>
    %108 = arith.addf %106, %107 : vector<8x64xf32>
    %109 = math.tanh %108 : vector<8x64xf32>
    %110 = arith.mulf %105, %109 : vector<8x64xf32>
    %111 = arith.truncf %87 : vector<8x32xf32> to vector<8x32xbf16>
    %cst_47 = arith.constant dense<0.000000e+00> : vector<8x128xf32>
    %112 = tpu.matmul %111, %4, %cst_47 {dimension_numbers = #tpu.dot_dimension_numbers<[1], [0], [0], [1], [0, 0, 1, 1], [], []>} : vector<8x32xbf16>, vector<32x128xbf16>, vector<8x128xf32> -> vector<8x128xf32>
    %113 = vector.broadcast %7 : vector<1x128xf32> to vector<8x128xf32>
    %114 = arith.addf %112, %113 : vector<8x128xf32>
    %115 = arith.truncf %68 : vector<8x32xf32> to vector<8x32xbf16>
    %cst_48 = arith.constant dense<0.000000e+00> : vector<8x128xf32>
    %116 = tpu.matmul %115, %1, %cst_48 {dimension_numbers = #tpu.dot_dimension_numbers<[1], [0], [0], [1], [0, 0, 1, 1], [], []>} : vector<8x32xbf16>, vector<32x128xbf16>, vector<8x128xf32> -> vector<8x128xf32>
    %117 = arith.addf %114, %116 : vector<8x128xf32>
    %118 = vector.extract_strided_slice %117 {offsets = [0, 0], sizes = [8, 96], strides = [1, 1]} : vector<8x128xf32> to vector<8x96xf32>
    %119 = arith.negf %118 : vector<8x96xf32>
    %120 = math.exp %119 : vector<8x96xf32>
    %cst_49 = arith.constant 1.000000e+00 : f32
    %121 = vector.broadcast %cst_49 : f32 to vector<8x96xf32>
    %122 = arith.addf %121, %120 : vector<8x96xf32>
    %123 = arith.divf %121, %122 : vector<8x96xf32>
    %124 = vector.extract_strided_slice %117 {offsets = [0, 96], sizes = [8, 32], strides = [1, 1]} : vector<8x128xf32> to vector<8x32xf32>
    %125 = math.tanh %124 : vector<8x32xf32>
    %126 = vector.extract_strided_slice %123 {offsets = [0, 0], sizes = [8, 32], strides = [1, 1]} : vector<8x96xf32> to vector<8x32xf32>
    %127 = vector.extract_strided_slice %123 {offsets = [0, 32], sizes = [8, 32], strides = [1, 1]} : vector<8x96xf32> to vector<8x32xf32>
    %128 = vector.extract_strided_slice %123 {offsets = [0, 64], sizes = [8, 32], strides = [1, 1]} : vector<8x96xf32> to vector<8x32xf32>
    %129 = arith.mulf %127, %66 : vector<8x32xf32>
    %130 = arith.mulf %126, %125 : vector<8x32xf32>
    %131 = arith.addf %129, %130 : vector<8x32xf32>
    %132 = math.tanh %131 : vector<8x32xf32>
    %133 = arith.mulf %128, %132 : vector<8x32xf32>
    %134 = arith.truncf %87 : vector<8x32xf32> to vector<8x32xbf16>
    %cst_50 = arith.constant dense<0.000000e+00> : vector<8x128xf32>
    %135 = tpu.matmul %134, %0, %cst_50 {dimension_numbers = #tpu.dot_dimension_numbers<[1], [0], [0], [1], [0, 0, 1, 1], [], []>} : vector<8x32xbf16>, vector<32x128xbf16>, vector<8x128xf32> -> vector<8x128xf32>
    %136 = arith.addf %18, %135 : vector<8x128xf32>
    %137 = vector.extract_strided_slice %136 {offsets = [0, 0], sizes = [8, 96], strides = [1, 1]} : vector<8x128xf32> to vector<8x96xf32>
    %138 = arith.negf %137 : vector<8x96xf32>
    %139 = math.exp %138 : vector<8x96xf32>
    %cst_51 = arith.constant 1.000000e+00 : f32
    %140 = vector.broadcast %cst_51 : f32 to vector<8x96xf32>
    %141 = arith.addf %140, %139 : vector<8x96xf32>
    %142 = arith.divf %140, %141 : vector<8x96xf32>
    %143 = vector.extract_strided_slice %136 {offsets = [0, 96], sizes = [8, 32], strides = [1, 1]} : vector<8x128xf32> to vector<8x32xf32>
    %144 = math.tanh %143 : vector<8x32xf32>
    %145 = vector.extract_strided_slice %142 {offsets = [0, 0], sizes = [8, 32], strides = [1, 1]} : vector<8x96xf32> to vector<8x32xf32>
    %146 = vector.extract_strided_slice %142 {offsets = [0, 32], sizes = [8, 32], strides = [1, 1]} : vector<8x96xf32> to vector<8x32xf32>
    %147 = vector.extract_strided_slice %142 {offsets = [0, 64], sizes = [8, 32], strides = [1, 1]} : vector<8x96xf32> to vector<8x32xf32>
    %148 = arith.mulf %146, %85 : vector<8x32xf32>
    %149 = arith.mulf %145, %144 : vector<8x32xf32>
    %150 = arith.addf %148, %149 : vector<8x32xf32>
    %151 = math.tanh %150 : vector<8x32xf32>
    %152 = arith.mulf %147, %151 : vector<8x32xf32>
    %153 = arith.truncf %110 : vector<8x64xf32> to vector<8x64xbf16>
    %cst_52 = arith.constant dense<0.000000e+00> : vector<8x256xf32>
    %154 = tpu.matmul %153, %6, %cst_52 {dimension_numbers = #tpu.dot_dimension_numbers<[1], [0], [0], [1], [0, 0, 1, 1], [], []>} : vector<8x64xbf16>, vector<64x256xbf16>, vector<8x256xf32> -> vector<8x256xf32>
    %155 = vector.broadcast %9 : vector<1x256xf32> to vector<8x256xf32>
    %156 = arith.addf %154, %155 : vector<8x256xf32>
    %157 = arith.truncf %22 : vector<8x64xf32> to vector<8x64xbf16>
    %cst_53 = arith.constant dense<0.000000e+00> : vector<8x256xf32>
    %158 = tpu.matmul %157, %3, %cst_53 {dimension_numbers = #tpu.dot_dimension_numbers<[1], [0], [0], [1], [0, 0, 1, 1], [], []>} : vector<8x64xbf16>, vector<64x256xbf16>, vector<8x256xf32> -> vector<8x256xf32>
    %159 = arith.addf %156, %158 : vector<8x256xf32>
    %160 = vector.extract_strided_slice %159 {offsets = [0, 0], sizes = [8, 192], strides = [1, 1]} : vector<8x256xf32> to vector<8x192xf32>
    %161 = arith.negf %160 : vector<8x192xf32>
    %162 = math.exp %161 : vector<8x192xf32>
    %cst_54 = arith.constant 1.000000e+00 : f32
    %163 = vector.broadcast %cst_54 : f32 to vector<8x192xf32>
    %164 = arith.addf %163, %162 : vector<8x192xf32>
    %165 = arith.divf %163, %164 : vector<8x192xf32>
    %166 = vector.extract_strided_slice %159 {offsets = [0, 192], sizes = [8, 64], strides = [1, 1]} : vector<8x256xf32> to vector<8x64xf32>
    %167 = math.tanh %166 : vector<8x64xf32>
    %168 = vector.extract_strided_slice %165 {offsets = [0, 0], sizes = [8, 64], strides = [1, 1]} : vector<8x192xf32> to vector<8x64xf32>
    %169 = vector.extract_strided_slice %165 {offsets = [0, 64], sizes = [8, 64], strides = [1, 1]} : vector<8x192xf32> to vector<8x64xf32>
    %170 = vector.extract_strided_slice %165 {offsets = [0, 128], sizes = [8, 64], strides = [1, 1]} : vector<8x192xf32> to vector<8x64xf32>
    %171 = arith.mulf %169, %26 : vector<8x64xf32>
    %172 = arith.mulf %168, %167 : vector<8x64xf32>
    %173 = arith.addf %171, %172 : vector<8x64xf32>
    %174 = math.tanh %173 : vector<8x64xf32>
    %175 = arith.mulf %170, %174 : vector<8x64xf32>
    %176 = arith.truncf %175 : vector<8x64xf32> to vector<8x64xbf16>
    %cst_55 = arith.constant dense<0.000000e+00> : vector<8x8xf32>
    %177 = tpu.matmul %176, %10, %cst_55 {dimension_numbers = #tpu.dot_dimension_numbers<[1], [0], [0], [1], [0, 0, 1, 1], [], []>} : vector<8x64xbf16>, vector<64x8xbf16>, vector<8x8xf32> -> vector<8x8xf32>
    %178 = vector.broadcast %11 : vector<1x8xf32> to vector<8x8xf32>
    %179 = arith.addf %177, %178 : vector<8x8xf32>
    %c0_56 = arith.constant 0 : index
    %c0_57 = arith.constant 0 : index
    %180 = vector.load %arg15[%c0_56, %c0_57] : memref<64x8xf32, #tpu.memory_space<vmem>>, vector<8x8xf32>
    tpu.vector_store %arg15[%c0_56, %c0_57], %179 {strides = array<i32>} : memref<64x8xf32, #tpu.memory_space<vmem>>, vector<8x8xf32>,
    %181 = arith.truncf %133 : vector<8x32xf32> to vector<8x32xbf16>
    %cst_58 = arith.constant dense<0.000000e+00> : vector<8x256xf32>
    %182 = tpu.matmul %181, %5, %cst_58 {dimension_numbers = #tpu.dot_dimension_numbers<[1], [0], [0], [1], [0, 0, 1, 1], [], []>} : vector<8x32xbf16>, vector<32x256xbf16>, vector<8x256xf32> -> vector<8x256xf32>
    %183 = vector.broadcast %8 : vector<1x256xf32> to vector<8x256xf32>
    %184 = arith.addf %182, %183 : vector<8x256xf32>
    %185 = arith.truncf %110 : vector<8x64xf32> to vector<8x64xbf16>
    %cst_59 = arith.constant dense<0.000000e+00> : vector<8x256xf32>
    %186 = tpu.matmul %185, %2, %cst_59 {dimension_numbers = #tpu.dot_dimension_numbers<[1], [0], [0], [1], [0, 0, 1, 1], [], []>} : vector<8x64xbf16>, vector<64x256xbf16>, vector<8x256xf32> -> vector<8x256xf32>
    %187 = arith.addf %184, %186 : vector<8x256xf32>
    %188 = vector.extract_strided_slice %187 {offsets = [0, 0], sizes = [8, 192], strides = [1, 1]} : vector<8x256xf32> to vector<8x192xf32>
    %189 = arith.negf %188 : vector<8x192xf32>
    %190 = math.exp %189 : vector<8x192xf32>
    %cst_60 = arith.constant 1.000000e+00 : f32
    %191 = vector.broadcast %cst_60 : f32 to vector<8x192xf32>
    %192 = arith.addf %191, %190 : vector<8x192xf32>
    %193 = arith.divf %191, %192 : vector<8x192xf32>
    %194 = vector.extract_strided_slice %187 {offsets = [0, 192], sizes = [8, 64], strides = [1, 1]} : vector<8x256xf32> to vector<8x64xf32>
    %195 = math.tanh %194 : vector<8x64xf32>
    %196 = vector.extract_strided_slice %193 {offsets = [0, 0], sizes = [8, 64], strides = [1, 1]} : vector<8x192xf32> to vector<8x64xf32>
    %197 = vector.extract_strided_slice %193 {offsets = [0, 64], sizes = [8, 64], strides = [1, 1]} : vector<8x192xf32> to vector<8x64xf32>
    %198 = vector.extract_strided_slice %193 {offsets = [0, 128], sizes = [8, 64], strides = [1, 1]} : vector<8x192xf32> to vector<8x64xf32>
    %199 = arith.mulf %197, %108 : vector<8x64xf32>
    %200 = arith.mulf %196, %195 : vector<8x64xf32>
    %201 = arith.addf %199, %200 : vector<8x64xf32>
    %202 = math.tanh %201 : vector<8x64xf32>
    %203 = arith.mulf %198, %202 : vector<8x64xf32>
    %204 = arith.truncf %152 : vector<8x32xf32> to vector<8x32xbf16>
    %cst_61 = arith.constant dense<0.000000e+00> : vector<8x128xf32>
    %205 = tpu.matmul %204, %4, %cst_61 {dimension_numbers = #tpu.dot_dimension_numbers<[1], [0], [0], [1], [0, 0, 1, 1], [], []>} : vector<8x32xbf16>, vector<32x128xbf16>, vector<8x128xf32> -> vector<8x128xf32>
    %206 = vector.broadcast %7 : vector<1x128xf32> to vector<8x128xf32>
    %207 = arith.addf %205, %206 : vector<8x128xf32>
    %208 = arith.truncf %133 : vector<8x32xf32> to vector<8x32xbf16>
    %cst_62 = arith.constant dense<0.000000e+00> : vector<8x128xf32>
    %209 = tpu.matmul %208, %1, %cst_62 {dimension_numbers = #tpu.dot_dimension_numbers<[1], [0], [0], [1], [0, 0, 1, 1], [], []>} : vector<8x32xbf16>, vector<32x128xbf16>, vector<8x128xf32> -> vector<8x128xf32>
    %210 = arith.addf %207, %209 : vector<8x128xf32>
    %211 = vector.extract_strided_slice %210 {offsets = [0, 0], sizes = [8, 96], strides = [1, 1]} : vector<8x128xf32> to vector<8x96xf32>
    %212 = arith.negf %211 : vector<8x96xf32>
    %213 = math.exp %212 : vector<8x96xf32>
    %cst_63 = arith.constant 1.000000e+00 : f32
    %214 = vector.broadcast %cst_63 : f32 to vector<8x96xf32>
    %215 = arith.addf %214, %213 : vector<8x96xf32>
    %216 = arith.divf %214, %215 : vector<8x96xf32>
    %217 = vector.extract_strided_slice %210 {offsets = [0, 96], sizes = [8, 32], strides = [1, 1]} : vector<8x128xf32> to vector<8x32xf32>
    %218 = math.tanh %217 : vector<8x32xf32>
    %219 = vector.extract_strided_slice %216 {offsets = [0, 0], sizes = [8, 32], strides = [1, 1]} : vector<8x96xf32> to vector<8x32xf32>
    %220 = vector.extract_strided_slice %216 {offsets = [0, 32], sizes = [8, 32], strides = [1, 1]} : vector<8x96xf32> to vector<8x32xf32>
    %221 = vector.extract_strided_slice %216 {offsets = [0, 64], sizes = [8, 32], strides = [1, 1]} : vector<8x96xf32> to vector<8x32xf32>
    %222 = arith.mulf %220, %131 : vector<8x32xf32>
    %223 = arith.mulf %219, %218 : vector<8x32xf32>
    %224 = arith.addf %222, %223 : vector<8x32xf32>
    %225 = math.tanh %224 : vector<8x32xf32>
    %226 = arith.mulf %221, %225 : vector<8x32xf32>
    %227 = arith.truncf %152 : vector<8x32xf32> to vector<8x32xbf16>
    %cst_64 = arith.constant dense<0.000000e+00> : vector<8x128xf32>
    %228 = tpu.matmul %227, %0, %cst_64 {dimension_numbers = #tpu.dot_dimension_numbers<[1], [0], [0], [1], [0, 0, 1, 1], [], []>} : vector<8x32xbf16>, vector<32x128xbf16>, vector<8x128xf32> -> vector<8x128xf32>
    %229 = arith.addf %18, %228 : vector<8x128xf32>
    %230 = vector.extract_strided_slice %229 {offsets = [0, 0], sizes = [8, 96], strides = [1, 1]} : vector<8x128xf32> to vector<8x96xf32>
    %231 = arith.negf %230 : vector<8x96xf32>
    %232 = math.exp %231 : vector<8x96xf32>
    %cst_65 = arith.constant 1.000000e+00 : f32
    %233 = vector.broadcast %cst_65 : f32 to vector<8x96xf32>
    %234 = arith.addf %233, %232 : vector<8x96xf32>
    %235 = arith.divf %233, %234 : vector<8x96xf32>
    %236 = vector.extract_strided_slice %229 {offsets = [0, 96], sizes = [8, 32], strides = [1, 1]} : vector<8x128xf32> to vector<8x32xf32>
    %237 = math.tanh %236 : vector<8x32xf32>
    %238 = vector.extract_strided_slice %235 {offsets = [0, 0], sizes = [8, 32], strides = [1, 1]} : vector<8x96xf32> to vector<8x32xf32>
    %239 = vector.extract_strided_slice %235 {offsets = [0, 32], sizes = [8, 32], strides = [1, 1]} : vector<8x96xf32> to vector<8x32xf32>
    %240 = vector.extract_strided_slice %235 {offsets = [0, 64], sizes = [8, 32], strides = [1, 1]} : vector<8x96xf32> to vector<8x32xf32>
    %241 = arith.mulf %239, %150 : vector<8x32xf32>
    %242 = arith.mulf %238, %237 : vector<8x32xf32>
    %243 = arith.addf %241, %242 : vector<8x32xf32>
    %244 = math.tanh %243 : vector<8x32xf32>
    %245 = arith.mulf %240, %244 : vector<8x32xf32>
    %246 = arith.truncf %203 : vector<8x64xf32> to vector<8x64xbf16>
    %cst_66 = arith.constant dense<0.000000e+00> : vector<8x256xf32>
    %247 = tpu.matmul %246, %6, %cst_66 {dimension_numbers = #tpu.dot_dimension_numbers<[1], [0], [0], [1], [0, 0, 1, 1], [], []>} : vector<8x64xbf16>, vector<64x256xbf16>, vector<8x256xf32> -> vector<8x256xf32>
    %248 = vector.broadcast %9 : vector<1x256xf32> to vector<8x256xf32>
    %249 = arith.addf %247, %248 : vector<8x256xf32>
    %250 = arith.truncf %175 : vector<8x64xf32> to vector<8x64xbf16>
    %cst_67 = arith.constant dense<0.000000e+00> : vector<8x256xf32>
    %251 = tpu.matmul %250, %3, %cst_67 {dimension_numbers = #tpu.dot_dimension_numbers<[1], [0], [0], [1], [0, 0, 1, 1], [], []>} : vector<8x64xbf16>, vector<64x256xbf16>, vector<8x256xf32> -> vector<8x256xf32>
    %252 = arith.addf %249, %251 : vector<8x256xf32>
    %253 = vector.extract_strided_slice %252 {offsets = [0, 0], sizes = [8, 192], strides = [1, 1]} : vector<8x256xf32> to vector<8x192xf32>
    %254 = arith.negf %253 : vector<8x192xf32>
    %255 = math.exp %254 : vector<8x192xf32>
    %cst_68 = arith.constant 1.000000e+00 : f32
    %256 = vector.broadcast %cst_68 : f32 to vector<8x192xf32>
    %257 = arith.addf %256, %255 : vector<8x192xf32>
    %258 = arith.divf %256, %257 : vector<8x192xf32>
    %259 = vector.extract_strided_slice %252 {offsets = [0, 192], sizes = [8, 64], strides = [1, 1]} : vector<8x256xf32> to vector<8x64xf32>
    %260 = math.tanh %259 : vector<8x64xf32>
    %261 = vector.extract_strided_slice %258 {offsets = [0, 0], sizes = [8, 64], strides = [1, 1]} : vector<8x192xf32> to vector<8x64xf32>
    %262 = vector.extract_strided_slice %258 {offsets = [0, 64], sizes = [8, 64], strides = [1, 1]} : vector<8x192xf32> to vector<8x64xf32>
    %263 = vector.extract_strided_slice %258 {offsets = [0, 128], sizes = [8, 64], strides = [1, 1]} : vector<8x192xf32> to vector<8x64xf32>
    %264 = arith.mulf %262, %173 : vector<8x64xf32>
    %265 = arith.mulf %261, %260 : vector<8x64xf32>
    %266 = arith.addf %264, %265 : vector<8x64xf32>
    %267 = math.tanh %266 : vector<8x64xf32>
    %268 = arith.mulf %263, %267 : vector<8x64xf32>
    %269 = arith.truncf %268 : vector<8x64xf32> to vector<8x64xbf16>
    %cst_69 = arith.constant dense<0.000000e+00> : vector<8x8xf32>
    %270 = tpu.matmul %269, %10, %cst_69 {dimension_numbers = #tpu.dot_dimension_numbers<[1], [0], [0], [1], [0, 0, 1, 1], [], []>} : vector<8x64xbf16>, vector<64x8xbf16>, vector<8x8xf32> -> vector<8x8xf32>
    %271 = vector.broadcast %11 : vector<1x8xf32> to vector<8x8xf32>
    %272 = arith.addf %270, %271 : vector<8x8xf32>
    %c8 = arith.constant 8 : index
    %c0_70 = arith.constant 0 : index
    %273 = vector.load %arg15[%c8, %c0_70] : memref<64x8xf32, #tpu.memory_space<vmem>>, vector<8x8xf32>
    tpu.vector_store %arg15[%c8, %c0_70], %272 {strides = array<i32>} : memref<64x8xf32, #tpu.memory_space<vmem>>, vector<8x8xf32>,
    %274 = arith.truncf %226 : vector<8x32xf32> to vector<8x32xbf16>
    %cst_71 = arith.constant dense<0.000000e+00> : vector<8x256xf32>
    %275 = tpu.matmul %274, %5, %cst_71 {dimension_numbers = #tpu.dot_dimension_numbers<[1], [0], [0], [1], [0, 0, 1, 1], [], []>} : vector<8x32xbf16>, vector<32x256xbf16>, vector<8x256xf32> -> vector<8x256xf32>
    %276 = vector.broadcast %8 : vector<1x256xf32> to vector<8x256xf32>
    %277 = arith.addf %275, %276 : vector<8x256xf32>
    %278 = arith.truncf %203 : vector<8x64xf32> to vector<8x64xbf16>
    %cst_72 = arith.constant dense<0.000000e+00> : vector<8x256xf32>
    %279 = tpu.matmul %278, %2, %cst_72 {dimension_numbers = #tpu.dot_dimension_numbers<[1], [0], [0], [1], [0, 0, 1, 1], [], []>} : vector<8x64xbf16>, vector<64x256xbf16>, vector<8x256xf32> -> vector<8x256xf32>
    %280 = arith.addf %277, %279 : vector<8x256xf32>
    %281 = vector.extract_strided_slice %280 {offsets = [0, 0], sizes = [8, 192], strides = [1, 1]} : vector<8x256xf32> to vector<8x192xf32>
    %282 = arith.negf %281 : vector<8x192xf32>
    %283 = math.exp %282 : vector<8x192xf32>
    %cst_73 = arith.constant 1.000000e+00 : f32
    %284 = vector.broadcast %cst_73 : f32 to vector<8x192xf32>
    %285 = arith.addf %284, %283 : vector<8x192xf32>
    %286 = arith.divf %284, %285 : vector<8x192xf32>
    %287 = vector.extract_strided_slice %280 {offsets = [0, 192], sizes = [8, 64], strides = [1, 1]} : vector<8x256xf32> to vector<8x64xf32>
    %288 = math.tanh %287 : vector<8x64xf32>
    %289 = vector.extract_strided_slice %286 {offsets = [0, 0], sizes = [8, 64], strides = [1, 1]} : vector<8x192xf32> to vector<8x64xf32>
    %290 = vector.extract_strided_slice %286 {offsets = [0, 64], sizes = [8, 64], strides = [1, 1]} : vector<8x192xf32> to vector<8x64xf32>
    %291 = vector.extract_strided_slice %286 {offsets = [0, 128], sizes = [8, 64], strides = [1, 1]} : vector<8x192xf32> to vector<8x64xf32>
    %292 = arith.mulf %290, %201 : vector<8x64xf32>
    %293 = arith.mulf %289, %288 : vector<8x64xf32>
    %294 = arith.addf %292, %293 : vector<8x64xf32>
    %295 = math.tanh %294 : vector<8x64xf32>
    %296 = arith.mulf %291, %295 : vector<8x64xf32>
    %297 = arith.truncf %245 : vector<8x32xf32> to vector<8x32xbf16>
    %cst_74 = arith.constant dense<0.000000e+00> : vector<8x128xf32>
    %298 = tpu.matmul %297, %4, %cst_74 {dimension_numbers = #tpu.dot_dimension_numbers<[1], [0], [0], [1], [0, 0, 1, 1], [], []>} : vector<8x32xbf16>, vector<32x128xbf16>, vector<8x128xf32> -> vector<8x128xf32>
    %299 = vector.broadcast %7 : vector<1x128xf32> to vector<8x128xf32>
    %300 = arith.addf %298, %299 : vector<8x128xf32>
    %301 = arith.truncf %226 : vector<8x32xf32> to vector<8x32xbf16>
    %cst_75 = arith.constant dense<0.000000e+00> : vector<8x128xf32>
    %302 = tpu.matmul %301, %1, %cst_75 {dimension_numbers = #tpu.dot_dimension_numbers<[1], [0], [0], [1], [0, 0, 1, 1], [], []>} : vector<8x32xbf16>, vector<32x128xbf16>, vector<8x128xf32> -> vector<8x128xf32>
    %303 = arith.addf %300, %302 : vector<8x128xf32>
    %304 = vector.extract_strided_slice %303 {offsets = [0, 0], sizes = [8, 96], strides = [1, 1]} : vector<8x128xf32> to vector<8x96xf32>
    %305 = arith.negf %304 : vector<8x96xf32>
    %306 = math.exp %305 : vector<8x96xf32>
    %cst_76 = arith.constant 1.000000e+00 : f32
    %307 = vector.broadcast %cst_76 : f32 to vector<8x96xf32>
    %308 = arith.addf %307, %306 : vector<8x96xf32>
    %309 = arith.divf %307, %308 : vector<8x96xf32>
    %310 = vector.extract_strided_slice %303 {offsets = [0, 96], sizes = [8, 32], strides = [1, 1]} : vector<8x128xf32> to vector<8x32xf32>
    %311 = math.tanh %310 : vector<8x32xf32>
    %312 = vector.extract_strided_slice %309 {offsets = [0, 0], sizes = [8, 32], strides = [1, 1]} : vector<8x96xf32> to vector<8x32xf32>
    %313 = vector.extract_strided_slice %309 {offsets = [0, 32], sizes = [8, 32], strides = [1, 1]} : vector<8x96xf32> to vector<8x32xf32>
    %314 = vector.extract_strided_slice %309 {offsets = [0, 64], sizes = [8, 32], strides = [1, 1]} : vector<8x96xf32> to vector<8x32xf32>
    %315 = arith.mulf %313, %224 : vector<8x32xf32>
    %316 = arith.mulf %312, %311 : vector<8x32xf32>
    %317 = arith.addf %315, %316 : vector<8x32xf32>
    %318 = math.tanh %317 : vector<8x32xf32>
    %319 = arith.mulf %314, %318 : vector<8x32xf32>
    %320 = arith.truncf %245 : vector<8x32xf32> to vector<8x32xbf16>
    %cst_77 = arith.constant dense<0.000000e+00> : vector<8x128xf32>
    %321 = tpu.matmul %320, %0, %cst_77 {dimension_numbers = #tpu.dot_dimension_numbers<[1], [0], [0], [1], [0, 0, 1, 1], [], []>} : vector<8x32xbf16>, vector<32x128xbf16>, vector<8x128xf32> -> vector<8x128xf32>
    %322 = arith.addf %18, %321 : vector<8x128xf32>
    %323 = vector.extract_strided_slice %322 {offsets = [0, 0], sizes = [8, 96], strides = [1, 1]} : vector<8x128xf32> to vector<8x96xf32>
    %324 = arith.negf %323 : vector<8x96xf32>
    %325 = math.exp %324 : vector<8x96xf32>
    %cst_78 = arith.constant 1.000000e+00 : f32
    %326 = vector.broadcast %cst_78 : f32 to vector<8x96xf32>
    %327 = arith.addf %326, %325 : vector<8x96xf32>
    %328 = arith.divf %326, %327 : vector<8x96xf32>
    %329 = vector.extract_strided_slice %322 {offsets = [0, 96], sizes = [8, 32], strides = [1, 1]} : vector<8x128xf32> to vector<8x32xf32>
    %330 = math.tanh %329 : vector<8x32xf32>
    %331 = vector.extract_strided_slice %328 {offsets = [0, 0], sizes = [8, 32], strides = [1, 1]} : vector<8x96xf32> to vector<8x32xf32>
    %332 = vector.extract_strided_slice %328 {offsets = [0, 32], sizes = [8, 32], strides = [1, 1]} : vector<8x96xf32> to vector<8x32xf32>
    %333 = vector.extract_strided_slice %328 {offsets = [0, 64], sizes = [8, 32], strides = [1, 1]} : vector<8x96xf32> to vector<8x32xf32>
    %334 = arith.mulf %332, %243 : vector<8x32xf32>
    %335 = arith.mulf %331, %330 : vector<8x32xf32>
    %336 = arith.addf %334, %335 : vector<8x32xf32>
    %337 = math.tanh %336 : vector<8x32xf32>
    %338 = arith.mulf %333, %337 : vector<8x32xf32>
    %339 = arith.truncf %296 : vector<8x64xf32> to vector<8x64xbf16>
    %cst_79 = arith.constant dense<0.000000e+00> : vector<8x256xf32>
    %340 = tpu.matmul %339, %6, %cst_79 {dimension_numbers = #tpu.dot_dimension_numbers<[1], [0], [0], [1], [0, 0, 1, 1], [], []>} : vector<8x64xbf16>, vector<64x256xbf16>, vector<8x256xf32> -> vector<8x256xf32>
    %341 = vector.broadcast %9 : vector<1x256xf32> to vector<8x256xf32>
    %342 = arith.addf %340, %341 : vector<8x256xf32>
    %343 = arith.truncf %268 : vector<8x64xf32> to vector<8x64xbf16>
    %cst_80 = arith.constant dense<0.000000e+00> : vector<8x256xf32>
    %344 = tpu.matmul %343, %3, %cst_80 {dimension_numbers = #tpu.dot_dimension_numbers<[1], [0], [0], [1], [0, 0, 1, 1], [], []>} : vector<8x64xbf16>, vector<64x256xbf16>, vector<8x256xf32> -> vector<8x256xf32>
    %345 = arith.addf %342, %344 : vector<8x256xf32>
    %346 = vector.extract_strided_slice %345 {offsets = [0, 0], sizes = [8, 192], strides = [1, 1]} : vector<8x256xf32> to vector<8x192xf32>
    %347 = arith.negf %346 : vector<8x192xf32>
    %348 = math.exp %347 : vector<8x192xf32>
    %cst_81 = arith.constant 1.000000e+00 : f32
    %349 = vector.broadcast %cst_81 : f32 to vector<8x192xf32>
    %350 = arith.addf %349, %348 : vector<8x192xf32>
    %351 = arith.divf %349, %350 : vector<8x192xf32>
    %352 = vector.extract_strided_slice %345 {offsets = [0, 192], sizes = [8, 64], strides = [1, 1]} : vector<8x256xf32> to vector<8x64xf32>
    %353 = math.tanh %352 : vector<8x64xf32>
    %354 = vector.extract_strided_slice %351 {offsets = [0, 0], sizes = [8, 64], strides = [1, 1]} : vector<8x192xf32> to vector<8x64xf32>
    %355 = vector.extract_strided_slice %351 {offsets = [0, 64], sizes = [8, 64], strides = [1, 1]} : vector<8x192xf32> to vector<8x64xf32>
    %356 = vector.extract_strided_slice %351 {offsets = [0, 128], sizes = [8, 64], strides = [1, 1]} : vector<8x192xf32> to vector<8x64xf32>
    %357 = arith.mulf %355, %266 : vector<8x64xf32>
    %358 = arith.mulf %354, %353 : vector<8x64xf32>
    %359 = arith.addf %357, %358 : vector<8x64xf32>
    %360 = math.tanh %359 : vector<8x64xf32>
    %361 = arith.mulf %356, %360 : vector<8x64xf32>
    %362 = arith.truncf %361 : vector<8x64xf32> to vector<8x64xbf16>
    %cst_82 = arith.constant dense<0.000000e+00> : vector<8x8xf32>
    %363 = tpu.matmul %362, %10, %cst_82 {dimension_numbers = #tpu.dot_dimension_numbers<[1], [0], [0], [1], [0, 0, 1, 1], [], []>} : vector<8x64xbf16>, vector<64x8xbf16>, vector<8x8xf32> -> vector<8x8xf32>
    %364 = vector.broadcast %11 : vector<1x8xf32> to vector<8x8xf32>
    %365 = arith.addf %363, %364 : vector<8x8xf32>
    %c16 = arith.constant 16 : index
    %c0_83 = arith.constant 0 : index
    %366 = vector.load %arg15[%c16, %c0_83] : memref<64x8xf32, #tpu.memory_space<vmem>>, vector<8x8xf32>
    tpu.vector_store %arg15[%c16, %c0_83], %365 {strides = array<i32>} : memref<64x8xf32, #tpu.memory_space<vmem>>, vector<8x8xf32>,
    %367 = arith.truncf %319 : vector<8x32xf32> to vector<8x32xbf16>
    %cst_84 = arith.constant dense<0.000000e+00> : vector<8x256xf32>
    %368 = tpu.matmul %367, %5, %cst_84 {dimension_numbers = #tpu.dot_dimension_numbers<[1], [0], [0], [1], [0, 0, 1, 1], [], []>} : vector<8x32xbf16>, vector<32x256xbf16>, vector<8x256xf32> -> vector<8x256xf32>
    %369 = vector.broadcast %8 : vector<1x256xf32> to vector<8x256xf32>
    %370 = arith.addf %368, %369 : vector<8x256xf32>
    %371 = arith.truncf %296 : vector<8x64xf32> to vector<8x64xbf16>
    %cst_85 = arith.constant dense<0.000000e+00> : vector<8x256xf32>
    %372 = tpu.matmul %371, %2, %cst_85 {dimension_numbers = #tpu.dot_dimension_numbers<[1], [0], [0], [1], [0, 0, 1, 1], [], []>} : vector<8x64xbf16>, vector<64x256xbf16>, vector<8x256xf32> -> vector<8x256xf32>
    %373 = arith.addf %370, %372 : vector<8x256xf32>
    %374 = vector.extract_strided_slice %373 {offsets = [0, 0], sizes = [8, 192], strides = [1, 1]} : vector<8x256xf32> to vector<8x192xf32>
    %375 = arith.negf %374 : vector<8x192xf32>
    %376 = math.exp %375 : vector<8x192xf32>
    %cst_86 = arith.constant 1.000000e+00 : f32
    %377 = vector.broadcast %cst_86 : f32 to vector<8x192xf32>
    %378 = arith.addf %377, %376 : vector<8x192xf32>
    %379 = arith.divf %377, %378 : vector<8x192xf32>
    %380 = vector.extract_strided_slice %373 {offsets = [0, 192], sizes = [8, 64], strides = [1, 1]} : vector<8x256xf32> to vector<8x64xf32>
    %381 = math.tanh %380 : vector<8x64xf32>
    %382 = vector.extract_strided_slice %379 {offsets = [0, 0], sizes = [8, 64], strides = [1, 1]} : vector<8x192xf32> to vector<8x64xf32>
    %383 = vector.extract_strided_slice %379 {offsets = [0, 64], sizes = [8, 64], strides = [1, 1]} : vector<8x192xf32> to vector<8x64xf32>
    %384 = vector.extract_strided_slice %379 {offsets = [0, 128], sizes = [8, 64], strides = [1, 1]} : vector<8x192xf32> to vector<8x64xf32>
    %385 = arith.mulf %383, %294 : vector<8x64xf32>
    %386 = arith.mulf %382, %381 : vector<8x64xf32>
    %387 = arith.addf %385, %386 : vector<8x64xf32>
    %388 = math.tanh %387 : vector<8x64xf32>
    %389 = arith.mulf %384, %388 : vector<8x64xf32>
    %390 = arith.truncf %338 : vector<8x32xf32> to vector<8x32xbf16>
    %cst_87 = arith.constant dense<0.000000e+00> : vector<8x128xf32>
    %391 = tpu.matmul %390, %4, %cst_87 {dimension_numbers = #tpu.dot_dimension_numbers<[1], [0], [0], [1], [0, 0, 1, 1], [], []>} : vector<8x32xbf16>, vector<32x128xbf16>, vector<8x128xf32> -> vector<8x128xf32>
    %392 = vector.broadcast %7 : vector<1x128xf32> to vector<8x128xf32>
    %393 = arith.addf %391, %392 : vector<8x128xf32>
    %394 = arith.truncf %319 : vector<8x32xf32> to vector<8x32xbf16>
    %cst_88 = arith.constant dense<0.000000e+00> : vector<8x128xf32>
    %395 = tpu.matmul %394, %1, %cst_88 {dimension_numbers = #tpu.dot_dimension_numbers<[1], [0], [0], [1], [0, 0, 1, 1], [], []>} : vector<8x32xbf16>, vector<32x128xbf16>, vector<8x128xf32> -> vector<8x128xf32>
    %396 = arith.addf %393, %395 : vector<8x128xf32>
    %397 = vector.extract_strided_slice %396 {offsets = [0, 0], sizes = [8, 96], strides = [1, 1]} : vector<8x128xf32> to vector<8x96xf32>
    %398 = arith.negf %397 : vector<8x96xf32>
    %399 = math.exp %398 : vector<8x96xf32>
    %cst_89 = arith.constant 1.000000e+00 : f32
    %400 = vector.broadcast %cst_89 : f32 to vector<8x96xf32>
    %401 = arith.addf %400, %399 : vector<8x96xf32>
    %402 = arith.divf %400, %401 : vector<8x96xf32>
    %403 = vector.extract_strided_slice %396 {offsets = [0, 96], sizes = [8, 32], strides = [1, 1]} : vector<8x128xf32> to vector<8x32xf32>
    %404 = math.tanh %403 : vector<8x32xf32>
    %405 = vector.extract_strided_slice %402 {offsets = [0, 0], sizes = [8, 32], strides = [1, 1]} : vector<8x96xf32> to vector<8x32xf32>
    %406 = vector.extract_strided_slice %402 {offsets = [0, 32], sizes = [8, 32], strides = [1, 1]} : vector<8x96xf32> to vector<8x32xf32>
    %407 = vector.extract_strided_slice %402 {offsets = [0, 64], sizes = [8, 32], strides = [1, 1]} : vector<8x96xf32> to vector<8x32xf32>
    %408 = arith.mulf %406, %317 : vector<8x32xf32>
    %409 = arith.mulf %405, %404 : vector<8x32xf32>
    %410 = arith.addf %408, %409 : vector<8x32xf32>
    %411 = math.tanh %410 : vector<8x32xf32>
    %412 = arith.mulf %407, %411 : vector<8x32xf32>
    %413 = arith.truncf %338 : vector<8x32xf32> to vector<8x32xbf16>
    %cst_90 = arith.constant dense<0.000000e+00> : vector<8x128xf32>
    %414 = tpu.matmul %413, %0, %cst_90 {dimension_numbers = #tpu.dot_dimension_numbers<[1], [0], [0], [1], [0, 0, 1, 1], [], []>} : vector<8x32xbf16>, vector<32x128xbf16>, vector<8x128xf32> -> vector<8x128xf32>
    %415 = arith.addf %18, %414 : vector<8x128xf32>
    %416 = vector.extract_strided_slice %415 {offsets = [0, 0], sizes = [8, 96], strides = [1, 1]} : vector<8x128xf32> to vector<8x96xf32>
    %417 = arith.negf %416 : vector<8x96xf32>
    %418 = math.exp %417 : vector<8x96xf32>
    %cst_91 = arith.constant 1.000000e+00 : f32
    %419 = vector.broadcast %cst_91 : f32 to vector<8x96xf32>
    %420 = arith.addf %419, %418 : vector<8x96xf32>
    %421 = arith.divf %419, %420 : vector<8x96xf32>
    %422 = vector.extract_strided_slice %415 {offsets = [0, 96], sizes = [8, 32], strides = [1, 1]} : vector<8x128xf32> to vector<8x32xf32>
    %423 = math.tanh %422 : vector<8x32xf32>
    %424 = vector.extract_strided_slice %421 {offsets = [0, 0], sizes = [8, 32], strides = [1, 1]} : vector<8x96xf32> to vector<8x32xf32>
    %425 = vector.extract_strided_slice %421 {offsets = [0, 32], sizes = [8, 32], strides = [1, 1]} : vector<8x96xf32> to vector<8x32xf32>
    %426 = vector.extract_strided_slice %421 {offsets = [0, 64], sizes = [8, 32], strides = [1, 1]} : vector<8x96xf32> to vector<8x32xf32>
    %427 = arith.mulf %425, %336 : vector<8x32xf32>
    %428 = arith.mulf %424, %423 : vector<8x32xf32>
    %429 = arith.addf %427, %428 : vector<8x32xf32>
    %430 = math.tanh %429 : vector<8x32xf32>
    %431 = arith.mulf %426, %430 : vector<8x32xf32>
    %432 = arith.truncf %389 : vector<8x64xf32> to vector<8x64xbf16>
    %cst_92 = arith.constant dense<0.000000e+00> : vector<8x256xf32>
    %433 = tpu.matmul %432, %6, %cst_92 {dimension_numbers = #tpu.dot_dimension_numbers<[1], [0], [0], [1], [0, 0, 1, 1], [], []>} : vector<8x64xbf16>, vector<64x256xbf16>, vector<8x256xf32> -> vector<8x256xf32>
    %434 = vector.broadcast %9 : vector<1x256xf32> to vector<8x256xf32>
    %435 = arith.addf %433, %434 : vector<8x256xf32>
    %436 = arith.truncf %361 : vector<8x64xf32> to vector<8x64xbf16>
    %cst_93 = arith.constant dense<0.000000e+00> : vector<8x256xf32>
    %437 = tpu.matmul %436, %3, %cst_93 {dimension_numbers = #tpu.dot_dimension_numbers<[1], [0], [0], [1], [0, 0, 1, 1], [], []>} : vector<8x64xbf16>, vector<64x256xbf16>, vector<8x256xf32> -> vector<8x256xf32>
    %438 = arith.addf %435, %437 : vector<8x256xf32>
    %439 = vector.extract_strided_slice %438 {offsets = [0, 0], sizes = [8, 192], strides = [1, 1]} : vector<8x256xf32> to vector<8x192xf32>
    %440 = arith.negf %439 : vector<8x192xf32>
    %441 = math.exp %440 : vector<8x192xf32>
    %cst_94 = arith.constant 1.000000e+00 : f32
    %442 = vector.broadcast %cst_94 : f32 to vector<8x192xf32>
    %443 = arith.addf %442, %441 : vector<8x192xf32>
    %444 = arith.divf %442, %443 : vector<8x192xf32>
    %445 = vector.extract_strided_slice %438 {offsets = [0, 192], sizes = [8, 64], strides = [1, 1]} : vector<8x256xf32> to vector<8x64xf32>
    %446 = math.tanh %445 : vector<8x64xf32>
    %447 = vector.extract_strided_slice %444 {offsets = [0, 0], sizes = [8, 64], strides = [1, 1]} : vector<8x192xf32> to vector<8x64xf32>
    %448 = vector.extract_strided_slice %444 {offsets = [0, 64], sizes = [8, 64], strides = [1, 1]} : vector<8x192xf32> to vector<8x64xf32>
    %449 = vector.extract_strided_slice %444 {offsets = [0, 128], sizes = [8, 64], strides = [1, 1]} : vector<8x192xf32> to vector<8x64xf32>
    %450 = arith.mulf %448, %359 : vector<8x64xf32>
    %451 = arith.mulf %447, %446 : vector<8x64xf32>
    %452 = arith.addf %450, %451 : vector<8x64xf32>
    %453 = math.tanh %452 : vector<8x64xf32>
    %454 = arith.mulf %449, %453 : vector<8x64xf32>
    %455 = arith.truncf %454 : vector<8x64xf32> to vector<8x64xbf16>
    %cst_95 = arith.constant dense<0.000000e+00> : vector<8x8xf32>
    %456 = tpu.matmul %455, %10, %cst_95 {dimension_numbers = #tpu.dot_dimension_numbers<[1], [0], [0], [1], [0, 0, 1, 1], [], []>} : vector<8x64xbf16>, vector<64x8xbf16>, vector<8x8xf32> -> vector<8x8xf32>
    %457 = vector.broadcast %11 : vector<1x8xf32> to vector<8x8xf32>
    %458 = arith.addf %456, %457 : vector<8x8xf32>
    %c24 = arith.constant 24 : index
    %c0_96 = arith.constant 0 : index
    %459 = vector.load %arg15[%c24, %c0_96] : memref<64x8xf32, #tpu.memory_space<vmem>>, vector<8x8xf32>
    tpu.vector_store %arg15[%c24, %c0_96], %458 {strides = array<i32>} : memref<64x8xf32, #tpu.memory_space<vmem>>, vector<8x8xf32>,
    %460 = arith.truncf %412 : vector<8x32xf32> to vector<8x32xbf16>
    %cst_97 = arith.constant dense<0.000000e+00> : vector<8x256xf32>
    %461 = tpu.matmul %460, %5, %cst_97 {dimension_numbers = #tpu.dot_dimension_numbers<[1], [0], [0], [1], [0, 0, 1, 1], [], []>} : vector<8x32xbf16>, vector<32x256xbf16>, vector<8x256xf32> -> vector<8x256xf32>
    %462 = vector.broadcast %8 : vector<1x256xf32> to vector<8x256xf32>
    %463 = arith.addf %461, %462 : vector<8x256xf32>
    %464 = arith.truncf %389 : vector<8x64xf32> to vector<8x64xbf16>
    %cst_98 = arith.constant dense<0.000000e+00> : vector<8x256xf32>
    %465 = tpu.matmul %464, %2, %cst_98 {dimension_numbers = #tpu.dot_dimension_numbers<[1], [0], [0], [1], [0, 0, 1, 1], [], []>} : vector<8x64xbf16>, vector<64x256xbf16>, vector<8x256xf32> -> vector<8x256xf32>
    %466 = arith.addf %463, %465 : vector<8x256xf32>
    %467 = vector.extract_strided_slice %466 {offsets = [0, 0], sizes = [8, 192], strides = [1, 1]} : vector<8x256xf32> to vector<8x192xf32>
    %468 = arith.negf %467 : vector<8x192xf32>
    %469 = math.exp %468 : vector<8x192xf32>
    %cst_99 = arith.constant 1.000000e+00 : f32
    %470 = vector.broadcast %cst_99 : f32 to vector<8x192xf32>
    %471 = arith.addf %470, %469 : vector<8x192xf32>
    %472 = arith.divf %470, %471 : vector<8x192xf32>
    %473 = vector.extract_strided_slice %466 {offsets = [0, 192], sizes = [8, 64], strides = [1, 1]} : vector<8x256xf32> to vector<8x64xf32>
    %474 = math.tanh %473 : vector<8x64xf32>
    %475 = vector.extract_strided_slice %472 {offsets = [0, 0], sizes = [8, 64], strides = [1, 1]} : vector<8x192xf32> to vector<8x64xf32>
    %476 = vector.extract_strided_slice %472 {offsets = [0, 64], sizes = [8, 64], strides = [1, 1]} : vector<8x192xf32> to vector<8x64xf32>
    %477 = vector.extract_strided_slice %472 {offsets = [0, 128], sizes = [8, 64], strides = [1, 1]} : vector<8x192xf32> to vector<8x64xf32>
    %478 = arith.mulf %476, %387 : vector<8x64xf32>
    %479 = arith.mulf %475, %474 : vector<8x64xf32>
    %480 = arith.addf %478, %479 : vector<8x64xf32>
    %481 = math.tanh %480 : vector<8x64xf32>
    %482 = arith.mulf %477, %481 : vector<8x64xf32>
    %483 = arith.truncf %431 : vector<8x32xf32> to vector<8x32xbf16>
    %cst_100 = arith.constant dense<0.000000e+00> : vector<8x128xf32>
    %484 = tpu.matmul %483, %4, %cst_100 {dimension_numbers = #tpu.dot_dimension_numbers<[1], [0], [0], [1], [0, 0, 1, 1], [], []>} : vector<8x32xbf16>, vector<32x128xbf16>, vector<8x128xf32> -> vector<8x128xf32>
    %485 = vector.broadcast %7 : vector<1x128xf32> to vector<8x128xf32>
    %486 = arith.addf %484, %485 : vector<8x128xf32>
    %487 = arith.truncf %412 : vector<8x32xf32> to vector<8x32xbf16>
    %cst_101 = arith.constant dense<0.000000e+00> : vector<8x128xf32>
    %488 = tpu.matmul %487, %1, %cst_101 {dimension_numbers = #tpu.dot_dimension_numbers<[1], [0], [0], [1], [0, 0, 1, 1], [], []>} : vector<8x32xbf16>, vector<32x128xbf16>, vector<8x128xf32> -> vector<8x128xf32>
    %489 = arith.addf %486, %488 : vector<8x128xf32>
    %490 = vector.extract_strided_slice %489 {offsets = [0, 0], sizes = [8, 96], strides = [1, 1]} : vector<8x128xf32> to vector<8x96xf32>
    %491 = arith.negf %490 : vector<8x96xf32>
    %492 = math.exp %491 : vector<8x96xf32>
    %cst_102 = arith.constant 1.000000e+00 : f32
    %493 = vector.broadcast %cst_102 : f32 to vector<8x96xf32>
    %494 = arith.addf %493, %492 : vector<8x96xf32>
    %495 = arith.divf %493, %494 : vector<8x96xf32>
    %496 = vector.extract_strided_slice %489 {offsets = [0, 96], sizes = [8, 32], strides = [1, 1]} : vector<8x128xf32> to vector<8x32xf32>
    %497 = math.tanh %496 : vector<8x32xf32>
    %498 = vector.extract_strided_slice %495 {offsets = [0, 0], sizes = [8, 32], strides = [1, 1]} : vector<8x96xf32> to vector<8x32xf32>
    %499 = vector.extract_strided_slice %495 {offsets = [0, 32], sizes = [8, 32], strides = [1, 1]} : vector<8x96xf32> to vector<8x32xf32>
    %500 = vector.extract_strided_slice %495 {offsets = [0, 64], sizes = [8, 32], strides = [1, 1]} : vector<8x96xf32> to vector<8x32xf32>
    %501 = arith.mulf %499, %410 : vector<8x32xf32>
    %502 = arith.mulf %498, %497 : vector<8x32xf32>
    %503 = arith.addf %501, %502 : vector<8x32xf32>
    %504 = math.tanh %503 : vector<8x32xf32>
    %505 = arith.mulf %500, %504 : vector<8x32xf32>
    %506 = arith.truncf %431 : vector<8x32xf32> to vector<8x32xbf16>
    %cst_103 = arith.constant dense<0.000000e+00> : vector<8x128xf32>
    %507 = tpu.matmul %506, %0, %cst_103 {dimension_numbers = #tpu.dot_dimension_numbers<[1], [0], [0], [1], [0, 0, 1, 1], [], []>} : vector<8x32xbf16>, vector<32x128xbf16>, vector<8x128xf32> -> vector<8x128xf32>
    %508 = arith.addf %18, %507 : vector<8x128xf32>
    %509 = vector.extract_strided_slice %508 {offsets = [0, 0], sizes = [8, 96], strides = [1, 1]} : vector<8x128xf32> to vector<8x96xf32>
    %510 = arith.negf %509 : vector<8x96xf32>
    %511 = math.exp %510 : vector<8x96xf32>
    %cst_104 = arith.constant 1.000000e+00 : f32
    %512 = vector.broadcast %cst_104 : f32 to vector<8x96xf32>
    %513 = arith.addf %512, %511 : vector<8x96xf32>
    %514 = arith.divf %512, %513 : vector<8x96xf32>
    %515 = vector.extract_strided_slice %508 {offsets = [0, 96], sizes = [8, 32], strides = [1, 1]} : vector<8x128xf32> to vector<8x32xf32>
    %516 = math.tanh %515 : vector<8x32xf32>
    %517 = vector.extract_strided_slice %514 {offsets = [0, 0], sizes = [8, 32], strides = [1, 1]} : vector<8x96xf32> to vector<8x32xf32>
    %518 = vector.extract_strided_slice %514 {offsets = [0, 32], sizes = [8, 32], strides = [1, 1]} : vector<8x96xf32> to vector<8x32xf32>
    %519 = vector.extract_strided_slice %514 {offsets = [0, 64], sizes = [8, 32], strides = [1, 1]} : vector<8x96xf32> to vector<8x32xf32>
    %520 = arith.mulf %518, %429 : vector<8x32xf32>
    %521 = arith.mulf %517, %516 : vector<8x32xf32>
    %522 = arith.addf %520, %521 : vector<8x32xf32>
    %523 = math.tanh %522 : vector<8x32xf32>
    %524 = arith.mulf %519, %523 : vector<8x32xf32>
    %525 = arith.truncf %482 : vector<8x64xf32> to vector<8x64xbf16>
    %cst_105 = arith.constant dense<0.000000e+00> : vector<8x256xf32>
    %526 = tpu.matmul %525, %6, %cst_105 {dimension_numbers = #tpu.dot_dimension_numbers<[1], [0], [0], [1], [0, 0, 1, 1], [], []>} : vector<8x64xbf16>, vector<64x256xbf16>, vector<8x256xf32> -> vector<8x256xf32>
    %527 = vector.broadcast %9 : vector<1x256xf32> to vector<8x256xf32>
    %528 = arith.addf %526, %527 : vector<8x256xf32>
    %529 = arith.truncf %454 : vector<8x64xf32> to vector<8x64xbf16>
    %cst_106 = arith.constant dense<0.000000e+00> : vector<8x256xf32>
    %530 = tpu.matmul %529, %3, %cst_106 {dimension_numbers = #tpu.dot_dimension_numbers<[1], [0], [0], [1], [0, 0, 1, 1], [], []>} : vector<8x64xbf16>, vector<64x256xbf16>, vector<8x256xf32> -> vector<8x256xf32>
    %531 = arith.addf %528, %530 : vector<8x256xf32>
    %532 = vector.extract_strided_slice %531 {offsets = [0, 0], sizes = [8, 192], strides = [1, 1]} : vector<8x256xf32> to vector<8x192xf32>
    %533 = arith.negf %532 : vector<8x192xf32>
    %534 = math.exp %533 : vector<8x192xf32>
    %cst_107 = arith.constant 1.000000e+00 : f32
    %535 = vector.broadcast %cst_107 : f32 to vector<8x192xf32>
    %536 = arith.addf %535, %534 : vector<8x192xf32>
    %537 = arith.divf %535, %536 : vector<8x192xf32>
    %538 = vector.extract_strided_slice %531 {offsets = [0, 192], sizes = [8, 64], strides = [1, 1]} : vector<8x256xf32> to vector<8x64xf32>
    %539 = math.tanh %538 : vector<8x64xf32>
    %540 = vector.extract_strided_slice %537 {offsets = [0, 0], sizes = [8, 64], strides = [1, 1]} : vector<8x192xf32> to vector<8x64xf32>
    %541 = vector.extract_strided_slice %537 {offsets = [0, 64], sizes = [8, 64], strides = [1, 1]} : vector<8x192xf32> to vector<8x64xf32>
    %542 = vector.extract_strided_slice %537 {offsets = [0, 128], sizes = [8, 64], strides = [1, 1]} : vector<8x192xf32> to vector<8x64xf32>
    %543 = arith.mulf %541, %452 : vector<8x64xf32>
    %544 = arith.mulf %540, %539 : vector<8x64xf32>
    %545 = arith.addf %543, %544 : vector<8x64xf32>
    %546 = math.tanh %545 : vector<8x64xf32>
    %547 = arith.mulf %542, %546 : vector<8x64xf32>
    %548 = arith.truncf %547 : vector<8x64xf32> to vector<8x64xbf16>
    %cst_108 = arith.constant dense<0.000000e+00> : vector<8x8xf32>
    %549 = tpu.matmul %548, %10, %cst_108 {dimension_numbers = #tpu.dot_dimension_numbers<[1], [0], [0], [1], [0, 0, 1, 1], [], []>} : vector<8x64xbf16>, vector<64x8xbf16>, vector<8x8xf32> -> vector<8x8xf32>
    %550 = vector.broadcast %11 : vector<1x8xf32> to vector<8x8xf32>
    %551 = arith.addf %549, %550 : vector<8x8xf32>
    %c32 = arith.constant 32 : index
    %c0_109 = arith.constant 0 : index
    %552 = vector.load %arg15[%c32, %c0_109] : memref<64x8xf32, #tpu.memory_space<vmem>>, vector<8x8xf32>
    tpu.vector_store %arg15[%c32, %c0_109], %551 {strides = array<i32>} : memref<64x8xf32, #tpu.memory_space<vmem>>, vector<8x8xf32>,
    %553 = arith.truncf %505 : vector<8x32xf32> to vector<8x32xbf16>
    %cst_110 = arith.constant dense<0.000000e+00> : vector<8x256xf32>
    %554 = tpu.matmul %553, %5, %cst_110 {dimension_numbers = #tpu.dot_dimension_numbers<[1], [0], [0], [1], [0, 0, 1, 1], [], []>} : vector<8x32xbf16>, vector<32x256xbf16>, vector<8x256xf32> -> vector<8x256xf32>
    %555 = vector.broadcast %8 : vector<1x256xf32> to vector<8x256xf32>
    %556 = arith.addf %554, %555 : vector<8x256xf32>
    %557 = arith.truncf %482 : vector<8x64xf32> to vector<8x64xbf16>
    %cst_111 = arith.constant dense<0.000000e+00> : vector<8x256xf32>
    %558 = tpu.matmul %557, %2, %cst_111 {dimension_numbers = #tpu.dot_dimension_numbers<[1], [0], [0], [1], [0, 0, 1, 1], [], []>} : vector<8x64xbf16>, vector<64x256xbf16>, vector<8x256xf32> -> vector<8x256xf32>
    %559 = arith.addf %556, %558 : vector<8x256xf32>
    %560 = vector.extract_strided_slice %559 {offsets = [0, 0], sizes = [8, 192], strides = [1, 1]} : vector<8x256xf32> to vector<8x192xf32>
    %561 = arith.negf %560 : vector<8x192xf32>
    %562 = math.exp %561 : vector<8x192xf32>
    %cst_112 = arith.constant 1.000000e+00 : f32
    %563 = vector.broadcast %cst_112 : f32 to vector<8x192xf32>
    %564 = arith.addf %563, %562 : vector<8x192xf32>
    %565 = arith.divf %563, %564 : vector<8x192xf32>
    %566 = vector.extract_strided_slice %559 {offsets = [0, 192], sizes = [8, 64], strides = [1, 1]} : vector<8x256xf32> to vector<8x64xf32>
    %567 = math.tanh %566 : vector<8x64xf32>
    %568 = vector.extract_strided_slice %565 {offsets = [0, 0], sizes = [8, 64], strides = [1, 1]} : vector<8x192xf32> to vector<8x64xf32>
    %569 = vector.extract_strided_slice %565 {offsets = [0, 64], sizes = [8, 64], strides = [1, 1]} : vector<8x192xf32> to vector<8x64xf32>
    %570 = vector.extract_strided_slice %565 {offsets = [0, 128], sizes = [8, 64], strides = [1, 1]} : vector<8x192xf32> to vector<8x64xf32>
    %571 = arith.mulf %569, %480 : vector<8x64xf32>
    %572 = arith.mulf %568, %567 : vector<8x64xf32>
    %573 = arith.addf %571, %572 : vector<8x64xf32>
    %574 = math.tanh %573 : vector<8x64xf32>
    %575 = arith.mulf %570, %574 : vector<8x64xf32>
    %576 = arith.truncf %524 : vector<8x32xf32> to vector<8x32xbf16>
    %cst_113 = arith.constant dense<0.000000e+00> : vector<8x128xf32>
    %577 = tpu.matmul %576, %4, %cst_113 {dimension_numbers = #tpu.dot_dimension_numbers<[1], [0], [0], [1], [0, 0, 1, 1], [], []>} : vector<8x32xbf16>, vector<32x128xbf16>, vector<8x128xf32> -> vector<8x128xf32>
    %578 = vector.broadcast %7 : vector<1x128xf32> to vector<8x128xf32>
    %579 = arith.addf %577, %578 : vector<8x128xf32>
    %580 = arith.truncf %505 : vector<8x32xf32> to vector<8x32xbf16>
    %cst_114 = arith.constant dense<0.000000e+00> : vector<8x128xf32>
    %581 = tpu.matmul %580, %1, %cst_114 {dimension_numbers = #tpu.dot_dimension_numbers<[1], [0], [0], [1], [0, 0, 1, 1], [], []>} : vector<8x32xbf16>, vector<32x128xbf16>, vector<8x128xf32> -> vector<8x128xf32>
    %582 = arith.addf %579, %581 : vector<8x128xf32>
    %583 = vector.extract_strided_slice %582 {offsets = [0, 0], sizes = [8, 96], strides = [1, 1]} : vector<8x128xf32> to vector<8x96xf32>
    %584 = arith.negf %583 : vector<8x96xf32>
    %585 = math.exp %584 : vector<8x96xf32>
    %cst_115 = arith.constant 1.000000e+00 : f32
    %586 = vector.broadcast %cst_115 : f32 to vector<8x96xf32>
    %587 = arith.addf %586, %585 : vector<8x96xf32>
    %588 = arith.divf %586, %587 : vector<8x96xf32>
    %589 = vector.extract_strided_slice %582 {offsets = [0, 96], sizes = [8, 32], strides = [1, 1]} : vector<8x128xf32> to vector<8x32xf32>
    %590 = math.tanh %589 : vector<8x32xf32>
    %591 = vector.extract_strided_slice %588 {offsets = [0, 0], sizes = [8, 32], strides = [1, 1]} : vector<8x96xf32> to vector<8x32xf32>
    %592 = vector.extract_strided_slice %588 {offsets = [0, 32], sizes = [8, 32], strides = [1, 1]} : vector<8x96xf32> to vector<8x32xf32>
    %593 = vector.extract_strided_slice %588 {offsets = [0, 64], sizes = [8, 32], strides = [1, 1]} : vector<8x96xf32> to vector<8x32xf32>
    %594 = arith.mulf %592, %503 : vector<8x32xf32>
    %595 = arith.mulf %591, %590 : vector<8x32xf32>
    %596 = arith.addf %594, %595 : vector<8x32xf32>
    %597 = math.tanh %596 : vector<8x32xf32>
    %598 = arith.mulf %593, %597 : vector<8x32xf32>
    %599 = arith.truncf %524 : vector<8x32xf32> to vector<8x32xbf16>
    %cst_116 = arith.constant dense<0.000000e+00> : vector<8x128xf32>
    %600 = tpu.matmul %599, %0, %cst_116 {dimension_numbers = #tpu.dot_dimension_numbers<[1], [0], [0], [1], [0, 0, 1, 1], [], []>} : vector<8x32xbf16>, vector<32x128xbf16>, vector<8x128xf32> -> vector<8x128xf32>
    %601 = arith.addf %18, %600 : vector<8x128xf32>
    %602 = vector.extract_strided_slice %601 {offsets = [0, 0], sizes = [8, 96], strides = [1, 1]} : vector<8x128xf32> to vector<8x96xf32>
    %603 = arith.negf %602 : vector<8x96xf32>
    %604 = math.exp %603 : vector<8x96xf32>
    %cst_117 = arith.constant 1.000000e+00 : f32
    %605 = vector.broadcast %cst_117 : f32 to vector<8x96xf32>
    %606 = arith.addf %605, %604 : vector<8x96xf32>
    %607 = arith.divf %605, %606 : vector<8x96xf32>
    %608 = vector.extract_strided_slice %601 {offsets = [0, 96], sizes = [8, 32], strides = [1, 1]} : vector<8x128xf32> to vector<8x32xf32>
    %609 = math.tanh %608 : vector<8x32xf32>
    %610 = vector.extract_strided_slice %607 {offsets = [0, 0], sizes = [8, 32], strides = [1, 1]} : vector<8x96xf32> to vector<8x32xf32>
    %611 = vector.extract_strided_slice %607 {offsets = [0, 32], sizes = [8, 32], strides = [1, 1]} : vector<8x96xf32> to vector<8x32xf32>
    %612 = vector.extract_strided_slice %607 {offsets = [0, 64], sizes = [8, 32], strides = [1, 1]} : vector<8x96xf32> to vector<8x32xf32>
    %613 = arith.mulf %611, %522 : vector<8x32xf32>
    %614 = arith.mulf %610, %609 : vector<8x32xf32>
    %615 = arith.addf %613, %614 : vector<8x32xf32>
    %616 = math.tanh %615 : vector<8x32xf32>
    %617 = arith.mulf %612, %616 : vector<8x32xf32>
    %618 = arith.truncf %575 : vector<8x64xf32> to vector<8x64xbf16>
    %cst_118 = arith.constant dense<0.000000e+00> : vector<8x256xf32>
    %619 = tpu.matmul %618, %6, %cst_118 {dimension_numbers = #tpu.dot_dimension_numbers<[1], [0], [0], [1], [0, 0, 1, 1], [], []>} : vector<8x64xbf16>, vector<64x256xbf16>, vector<8x256xf32> -> vector<8x256xf32>
    %620 = vector.broadcast %9 : vector<1x256xf32> to vector<8x256xf32>
    %621 = arith.addf %619, %620 : vector<8x256xf32>
    %622 = arith.truncf %547 : vector<8x64xf32> to vector<8x64xbf16>
    %cst_119 = arith.constant dense<0.000000e+00> : vector<8x256xf32>
    %623 = tpu.matmul %622, %3, %cst_119 {dimension_numbers = #tpu.dot_dimension_numbers<[1], [0], [0], [1], [0, 0, 1, 1], [], []>} : vector<8x64xbf16>, vector<64x256xbf16>, vector<8x256xf32> -> vector<8x256xf32>
    %624 = arith.addf %621, %623 : vector<8x256xf32>
    %625 = vector.extract_strided_slice %624 {offsets = [0, 0], sizes = [8, 192], strides = [1, 1]} : vector<8x256xf32> to vector<8x192xf32>
    %626 = arith.negf %625 : vector<8x192xf32>
    %627 = math.exp %626 : vector<8x192xf32>
    %cst_120 = arith.constant 1.000000e+00 : f32
    %628 = vector.broadcast %cst_120 : f32 to vector<8x192xf32>
    %629 = arith.addf %628, %627 : vector<8x192xf32>
    %630 = arith.divf %628, %629 : vector<8x192xf32>
    %631 = vector.extract_strided_slice %624 {offsets = [0, 192], sizes = [8, 64], strides = [1, 1]} : vector<8x256xf32> to vector<8x64xf32>
    %632 = math.tanh %631 : vector<8x64xf32>
    %633 = vector.extract_strided_slice %630 {offsets = [0, 0], sizes = [8, 64], strides = [1, 1]} : vector<8x192xf32> to vector<8x64xf32>
    %634 = vector.extract_strided_slice %630 {offsets = [0, 64], sizes = [8, 64], strides = [1, 1]} : vector<8x192xf32> to vector<8x64xf32>
    %635 = vector.extract_strided_slice %630 {offsets = [0, 128], sizes = [8, 64], strides = [1, 1]} : vector<8x192xf32> to vector<8x64xf32>
    %636 = arith.mulf %634, %545 : vector<8x64xf32>
    %637 = arith.mulf %633, %632 : vector<8x64xf32>
    %638 = arith.addf %636, %637 : vector<8x64xf32>
    %639 = math.tanh %638 : vector<8x64xf32>
    %640 = arith.mulf %635, %639 : vector<8x64xf32>
    %641 = arith.truncf %640 : vector<8x64xf32> to vector<8x64xbf16>
    %cst_121 = arith.constant dense<0.000000e+00> : vector<8x8xf32>
    %642 = tpu.matmul %641, %10, %cst_121 {dimension_numbers = #tpu.dot_dimension_numbers<[1], [0], [0], [1], [0, 0, 1, 1], [], []>} : vector<8x64xbf16>, vector<64x8xbf16>, vector<8x8xf32> -> vector<8x8xf32>
    %643 = vector.broadcast %11 : vector<1x8xf32> to vector<8x8xf32>
    %644 = arith.addf %642, %643 : vector<8x8xf32>
    %c40 = arith.constant 40 : index
    %c0_122 = arith.constant 0 : index
    %645 = vector.load %arg15[%c40, %c0_122] : memref<64x8xf32, #tpu.memory_space<vmem>>, vector<8x8xf32>
    tpu.vector_store %arg15[%c40, %c0_122], %644 {strides = array<i32>} : memref<64x8xf32, #tpu.memory_space<vmem>>, vector<8x8xf32>,
    %646 = arith.truncf %598 : vector<8x32xf32> to vector<8x32xbf16>
    %cst_123 = arith.constant dense<0.000000e+00> : vector<8x256xf32>
    %647 = tpu.matmul %646, %5, %cst_123 {dimension_numbers = #tpu.dot_dimension_numbers<[1], [0], [0], [1], [0, 0, 1, 1], [], []>} : vector<8x32xbf16>, vector<32x256xbf16>, vector<8x256xf32> -> vector<8x256xf32>
    %648 = vector.broadcast %8 : vector<1x256xf32> to vector<8x256xf32>
    %649 = arith.addf %647, %648 : vector<8x256xf32>
    %650 = arith.truncf %575 : vector<8x64xf32> to vector<8x64xbf16>
    %cst_124 = arith.constant dense<0.000000e+00> : vector<8x256xf32>
    %651 = tpu.matmul %650, %2, %cst_124 {dimension_numbers = #tpu.dot_dimension_numbers<[1], [0], [0], [1], [0, 0, 1, 1], [], []>} : vector<8x64xbf16>, vector<64x256xbf16>, vector<8x256xf32> -> vector<8x256xf32>
    %652 = arith.addf %649, %651 : vector<8x256xf32>
    %653 = vector.extract_strided_slice %652 {offsets = [0, 0], sizes = [8, 192], strides = [1, 1]} : vector<8x256xf32> to vector<8x192xf32>
    %654 = arith.negf %653 : vector<8x192xf32>
    %655 = math.exp %654 : vector<8x192xf32>
    %cst_125 = arith.constant 1.000000e+00 : f32
    %656 = vector.broadcast %cst_125 : f32 to vector<8x192xf32>
    %657 = arith.addf %656, %655 : vector<8x192xf32>
    %658 = arith.divf %656, %657 : vector<8x192xf32>
    %659 = vector.extract_strided_slice %652 {offsets = [0, 192], sizes = [8, 64], strides = [1, 1]} : vector<8x256xf32> to vector<8x64xf32>
    %660 = math.tanh %659 : vector<8x64xf32>
    %661 = vector.extract_strided_slice %658 {offsets = [0, 0], sizes = [8, 64], strides = [1, 1]} : vector<8x192xf32> to vector<8x64xf32>
    %662 = vector.extract_strided_slice %658 {offsets = [0, 64], sizes = [8, 64], strides = [1, 1]} : vector<8x192xf32> to vector<8x64xf32>
    %663 = vector.extract_strided_slice %658 {offsets = [0, 128], sizes = [8, 64], strides = [1, 1]} : vector<8x192xf32> to vector<8x64xf32>
    %664 = arith.mulf %662, %573 : vector<8x64xf32>
    %665 = arith.mulf %661, %660 : vector<8x64xf32>
    %666 = arith.addf %664, %665 : vector<8x64xf32>
    %667 = math.tanh %666 : vector<8x64xf32>
    %668 = arith.mulf %663, %667 : vector<8x64xf32>
    %669 = arith.truncf %617 : vector<8x32xf32> to vector<8x32xbf16>
    %cst_126 = arith.constant dense<0.000000e+00> : vector<8x128xf32>
    %670 = tpu.matmul %669, %4, %cst_126 {dimension_numbers = #tpu.dot_dimension_numbers<[1], [0], [0], [1], [0, 0, 1, 1], [], []>} : vector<8x32xbf16>, vector<32x128xbf16>, vector<8x128xf32> -> vector<8x128xf32>
    %671 = vector.broadcast %7 : vector<1x128xf32> to vector<8x128xf32>
    %672 = arith.addf %670, %671 : vector<8x128xf32>
    %673 = arith.truncf %598 : vector<8x32xf32> to vector<8x32xbf16>
    %cst_127 = arith.constant dense<0.000000e+00> : vector<8x128xf32>
    %674 = tpu.matmul %673, %1, %cst_127 {dimension_numbers = #tpu.dot_dimension_numbers<[1], [0], [0], [1], [0, 0, 1, 1], [], []>} : vector<8x32xbf16>, vector<32x128xbf16>, vector<8x128xf32> -> vector<8x128xf32>
    %675 = arith.addf %672, %674 : vector<8x128xf32>
    %676 = vector.extract_strided_slice %675 {offsets = [0, 0], sizes = [8, 96], strides = [1, 1]} : vector<8x128xf32> to vector<8x96xf32>
    %677 = arith.negf %676 : vector<8x96xf32>
    %678 = math.exp %677 : vector<8x96xf32>
    %cst_128 = arith.constant 1.000000e+00 : f32
    %679 = vector.broadcast %cst_128 : f32 to vector<8x96xf32>
    %680 = arith.addf %679, %678 : vector<8x96xf32>
    %681 = arith.divf %679, %680 : vector<8x96xf32>
    %682 = vector.extract_strided_slice %675 {offsets = [0, 96], sizes = [8, 32], strides = [1, 1]} : vector<8x128xf32> to vector<8x32xf32>
    %683 = math.tanh %682 : vector<8x32xf32>
    %684 = vector.extract_strided_slice %681 {offsets = [0, 0], sizes = [8, 32], strides = [1, 1]} : vector<8x96xf32> to vector<8x32xf32>
    %685 = vector.extract_strided_slice %681 {offsets = [0, 32], sizes = [8, 32], strides = [1, 1]} : vector<8x96xf32> to vector<8x32xf32>
    %686 = vector.extract_strided_slice %681 {offsets = [0, 64], sizes = [8, 32], strides = [1, 1]} : vector<8x96xf32> to vector<8x32xf32>
    %687 = arith.mulf %685, %596 : vector<8x32xf32>
    %688 = arith.mulf %684, %683 : vector<8x32xf32>
    %689 = arith.addf %687, %688 : vector<8x32xf32>
    %690 = math.tanh %689 : vector<8x32xf32>
    %691 = arith.mulf %686, %690 : vector<8x32xf32>
    %692 = arith.truncf %668 : vector<8x64xf32> to vector<8x64xbf16>
    %cst_129 = arith.constant dense<0.000000e+00> : vector<8x256xf32>
    %693 = tpu.matmul %692, %6, %cst_129 {dimension_numbers = #tpu.dot_dimension_numbers<[1], [0], [0], [1], [0, 0, 1, 1], [], []>} : vector<8x64xbf16>, vector<64x256xbf16>, vector<8x256xf32> -> vector<8x256xf32>
    %694 = vector.broadcast %9 : vector<1x256xf32> to vector<8x256xf32>
    %695 = arith.addf %693, %694 : vector<8x256xf32>
    %696 = arith.truncf %640 : vector<8x64xf32> to vector<8x64xbf16>
    %cst_130 = arith.constant dense<0.000000e+00> : vector<8x256xf32>
    %697 = tpu.matmul %696, %3, %cst_130 {dimension_numbers = #tpu.dot_dimension_numbers<[1], [0], [0], [1], [0, 0, 1, 1], [], []>} : vector<8x64xbf16>, vector<64x256xbf16>, vector<8x256xf32> -> vector<8x256xf32>
    %698 = arith.addf %695, %697 : vector<8x256xf32>
    %699 = vector.extract_strided_slice %698 {offsets = [0, 0], sizes = [8, 192], strides = [1, 1]} : vector<8x256xf32> to vector<8x192xf32>
    %700 = arith.negf %699 : vector<8x192xf32>
    %701 = math.exp %700 : vector<8x192xf32>
    %cst_131 = arith.constant 1.000000e+00 : f32
    %702 = vector.broadcast %cst_131 : f32 to vector<8x192xf32>
    %703 = arith.addf %702, %701 : vector<8x192xf32>
    %704 = arith.divf %702, %703 : vector<8x192xf32>
    %705 = vector.extract_strided_slice %698 {offsets = [0, 192], sizes = [8, 64], strides = [1, 1]} : vector<8x256xf32> to vector<8x64xf32>
    %706 = math.tanh %705 : vector<8x64xf32>
    %707 = vector.extract_strided_slice %704 {offsets = [0, 0], sizes = [8, 64], strides = [1, 1]} : vector<8x192xf32> to vector<8x64xf32>
    %708 = vector.extract_strided_slice %704 {offsets = [0, 64], sizes = [8, 64], strides = [1, 1]} : vector<8x192xf32> to vector<8x64xf32>
    %709 = vector.extract_strided_slice %704 {offsets = [0, 128], sizes = [8, 64], strides = [1, 1]} : vector<8x192xf32> to vector<8x64xf32>
    %710 = arith.mulf %708, %638 : vector<8x64xf32>
    %711 = arith.mulf %707, %706 : vector<8x64xf32>
    %712 = arith.addf %710, %711 : vector<8x64xf32>
    %713 = math.tanh %712 : vector<8x64xf32>
    %714 = arith.mulf %709, %713 : vector<8x64xf32>
    %715 = arith.truncf %714 : vector<8x64xf32> to vector<8x64xbf16>
    %cst_132 = arith.constant dense<0.000000e+00> : vector<8x8xf32>
    %716 = tpu.matmul %715, %10, %cst_132 {dimension_numbers = #tpu.dot_dimension_numbers<[1], [0], [0], [1], [0, 0, 1, 1], [], []>} : vector<8x64xbf16>, vector<64x8xbf16>, vector<8x8xf32> -> vector<8x8xf32>
    %717 = vector.broadcast %11 : vector<1x8xf32> to vector<8x8xf32>
    %718 = arith.addf %716, %717 : vector<8x8xf32>
    %c48 = arith.constant 48 : index
    %c0_133 = arith.constant 0 : index
    %719 = vector.load %arg15[%c48, %c0_133] : memref<64x8xf32, #tpu.memory_space<vmem>>, vector<8x8xf32>
    tpu.vector_store %arg15[%c48, %c0_133], %718 {strides = array<i32>} : memref<64x8xf32, #tpu.memory_space<vmem>>, vector<8x8xf32>,
    %720 = arith.truncf %691 : vector<8x32xf32> to vector<8x32xbf16>
    %cst_134 = arith.constant dense<0.000000e+00> : vector<8x256xf32>
    %721 = tpu.matmul %720, %5, %cst_134 {dimension_numbers = #tpu.dot_dimension_numbers<[1], [0], [0], [1], [0, 0, 1, 1], [], []>} : vector<8x32xbf16>, vector<32x256xbf16>, vector<8x256xf32> -> vector<8x256xf32>
    %722 = vector.broadcast %8 : vector<1x256xf32> to vector<8x256xf32>
    %723 = arith.addf %721, %722 : vector<8x256xf32>
    %724 = arith.truncf %668 : vector<8x64xf32> to vector<8x64xbf16>
    %cst_135 = arith.constant dense<0.000000e+00> : vector<8x256xf32>
    %725 = tpu.matmul %724, %2, %cst_135 {dimension_numbers = #tpu.dot_dimension_numbers<[1], [0], [0], [1], [0, 0, 1, 1], [], []>} : vector<8x64xbf16>, vector<64x256xbf16>, vector<8x256xf32> -> vector<8x256xf32>
    %726 = arith.addf %723, %725 : vector<8x256xf32>
    %727 = vector.extract_strided_slice %726 {offsets = [0, 0], sizes = [8, 192], strides = [1, 1]} : vector<8x256xf32> to vector<8x192xf32>
    %728 = arith.negf %727 : vector<8x192xf32>
    %729 = math.exp %728 : vector<8x192xf32>
    %cst_136 = arith.constant 1.000000e+00 : f32
    %730 = vector.broadcast %cst_136 : f32 to vector<8x192xf32>
    %731 = arith.addf %730, %729 : vector<8x192xf32>
    %732 = arith.divf %730, %731 : vector<8x192xf32>
    %733 = vector.extract_strided_slice %726 {offsets = [0, 192], sizes = [8, 64], strides = [1, 1]} : vector<8x256xf32> to vector<8x64xf32>
    %734 = math.tanh %733 : vector<8x64xf32>
    %735 = vector.extract_strided_slice %732 {offsets = [0, 0], sizes = [8, 64], strides = [1, 1]} : vector<8x192xf32> to vector<8x64xf32>
    %736 = vector.extract_strided_slice %732 {offsets = [0, 64], sizes = [8, 64], strides = [1, 1]} : vector<8x192xf32> to vector<8x64xf32>
    %737 = vector.extract_strided_slice %732 {offsets = [0, 128], sizes = [8, 64], strides = [1, 1]} : vector<8x192xf32> to vector<8x64xf32>
    %738 = arith.mulf %736, %666 : vector<8x64xf32>
    %739 = arith.mulf %735, %734 : vector<8x64xf32>
    %740 = arith.addf %738, %739 : vector<8x64xf32>
    %741 = math.tanh %740 : vector<8x64xf32>
    %742 = arith.mulf %737, %741 : vector<8x64xf32>
    %743 = arith.truncf %742 : vector<8x64xf32> to vector<8x64xbf16>
    %cst_137 = arith.constant dense<0.000000e+00> : vector<8x256xf32>
    %744 = tpu.matmul %743, %6, %cst_137 {dimension_numbers = #tpu.dot_dimension_numbers<[1], [0], [0], [1], [0, 0, 1, 1], [], []>} : vector<8x64xbf16>, vector<64x256xbf16>, vector<8x256xf32> -> vector<8x256xf32>
    %745 = vector.broadcast %9 : vector<1x256xf32> to vector<8x256xf32>
    %746 = arith.addf %744, %745 : vector<8x256xf32>
    %747 = arith.truncf %714 : vector<8x64xf32> to vector<8x64xbf16>
    %cst_138 = arith.constant dense<0.000000e+00> : vector<8x256xf32>
    %748 = tpu.matmul %747, %3, %cst_138 {dimension_numbers = #tpu.dot_dimension_numbers<[1], [0], [0], [1], [0, 0, 1, 1], [], []>} : vector<8x64xbf16>, vector<64x256xbf16>, vector<8x256xf32> -> vector<8x256xf32>
    %749 = arith.addf %746, %748 : vector<8x256xf32>
    %750 = vector.extract_strided_slice %749 {offsets = [0, 0], sizes = [8, 192], strides = [1, 1]} : vector<8x256xf32> to vector<8x192xf32>
    %751 = arith.negf %750 : vector<8x192xf32>
    %752 = math.exp %751 : vector<8x192xf32>
    %cst_139 = arith.constant 1.000000e+00 : f32
    %753 = vector.broadcast %cst_139 : f32 to vector<8x192xf32>
    %754 = arith.addf %753, %752 : vector<8x192xf32>
    %755 = arith.divf %753, %754 : vector<8x192xf32>
    %756 = vector.extract_strided_slice %749 {offsets = [0, 192], sizes = [8, 64], strides = [1, 1]} : vector<8x256xf32> to vector<8x64xf32>
    %757 = math.tanh %756 : vector<8x64xf32>
    %758 = vector.extract_strided_slice %755 {offsets = [0, 0], sizes = [8, 64], strides = [1, 1]} : vector<8x192xf32> to vector<8x64xf32>
    %759 = vector.extract_strided_slice %755 {offsets = [0, 64], sizes = [8, 64], strides = [1, 1]} : vector<8x192xf32> to vector<8x64xf32>
    %760 = vector.extract_strided_slice %755 {offsets = [0, 128], sizes = [8, 64], strides = [1, 1]} : vector<8x192xf32> to vector<8x64xf32>
    %761 = arith.mulf %759, %712 : vector<8x64xf32>
    %762 = arith.mulf %758, %757 : vector<8x64xf32>
    %763 = arith.addf %761, %762 : vector<8x64xf32>
    %764 = math.tanh %763 : vector<8x64xf32>
    %765 = arith.mulf %760, %764 : vector<8x64xf32>
    %766 = arith.truncf %765 : vector<8x64xf32> to vector<8x64xbf16>
    %cst_140 = arith.constant dense<0.000000e+00> : vector<8x8xf32>
    %767 = tpu.matmul %766, %10, %cst_140 {dimension_numbers = #tpu.dot_dimension_numbers<[1], [0], [0], [1], [0, 0, 1, 1], [], []>} : vector<8x64xbf16>, vector<64x8xbf16>, vector<8x8xf32> -> vector<8x8xf32>
    %768 = vector.broadcast %11 : vector<1x8xf32> to vector<8x8xf32>
    %769 = arith.addf %767, %768 : vector<8x8xf32>
    %c56 = arith.constant 56 : index
    %c0_141 = arith.constant 0 : index
    %770 = vector.load %arg15[%c56, %c0_141] : memref<64x8xf32, #tpu.memory_space<vmem>>, vector<8x8xf32>
    tpu.vector_store %arg15[%c56, %c0_141], %769 {strides = array<i32>} : memref<64x8xf32, #tpu.memory_space<vmem>>, vector<8x8xf32>,
    return
  }
}

</mosaic_0001>

<bundles_post_ra>
// kernel: decoder_forward.1
= control target key start
LH: loop header
LB: loop body
LE: loop exit
PB: predicated region body
PF: predicated region fallthrough
CT: control target
= control target key end

     0   :  { %20 = vsyncpa [#allocation3], 0  ;;  %s7094_s0 = inlined_call_operand.vmem [shape: f32[8,32], index: 0, kind: input, shape index: {}]   ;;  %s7095_s1 = inlined_call_operand.hbm [shape: bf16[32,128], index: 1, kind: input, shape index: {}]   ;;  %s7096_s2 = inlined_call_operand.hbm [shape: bf16[32,128], index: 2, kind: input, shape index: {}]   ;;  %s7097_s3 = inlined_call_operand.vmem [shape: f32[1,128], index: 3, kind: input, shape index: {}]   ;;  %s7098_s4 = inlined_call_operand.hbm [shape: bf16[32,128], index: 4, kind: input, shape index: {}]   ;;  %s7099_s5 = inlined_call_operand.hbm [shape: bf16[32,128], index: 5, kind: input, shape index: {}]   ;;  %s7100_s6 = inlined_call_operand.vmem [shape: f32[1,128], index: 6, kind: input, shape index: {}]   ;;  %s7101_s7 = inlined_call_operand.hbm [shape: bf16[32,256], index: 7, kind: input, shape index: {}]   ;;  %s7102_s8 = inlined_call_operand.vmem [shape: bf16[64,256], index: 8, kind: input, shape index: {}]   ;;  %s7103_s9 = inlined_call_operand.vmem [shape: f32[1,256], index: 9, kind: input, shape index: {}]   ;;  %s7104_s10 = inlined_call_operand.hbm [shape: bf16[64,256], index: 10, kind: input, shape index: {}]   ;;  %s7105_s11 = inlined_call_operand.hbm [shape: bf16[64,256], index: 11, kind: input, shape index: {}]   ;;  %s7106_s12 = inlined_call_operand.vmem [shape: f32[1,256], index: 12, kind: input, shape index: {}]   ;;  %s7107_s13 = inlined_call_operand.vmem [shape: bf16[64,8], index: 13, kind: input, shape index: {}]   ;;  %s7108_s14 = inlined_call_operand.vmem [shape: f32[1,8], index: 14, kind: input, shape index: {}]   ;;  %s7109_s15 = inlined_call_operand.vmem [shape: f32[64,8], index: 15, kind: output, shape index: {}]  }
   0x1   :  { %21 = vsyncpa [#allocation5], 0 }
   0x2   :  { %22 = vsyncpa [#allocation8], 0 }
   0x3   :  { %23 = vsyncpa [#allocation11], 0  ;;  %s5531_s18 = smov [#allocation4]   ;;  %s5532_s20 = smov [#allocation7]  }
   0x4   :  { %s43_s19 = sshll.u32 %s5531_s18, 4  ;;  %s69_s21 = sshll.u32 %s5532_s20, 4  ;;  %s44_s19 = int_to_ptr.vmem [resolvable:$true] %s43_s19  ;;  %s5626_s21 = int_to_ptr.vmem [resolvable:$true] %s69_s21 }
   0x5   :  { %s5369_s24 = scalar_lea.hbm %s7096_s2, 256 }
   0x6   :  { %p5370_p0 = scmp.ne.s32.totalorder %s7096_s2, %s5369_s24  ;;  %p5373_p1 = scmp.lt.u32.totalorder %s5369_s24, %s7096_s2 }
   0x8   :  { %p5375_p2 = pnand %p5373_p1, %p5370_p0 }
   0xa   :  { %5378 = shalt.err (!%p5375_p2)
}
   0xb   :  { %s5379_s29 = scalar_lea.vmem %s44_s19, 256  ;;  %p5384_p4 = scmp.lt.s32.totalorder %s44_s19, %s44_s19 }
   0xc   :  { %p5380_p3 = scmp.ne.s32.totalorder %s44_s19, %s5379_s29  ;;  %p5385_p5 = scmp.lt.s32.totalorder %s5379_s29, %s5379_s29 }
   0xe   :  { %p5386_p6 = por %p5385_p5, %p5384_p4 }
  0x10   :  { %p5387_p7 = pnand %p5386_p6, %p5380_p3 }
  0x12   :  { %5390 = shalt.err (!%p5387_p7)
}
  0x13   :  { %s5533_s30 = smov 64   ;;  %s5534_s16 = smov 4  }
  0x14   :  { %49 = dma.hbm_to_vmem [thread:$0]  %s7096_s2, 256, %s44_s19, [#allocation5], %s5533_s30, %s5533_s30, %s5534_s16  }
  0x15   :  { %s5391_s23 = scalar_lea.hbm %s7099_s5, 256 }
  0x16   :  { %p5392_p8 = scmp.ne.s32.totalorder %s7099_s5, %s5391_s23  ;;  %p5395_p9 = scmp.lt.u32.totalorder %s5391_s23, %s7099_s5 }
  0x18   :  { %p5397_p10 = pnand %p5395_p9, %p5392_p8 }
  0x1a   :  { %5400 = shalt.err (!%p5397_p10)
}
  0x1b   :  { %s5401_s28 = scalar_lea.vmem %s5626_s21, 256  ;;  %p5406_p12 = scmp.lt.s32.totalorder %s5626_s21, %s5626_s21 }
  0x1c   :  { %p5402_p11 = scmp.ne.s32.totalorder %s5626_s21, %s5401_s28  ;;  %p5407_p13 = scmp.lt.s32.totalorder %s5401_s28, %s5401_s28 }
  0x1e   :  { %p5408_p0 = por %p5407_p13, %p5406_p12 }
  0x20   :  { %p5409_p1 = pnand %p5408_p0, %p5402_p11 }
  0x22   :  { %5412 = shalt.err (!%p5409_p1)
}
  0x23   :  { %75 = dma.hbm_to_vmem [thread:$0]  %s7099_s5, 256, %s5626_s21, [#allocation8], %s5533_s30, %s5533_s30, %s5534_s16  }
  0x24   :  { %s5535_s29 = smov [#allocation10]   ;;  %s5536_s18 = smov [#allocation2]  }
  0x25   :  { %s99_s17 = sshll.u32 %s5535_s29, 4  ;;  %s31_s20 = sshll.u32 %s5536_s18, 4  ;;  %s100_s17 = int_to_ptr.vmem [resolvable:$true] %s99_s17  ;;  %s5663_s20 = int_to_ptr.vmem [resolvable:$true] %s31_s20 }
  0x26   :  { %s5413_s24 = scalar_lea.hbm %s7104_s10, 1024 }
  0x27   :  { %p5414_p2 = scmp.ne.s32.totalorder %s7104_s10, %s5413_s24  ;;  %p5417_p3 = scmp.lt.u32.totalorder %s5413_s24, %s7104_s10 }
  0x29   :  { %p5419_p4 = pnand %p5417_p3, %p5414_p2 }
  0x2b   :  { %5422 = shalt.err (!%p5419_p4)
}
  0x2c   :  { %s5423_s5 = scalar_lea.vmem %s100_s17, 1024  ;;  %p5428_p6 = scmp.lt.s32.totalorder %s100_s17, %s100_s17 }
  0x2d   :  { %p5424_p5 = scmp.ne.s32.totalorder %s100_s17, %s5423_s5  ;;  %p5429_p7 = scmp.lt.s32.totalorder %s5423_s5, %s5423_s5 }
  0x2f   :  { %p5430_p8 = por %p5429_p7, %p5428_p6 }
  0x31   :  { %p5431_p9 = pnand %p5430_p8, %p5424_p5 }
  0x33   :  { %5434 = shalt.err (!%p5431_p9)
}
  0x34   :  { %s5537_s21 = smov 128   ;;  %s5538_s2 = smov 8  }
  0x35   :  { %105 = dma.hbm_to_vmem [thread:$0]  %s7104_s10, 1024, %s100_s17, [#allocation11], %s5537_s21, %s5537_s21, %s5538_s2  }
  0x36   :  { %s5435_s23 = scalar_lea.hbm %s7095_s1, 256 }
  0x37   :  { %p5436_p10 = scmp.ne.s32.totalorder %s7095_s1, %s5435_s23  ;;  %p5439_p11 = scmp.lt.u32.totalorder %s5435_s23, %s7095_s1 }
  0x39   :  { %p5441_p12 = pnand %p5439_p11, %p5436_p10 }
  0x3b   :  { %5444 = shalt.err (!%p5441_p12)
}
  0x3c   :  { %s5445_s28 = scalar_lea.vmem %s5663_s20, 256  ;;  %p5450_p0 = scmp.lt.s32.totalorder %s5663_s20, %s5663_s20 }
  0x3d   :  { %p5446_p13 = scmp.ne.s32.totalorder %s5663_s20, %s5445_s28  ;;  %p5451_p1 = scmp.lt.s32.totalorder %s5445_s28, %s5445_s28 }
  0x3f   :  { %p5452_p2 = por %p5451_p1, %p5450_p0 }
  0x41   :  { %p5453_p3 = pnand %p5452_p2, %p5446_p13 }
  0x43   :  { %5456 = shalt.err (!%p5453_p3)
}
  0x44   :  { %37 = dma.hbm_to_vmem [thread:$0]  %s7095_s1, 256, %s5663_s20, [#allocation3], %s5533_s30, %s5533_s30, %s5534_s16  }
  0x45   :  { %s5539_s5 = smov [#allocation6]   ;;  %s5540_s29 = smov [#allocation9]  }
  0x46   :  { %s57_s19 = sshll.u32 %s5539_s5, 4  ;;  %s83_s18 = sshll.u32 %s5540_s29, 4  ;;  %s58_s19 = int_to_ptr.vmem [resolvable:$true] %s57_s19  ;;  %s5700_s18 = int_to_ptr.vmem [resolvable:$true] %s83_s18 }
  0x47   :  { %s5457_s24 = scalar_lea.hbm %s7098_s4, 256 }
  0x48   :  { %p5458_p4 = scmp.ne.s32.totalorder %s7098_s4, %s5457_s24  ;;  %p5461_p5 = scmp.lt.u32.totalorder %s5457_s24, %s7098_s4 }
  0x4a   :  { %p5463_p6 = pnand %p5461_p5, %p5458_p4 }
  0x4c   :  { %5466 = shalt.err (!%p5463_p6)
}
  0x4d   :  { %s5467_s1 = scalar_lea.vmem %s58_s19, 256  ;;  %p5472_p8 = scmp.lt.s32.totalorder %s58_s19, %s58_s19 }
  0x4e   :  { %p5468_p7 = scmp.ne.s32.totalorder %s58_s19, %s5467_s1  ;;  %p5473_p9 = scmp.lt.s32.totalorder %s5467_s1, %s5467_s1 }
  0x50   :  { %p5474_p10 = por %p5473_p9, %p5472_p8 }
  0x52   :  { %p5475_p11 = pnand %p5474_p10, %p5468_p7 }
  0x54   :  { %5478 = shalt.err (!%p5475_p11)
}
  0x55   :  { %63 = dma.hbm_to_vmem [thread:$0]  %s7098_s4, 256, %s58_s19, [#allocation5], %s5533_s30, %s5533_s30, %s5534_s16  }
  0x56   :  { %s5479_s29 = scalar_lea.hbm %s7101_s7, 512 }
  0x57   :  { %p5480_p12 = scmp.ne.s32.totalorder %s7101_s7, %s5479_s29  ;;  %p5483_p13 = scmp.lt.u32.totalorder %s5479_s29, %s7101_s7 }
  0x59   :  { %p5485_p0 = pnand %p5483_p13, %p5480_p12 }
  0x5b   :  { %5488 = shalt.err (!%p5485_p0)
}
  0x5c   :  { %s5489_s26 = scalar_lea.vmem %s5700_s18, 512  ;;  %p5494_p2 = scmp.lt.s32.totalorder %s5700_s18, %s5700_s18 }
  0x5d   :  { %p5490_p1 = scmp.ne.s32.totalorder %s5700_s18, %s5489_s26  ;;  %p5495_p3 = scmp.lt.s32.totalorder %s5489_s26, %s5489_s26 }
  0x5f   :  { %p5496_p4 = por %p5495_p3, %p5494_p2 }
  0x61   :  { %p5497_p5 = pnand %p5496_p4, %p5490_p1 }
  0x63   :  { %5500 = shalt.err (!%p5497_p5)
}
  0x64   :  { %89 = dma.hbm_to_vmem [thread:$0]  %s7101_s7, 512, %s5700_s18, [#allocation8], %s5537_s21, %s5537_s21, %s5538_s2  }
  0x65   :  { %s5541_s19 = smov [#allocation12]   ;;  %s5501_s20 = scalar_lea.hbm %s7105_s11, 1024 }
  0x66   :  { %s111_s27 = sshll.u32 %s5541_s19, 4  ;;  %p5502_p6 = scmp.ne.s32.totalorder %s7105_s11, %s5501_s20  ;;  %s112_s27 = int_to_ptr.vmem [resolvable:$true] %s111_s27 }
  0x67   :  { %p5505_p7 = scmp.lt.u32.totalorder %s5501_s20, %s7105_s11 }
  0x69   :  { %p5507_p8 = pnand %p5505_p7, %p5502_p6 }
  0x6b   :  { %5510 = shalt.err (!%p5507_p8)
}
  0x6c   :  { %s5511_s22 = scalar_lea.vmem %s112_s27, 1024  ;;  %p5516_p10 = scmp.lt.s32.totalorder %s112_s27, %s112_s27 }
  0x6d   :  { %p5512_p9 = scmp.ne.s32.totalorder %s112_s27, %s5511_s22  ;;  %p5517_p11 = scmp.lt.s32.totalorder %s5511_s22, %s5511_s22 }
  0x6f   :  { %p5518_p12 = por %p5517_p11, %p5516_p10 }
  0x71   :  { %p5519_p13 = pnand %p5518_p12, %p5512_p9 }
  0x73   :  { %5522 = shalt.err (!%p5519_p13)
}
  0x74   :  { %117 = dma.hbm_to_vmem [thread:$0]  %s7105_s11, 1024, %s112_s27, [#allocation11], %s5537_s21, %s5537_s21, %s5538_s2  }
  0x75   :  { %5523 = dma.done.wait [#allocation3], 256  }
  0x76   :  { %5524 = vsyncadd [#allocation3], 4294967040 }
  0x77   :  { %5525 = dma.done.wait [#allocation5], 512  }
  0x78   :  { %5526 = vsyncadd [#allocation5], 4294966784 }
  0x79   :  { %5527 = dma.done.wait [#allocation8], 768  }
  0x7a   :  { %5528 = vsyncadd [#allocation8], 4294966528 }
  0x7b   :  { %5529 = dma.done.wait [#allocation11], 2048  }
  0x7c   :  { %5530 = vsyncadd [#allocation11], 4294965248  ;;  %v7110_v0 = vmov 0.0   ;;  %vm5543_vm0 = vmmov 0   ;;  %v4918_v1 = vld [vmem:[#allocation2] sm:$0xff]   ;;  %v5758_v2 = vld [vmem:[#allocation4] sm:$0xff]  }
  0x7d   :  { %4471 = vmatprep.subr.bf16.mxu0 %v7110_v0  ;;  %4479 = vmatprep.subr.bf16.mxu1 %v7110_v0  ;;  %v4920_v3 = vld [vmem:[#allocation2 + $0x8] sm:$0xff]   ;;  %v5762_v4 = vld [vmem:[#allocation4 + $0x8] sm:$0xff]   ;;  %v198_v5 = vld [vmem:[%s7094_s0] sm:$0xff]  ;;  %vm223_vm1 = vcmask 261120   ;;  %v7112_v7 = vmov 0   ;;  %s5545_s23 = smov 32  }
  0x7e   :  { %4475 = vmatprep.mubr.msk.bf16.mxu0 %vm5543_vm0, %v7110_v0  ;;  %4483 = vmatprep.mubr.msk.bf16.mxu1 %vm5543_vm0, %v7110_v0  ;;  %v203_v6 = vpack.c.bf16 %v198_v5, %v198_v5  ;;  %v4204_v8 = vld [vmem:[%s7097_s3] ss:$0 sm:$0xff]  ;;  %v5794_v30 = vld [vmem:[#allocation6 + $0x8] sm:$0xff]   ;;  %v5801_v35 = vld [vmem:[#allocation7] sm:$0xff]   ;;  %vm673_vm2 = vcmask 523264   ;;  %vm1209_vm3 = vcmask 64512  }
  0x7f   :  { %4472 = vmatpush3.bf16.msra.mxu0 %v4918_v1  ;;  %4480 = vmatpush3.bf16.msra.mxu1 %v5758_v2  ;;  %v5791_v29 = vld [vmem:[#allocation6] sm:$0xff]   ;;  %v5806_v37 = vld [vmem:[#allocation7 + $0x8] sm:$0xff]  }
  0x80   :  { %4473 = vmatprep.subr.bf16.mxu0 %v7110_v0  ;;  %4481 = vmatprep.subr.bf16.mxu1 %v7110_v0  ;;  %v5824_v42 = vld [vmem:[%s7100_s6] ss:$0 sm:$0xff]  ;;  %v5833_v59 = vld [vmem:[#allocation9 + $0x4] ss:$8 sps:$4 sm:$0xff]   ;;  %v5837_v61 = vld [vmem:[#allocation9 + $0x14] ss:$8 sps:$4 sm:$0xff]  }
  0x81   :  { %v5835_v60 = vld [vmem:[#allocation9] ss:$8 sps:$4 sm:$0xff]   ;;  %v5841_v62 = vld [vmem:[#allocation9 + $0x10] ss:$8 sps:$4 sm:$0xff]   ;;  %v5847_v1 = vld [vmem:[%s7102_s8 + $0x4] ss:$8 sps:$4 sm:$0xff]  }
  0x83   :  { %4474 = vmatpush3.bf16.msra.mxu0 %v4920_v3  ;;  %4482 = vmatpush3.bf16.msra.mxu1 %v5762_v4 }
  0x84   :  { %4487 = vmatprep.subr.bf16.mxu0 %v7110_v0  ;;  %4503 = vmatprep.subr.bf16.mxu1 %v7110_v0 }
  0x86   :  { %4476 = vmatmul.mubr.msk.bf16.vlgmr.msra.gmra.mrb[0].mxu0 %vm223_vm1, %v203_v6  ;;  %4484 = vmatmul.mubr.bf16.vlgmr.msra.gmra.mrb[0].mxu1 %v7112_v7 }
  0x87   :  { %4491 = vmatprep.mubr.msk.bf16.mxu0 %vm5543_vm0, %v7110_v0  ;;  %4504 = vmatpush3.bf16.msra.mxu1 %v5758_v2 }
  0x88   :  { %4507 = vmatprep.mubr.msk.bf16.mxu1 %vm5543_vm0, %v7110_v0  ;;  %4505 = vmatprep.subr.bf16.mxu1 %v7110_v0 }
  0x89   :  { %4488 = vmatpush3.bf16.msra.mxu0 %v5791_v29 }
  0x8a   :  { %4489 = vmatprep.subr.bf16.mxu0 %v7110_v0 }
  0x8b   :  { %4506 = vmatpush3.bf16.msra.mxu1 %v5762_v4 }
  0x8c   :  { %592 = vmatprep.subr.bf16.mxu1 %v5833_v59 }
  0x8d   :  { %4490 = vmatpush3.bf16.msra.mxu0 %v5794_v30 }
  0x8e   :  { %4495 = vmatprep.subr.bf16.mxu0 %v7110_v0 }
 0x159   :  { %v261_v9 = vpop.f32.mrb[0].mxu0  ;;  %v316_v11 = vpop.f32.mrb[0].mxu1 }
 0x15a   :  { %v5783_v10 = vadd.f32 %v4204_v8, %v261_v9  ;;  %v4477_v12 = vpop.f32.mrb[1].mxu0  ;;  %v4485_v13 = vpop.f32.mrb[1].mxu1 }
 0x15b   :  { %v264_v14 = vpop.f32.mrb[2].mxu0  ;;  %v319_v16 = vpop.f32.mrb[2].mxu1 }
 0x15c   :  { %7117 = vst [vmem:[#allocation17_spill] sm:$0xff] %v5783_v10  ;;  %v322_v15 = vadd.f32 %v316_v11, %v5783_v10  ;;  %v4478_v17 = vpop.f32.mrb[3].mxu0  ;;  %v4486_v18 = vpop.f32.mrb[3].mxu1  ;;  %v5858_v16 = vld [vmem:[%s7102_s8] ss:$8 sps:$4 sm:$0xff]  }
 0x15d   :  { %v5863_v17 = vld [vmem:[%s7102_s8 + $0x14] ss:$8 sps:$4 sm:$0xff]  }
 0x15e   :  { %4972 = vtanh.f32 %v322_v15  ;;  %v4210_v20 = vmul.f32 -1.442695, %v322_v15 }
 0x160   :  { %4974 = vpow2.f32 %v4210_v20 }
 0x168   :  { %v4973_v19 = vpop.eup %4972 }
 0x169   :  { %332 = vrot.lane.b32.xlu0 %v4973_v19, %s5545_s23  ;;  %v5870_v19 = vld [vmem:[%s7102_s8 + $0x10] ss:$8 sps:$4 sm:$0xff]  }
 0x16a   :  { %v4975_v21 = vpop.eup %4974 }
 0x16b   :  { %v326_v22 = vadd.f32 1.0, %v4975_v21  ;;  %v5878_v21 = vld [vmem:[%s7102_s8 + $0x24] ss:$8 sps:$4 sm:$0xff]  }
 0x16d   :  { %4976 = vrcp.f32 %v326_v22 }
 0x177   :  { %v4977_v23 = vpop.eup %4976 }
 0x178   :  { %v330_v26 = vmul.f32 0.0, %v4977_v23 }
 0x1db   :  { %v333_v24 = vpop.permute.xlu0 %332 }
 0x1dc   :  { %v335_v25 = vmul.f32 %v4977_v23, %v333_v24  ;;  %v5886_v24 = vld [vmem:[%s7102_s8 + $0x20] ss:$8 sps:$4 sm:$0xff]  }
 0x1de   :  { %337 = vrot.lane.b32.xlu0 %v335_v25, %s5545_s23  ;;  %v5893_v25 = vld [vmem:[%s7102_s8 + $0x34] ss:$8 sps:$4 sm:$0xff]  }
 0x250   :  { %v338_v27 = vpop.permute.xlu0 %337 }
 0x251   :  { %v5788_v28 = vadd.f32 %v338_v27, %v330_v26  ;;  %v5899_v26 = vld [vmem:[%s7102_s8 + $0x30] ss:$8 sps:$4 sm:$0xff]  }
 0x253   :  { %4978 = vtanh.f32 %v5788_v28 }
 0x25d   :  { %v4979_v31 = vpop.eup %4978 }
 0x25e   :  { %343 = vrot.lane.b32.xlu1 %v4979_v31, %s5545_s23 }
 0x2d0   :  { %v344_v32 = vpop.permute.xlu1 %343 }
 0x2d1   :  { %v346_v33 = vmul.f32 %v4977_v23, %v344_v32 }
 0x2d3   :  { %v347_v34 = vpack.c.bf16 %v346_v33, %v346_v33  ;;  %v556_v33 = vlaneseq }
 0x2d5   :  { %355 = vrot.lane.b32.xlu1 %v347_v34, %s5533_s30  ;;  %v5907_v34 = vshrl.u32 %v556_v33, 7 }
 0x347   :  { %v356_v36 = vpop.permute.xlu1 %355 }
 0x348   :  { %4492 = vmatmul.mubr.msk.bf16.vlgmr.msra.gmra.mrb[4].mxu0 %vm223_vm1, %v356_v36  ;;  %4508 = vmatmul.mubr.msk.bf16.vlgmr.msra.gmra.mrb[4].mxu1 %vm223_vm1, %v356_v36  ;;  %v562_v36 = vsub.s32 1, %v5907_v34 }
 0x349   :  { %4496 = vmatpush3.bf16.msra.mxu0 %v5801_v35  ;;  %4499 = vmatprep.mubr.msk.bf16.mxu0 %vm5543_vm0, %v7110_v0 }
 0x34a   :  { %4497 = vmatprep.subr.bf16.mxu0 %v7110_v0  ;;  %624 = vmatprep.mubr.bf16.mxu1 %v7112_v7 }
 0x34b   :  { %593 = vmatpush1.bf16.msra.mxu1 %v5835_v60 }
 0x34c   :  { %594 = vmatprep.subr.bf16.mxu1 %v5837_v61 }
 0x34d   :  { %4498 = vmatpush3.bf16.msra.mxu0 %v5806_v37 }
 0x34e   :  { %4511 = vmatprep.subr.bf16.mxu0 %v7110_v0 }
 0x34f   :  { %595 = vmatpush1.bf16.msra.mxu1 %v5841_v62 }
 0x350   :  { %676 = vmatprep.subr.bf16.mxu1 %v5847_v1 }
 0x354   :  { %4500 = vmatmul.mubr.bf16.vlgmr.msra.gmra.mrb[4].mxu0 %v7112_v7 }
 0x355   :  { %4512 = vmatpush3.bf16.msra.mxu0 %v5791_v29  ;;  %4515 = vmatprep.mubr.msk.bf16.mxu0 %vm5543_vm0, %v7110_v0 }
 0x356   :  { %4513 = vmatprep.subr.bf16.mxu0 %v7110_v0 }
 0x359   :  { %4514 = vmatpush3.bf16.msra.mxu0 %v5794_v30 }
 0x35a   :  { %4519 = vmatprep.subr.bf16.mxu0 %v7110_v0 }
 0x41b   :  { %v523_v38 = vpop.f32.mrb[4].mxu1 }
 0x41c   :  { %v4509_v39 = vpop.f32.mrb[5].mxu1  ;;  %v529_v58 = vadd.f32 %v523_v38, %v5783_v10  ;;  %v187_v38 = vld [vmem:[%s7103_s9] sm:$0x3] }
 0x41d   :  { %v526_v40 = vpop.f32.mrb[6].mxu1  ;;  %v5915_v39 = vrot.slane %v187_v38, %v562_v36 }
 0x41e   :  { %v4510_v41 = vpop.f32.mrb[7].mxu1  ;;  %v4219_v5 = vmul.f32 -1.442695, %v529_v58 }
 0x427   :  { %v458_v43 = vpop.f32.mrb[4].mxu0 }
 0x428   :  { %v4767_v44 = vadd.f32 %v5824_v42, %v458_v43  ;;  %v4501_v45 = vpop.f32.mrb[5].mxu0 }
 0x429   :  { %v461_v46 = vpop.f32.mrb[6].mxu0 }
 0x42a   :  { %4980 = vtanh.f32 %v4767_v44  ;;  %v4502_v47 = vpop.f32.mrb[7].mxu0  ;;  %v4217_v49 = vmul.f32 -1.442695, %v4767_v44 }
 0x42c   :  { %4982 = vpow2.f32 %v4217_v49 }
 0x434   :  { %v4981_v48 = vpop.eup %4980 }
 0x435   :  { %474 = vrot.lane.b32.xlu0 %v4981_v48, %s5545_s23  ;;  %v558_v48 = vsub.s32 0, %v5907_v34  ;;  %v6047_v34 = vld [vmem:[%s7107_s13 + $0x8] sm:$0xff]  }
 0x436   :  { %v4983_v50 = vpop.eup %4982 }
 0x437   :  { %v468_v51 = vadd.f32 1.0, %v4983_v50  ;;  %v5942_v49 = vrot.slane %v187_v38, %v558_v48 }
 0x439   :  { %4984 = vrcp.f32 %v468_v51 }
 0x443   :  { %v4985_v52 = vpop.eup %4984 }
 0x444   :  { %v472_v55 = vmul.f32 0.0, %v4985_v52 }
 0x4a7   :  { %v475_v53 = vpop.permute.xlu0 %474 }
 0x4a8   :  { %v477_v54 = vmul.f32 %v4985_v52, %v475_v53 }
 0x4aa   :  { %479 = vrot.lane.b32.xlu1 %v477_v54, %s5545_s23 }
 0x51c   :  { %v480_v56 = vpop.permute.xlu1 %479 }
 0x51d   :  { %v5829_v57 = vadd.f32 %v480_v56, %v472_v55 }
 0x51f   :  { %4986 = vtanh.f32 %v5829_v57 }
 0x520   :  { %4988 = vtanh.f32 %v529_v58  ;;  %v5946_v58 = vld [vmem:[#allocation10 + $0x4] ss:$8 sps:$4 sm:$0xff]  }
 0x521   :  { %4990 = vpow2.f32 %v4219_v5  ;;  %v5954_v5 = vld [vmem:[#allocation10 + $0x10] ss:$8 sps:$4 sm:$0xff]  }
 0x529   :  { %v4987_v63 = vpop.eup %4986 }
 0x52a   :  { %485 = vrot.lane.b32.xlu0 %v4987_v63, %s5545_s23  ;;  %v4989_v3 = vpop.eup %4988  ;;  %v5948_v63 = vld [vmem:[#allocation10] ss:$8 sps:$4 sm:$0xff]  }
 0x52b   :  { %v4991_v6 = vpop.eup %4990 }
 0x52c   :  { %v533_v8 = vadd.f32 1.0, %v4991_v6  ;;  %v5957_v6 = vld [vmem:[#allocation10 + $0x24] ss:$8 sps:$4 sm:$0xff]  }
 0x52e   :  { %539 = vrot.lane.b32.xlu0 %v4989_v3, %s5545_s23  ;;  %4992 = vrcp.f32 %v533_v8  ;;  %v5950_v3 = vld [vmem:[#allocation10 + $0x14] ss:$8 sps:$4 sm:$0xff]   ;;  %v5960_v8 = vld [vmem:[#allocation10 + $0x20] ss:$8 sps:$4 sm:$0xff]  }
 0x538   :  { %v4993_v14 = vpop.eup %4992 }
 0x539   :  { %v537_v20 = vmul.f32 %v4993_v14, %v5788_v28 }
 0x59c   :  { %v486_v9 = vpop.permute.xlu0 %485 }
 0x59d   :  { %v488_v11 = vmul.f32 %v4985_v52, %v486_v9  ;;  %v5963_v9 = vld [vmem:[#allocation10 + $0x34] ss:$8 sps:$4 sm:$0xff]  }
 0x59f   :  { %v554_v12 = vpack.c.bf16 %v488_v11, %v488_v11 }
 0x5a0   :  { %v540_v13 = vpop.permute.xlu0 %539 }
 0x5a1   :  { %567 = vrot.lane.b32.xlu1 %v554_v12, %s5533_s30  ;;  %v542_v15 = vmul.f32 %v4993_v14, %v540_v13  ;;  %v5967_v12 = vld [vmem:[#allocation10 + $0x30] ss:$8 sps:$4 sm:$0xff]  }
 0x5a5   :  { %544 = vrot.lane.b32.xlu1 %v542_v15, %s5545_s23 }
 0x613   :  { %v568_v18 = vpop.permute.xlu1 %567 }
 0x614   :  { %4224 = vmatmul.mubr.msk.bf16.vlgmr.msra.gmra.mrb[8].mxu1 %vm223_vm1, %v568_v18 }
 0x615   :  { %677 = vmatpush1.bf16.msra.mxu1 %v5858_v16  ;;  %708 = vmatprep.mubr.bf16.mxu1 %v7112_v7 }
 0x616   :  { %678 = vmatprep.subr.bf16.mxu1 %v5863_v17 }
 0x617   :  { %v545_v22 = vpop.permute.xlu1 %544 }
 0x618   :  { %v5880_v23 = vadd.f32 %v545_v22, %v537_v20  ;;  %v5973_v22 = vld [vmem:[#allocation12 + $0x4] ss:$8 sps:$4 sm:$0xff]  }
 0x619   :  { %679 = vmatpush1.bf16.msra.mxu1 %v5870_v19 }
 0x61a   :  { %4994 = vtanh.f32 %v5880_v23  ;;  %680 = vmatprep.subr.bf16.mxu1 %v5878_v21 }
 0x61d   :  { %681 = vmatpush1.bf16.msra.mxu1 %v5886_v24 }
 0x61e   :  { %682 = vmatprep.subr.bf16.mxu1 %v5893_v25 }
 0x621   :  { %683 = vmatpush1.bf16.msra.mxu1 %v5899_v26 }
 0x622   :  { %981 = vmatprep.subr.bf16.mxu1 %v5946_v58 }
 0x624   :  { %v4995_v27 = vpop.eup %4994  ;;  %709 = vmatmul.mubr.bf16.vlgmr.msra.gmra.mrb[8].mxu1 %v7112_v7 }
 0x625   :  { %550 = vrot.lane.b32.xlu1 %v4995_v27, %s5545_s23  ;;  %1013 = vmatprep.mubr.bf16.mxu1 %v7112_v7 }
 0x626   :  { %982 = vmatpush1.bf16.msra.mxu1 %v5948_v63 }
 0x627   :  { %983 = vmatprep.subr.bf16.mxu1 %v5950_v3 }
 0x62a   :  { %984 = vmatpush1.bf16.msra.mxu1 %v5954_v5 }
 0x62b   :  { %985 = vmatprep.subr.bf16.mxu1 %v5957_v6 }
 0x62e   :  { %986 = vmatpush1.bf16.msra.mxu1 %v5960_v8 }
 0x62f   :  { %987 = vmatprep.subr.bf16.mxu1 %v5963_v9 }
 0x632   :  { %988 = vmatpush1.bf16.msra.mxu1 %v5967_v12 }
 0x633   :  { %1062 = vmatprep.subr.bf16.mxu1 %v5973_v22 }
 0x697   :  { %v551_v28 = vpop.permute.xlu1 %550 }
 0x698   :  { %v553_v31 = vmul.f32 %v4993_v14, %v551_v28 }
 0x69a   :  { %v749_v32 = vpack.c.bf16 %v553_v31, %v553_v31 }
 0x69c   :  { %751 = vrot.lane.b32.xlu1 %v749_v32, %s5533_s30 }
 0x6f7   :  { %v710_v40 = vpop.f32.mrb[8].mxu1 }
 0x6f8   :  { %v712_v41 = vpop.f32.mrb[9].mxu1  ;;  %v4768_v50 = vadd.f32 %v710_v40, %v5942_v49 }
 0x6f9   :  { %v5918_v43 = vadd.f32 %v712_v41, %v5915_v39  ;;  %v714_v44 = vpop.f32.mrb[10].mxu1 }
 0x6fa   :  { %v715_v45 = vpop.f32.mrb[11].mxu1  ;;  %v4233_v51 = vmul.f32 -1.442695, %v4768_v50 }
 0x6fb   :  { %4996 = vtanh.f32 %v5918_v43  ;;  %v4234_v44 = vmul.f32 -1.442695, %v5918_v43  ;;  %v5986_v43 = vld [vmem:[#allocation12 + $0x14] ss:$8 sps:$4 sm:$0xff]  }
 0x6fc   :  { %4998 = vpow2.f32 %v4233_v51 }
 0x705   :  { %v4997_v46 = vpop.eup %4996 }
 0x706   :  { %734 = vrot.lane.b32.xlu0 %v4997_v46, %s5533_s30  ;;  %v4999_v52 = vpop.eup %4998 }
 0x707   :  { %v725_v53 = vadd.f32 1.0, %v4999_v52 }
 0x709   :  { %5000 = vrcp.f32 %v725_v53 }
 0x70e   :  { %v752_v47 = vpop.permute.xlu1 %751 }
 0x70f   :  { %4516 = vmatmul.mubr.msk.bf16.vlgmr.msra.gmra.mrb[8].mxu0 %vm223_vm1, %v752_v47 }
 0x710   :  { %4520 = vmatpush3.bf16.msra.mxu0 %v5801_v35  ;;  %4523 = vmatprep.mubr.msk.bf16.mxu0 %vm5543_vm0, %v7110_v0 }
 0x711   :  { %4521 = vmatprep.subr.bf16.mxu0 %v7110_v0 }
 0x713   :  { %v5001_v54 = vpop.eup %5000 }
 0x714   :  { %4522 = vmatpush3.bf16.msra.mxu0 %v5806_v37  ;;  %v732_v11 = vmul.f32 0.0, %v5001_v54 }
 0x715   :  { %4527 = vmatprep.subr.bf16.mxu0 %v7110_v0 }
 0x71b   :  { %4524 = vmatmul.mubr.msk.bf16.vlgmr.msra.gmra.mrb[8].mxu0 %vm223_vm1, %v568_v18 }
 0x71c   :  { %4528 = vmatpush3.bf16.msra.mxu0 %v5758_v2  ;;  %4531 = vmatprep.mubr.msk.bf16.mxu0 %vm5543_vm0, %v7110_v0 }
 0x71d   :  { %4529 = vmatprep.subr.bf16.mxu0 %v7110_v0 }
 0x720   :  { %4530 = vmatpush3.bf16.msra.mxu0 %v5762_v4 }
 0x721   :  { %4535 = vmatprep.subr.bf16.mxu0 %v7110_v0 }
 0x723   :  { %4532 = vmatmul.mubr.msk.bf16.vlgmr.msra.gmra.mrb[12].mxu0 %vm223_vm1, %v752_v47 }
 0x724   :  { %4543 = vmatprep.mubr.msk.bf16.mxu0 %vm5543_vm0, %v7110_v0 }
 0x778   :  { %v735_v55 = vpop.permute.xlu0 %734 }
 0x779   :  { %v737_v56 = vmul.f32 %v5001_v54, %v735_v55 }
 0x77b   :  { %739 = vrot.lane.b32.xlu0 %v737_v56, %s5533_s30 }
 0x7ed   :  { %v740_v13 = vpop.permute.xlu0 %739 }
 0x7ee   :  { %v5969_v14 = vadd.f32 %v740_v13, %v732_v11  ;;  %v830_v15 = vpop.f32.mrb[8].mxu0  ;;  %v5982_v13 = vld [vmem:[#allocation12] ss:$8 sps:$4 sm:$0xff]  }
 0x7ef   :  { %v4770_v18 = vadd.f32 %v5824_v42, %v830_v15  ;;  %v4525_v20 = vpop.f32.mrb[9].mxu0 }
 0x7f0   :  { %5002 = vtanh.f32 %v5969_v14  ;;  %v833_v27 = vpop.f32.mrb[10].mxu0  ;;  %v5996_v20 = vld [vmem:[#allocation12 + $0x24] ss:$8 sps:$4 sm:$0xff]  }
 0x7f1   :  { %5004 = vtanh.f32 %v4770_v18  ;;  %v4526_v28 = vpop.f32.mrb[11].mxu0  ;;  %v4237_v45 = vmul.f32 -1.442695, %v4770_v18  ;;  %v5992_v18 = vld [vmem:[#allocation12 + $0x10] ss:$8 sps:$4 sm:$0xff]  }
 0x7f2   :  { %5006 = vpow2.f32 %v4234_v44  ;;  %v5999_v27 = vld [vmem:[#allocation12 + $0x20] ss:$8 sps:$4 sm:$0xff]   ;;  %v6002_v28 = vld [vmem:[#allocation12 + $0x34] ss:$8 sps:$4 sm:$0xff]  }
 0x7f3   :  { %5008 = vpow2.f32 %v4237_v45  ;;  %v188_v44 = vld [vmem:[%s7106_s12] sm:$0x3] }
 0x7f4   :  { %v6027_v45 = vrot.slane %v188_v44, %v562_v36 }
 0x7f6   :  { %v5977_v31 = vpop.f32.mrb[12].mxu0 }
 0x7f7   :  { %v4533_v32 = vpop.f32.mrb[13].mxu0 }
 0x7f8   :  { %v898_v33 = vpop.f32.mrb[14].mxu0  ;;  %v6005_v32 = vld [vmem:[#allocation12 + $0x30] ss:$8 sps:$4 sm:$0xff]  }
 0x7f9   :  { %v4534_v38 = vpop.f32.mrb[15].mxu0 }
 0x7fa   :  { %v5003_v40 = vpop.eup %5002 }
 0x7fb   :  { %v5005_v41 = vpop.eup %5004  ;;  %745 = vrot.lane.b32.xlu0 %v5003_v40, %s5533_s30 }
 0x7fc   :  { %846 = vrot.lane.b32.xlu1 %v5005_v41, %s5545_s23  ;;  %v5007_v46 = vpop.eup %5006 }
 0x7fd   :  { %v5009_v47 = vpop.eup %5008  ;;  %v726_v50 = vadd.f32 1.0, %v5007_v46 }
 0x7fe   :  { %v840_v51 = vadd.f32 1.0, %v5009_v47 }
 0x7ff   :  { %5010 = vrcp.f32 %v726_v50 }
 0x800   :  { %5012 = vrcp.f32 %v840_v51 }
 0x809   :  { %v5011_v52 = vpop.eup %5010 }
 0x80a   :  { %v5013_v54 = vpop.eup %5012 }
 0x80b   :  { %v844_v33 = vmul.f32 %v5013_v54, %v5829_v57 }
 0x86d   :  { %v746_v53 = vpop.permute.xlu0 %745 }
 0x86e   :  { %v748_v55 = vmul.f32 %v5011_v52, %v746_v53  ;;  %v847_v56 = vpop.permute.xlu1 %846 }
 0x86f   :  { %v849_v11 = vmul.f32 %v5013_v54, %v847_v56 }
 0x870   :  { %v5984_v15 = vpack.c.bf16 %v748_v55, %v748_v55 }
 0x871   :  { %851 = vrot.lane.b32.xlu1 %v849_v11, %s5545_s23  ;;  %v6034_v11 = vrot.slane %v188_v44, %v558_v48  ;;  %v6054_v48 = vld [vmem:[%s7107_s13 + $0x10] sm:$0xff]  }
 0x872   :  { %4248 = vmatmul.mubr.msk.bf16.vlgmr.msra.gmra.mrb[12].mxu1 %vm673_vm2, %v5984_v15 }
 0x873   :  { %1063 = vmatpush1.bf16.msra.mxu1 %v5982_v13  ;;  %1094 = vmatprep.mubr.bf16.mxu1 %v7112_v7 }
 0x874   :  { %1064 = vmatprep.subr.bf16.mxu1 %v5986_v43 }
 0x877   :  { %1065 = vmatpush1.bf16.msra.mxu1 %v5992_v18 }
 0x878   :  { %1066 = vmatprep.subr.bf16.mxu1 %v5996_v20 }
 0x87b   :  { %1067 = vmatpush1.bf16.msra.mxu1 %v5999_v27 }
 0x87c   :  { %1068 = vmatprep.subr.bf16.mxu1 %v6002_v28 }
 0x87f   :  { %1069 = vmatpush1.bf16.msra.mxu1 %v6005_v32 }
 0x880   :  { %4547 = vmatprep.subr.bf16.mxu1 %v7110_v0 }
 0x882   :  { %1095 = vmatmul.mubr.bf16.vlgmr.msra.gmra.mrb[12].mxu1 %v7112_v7 }
 0x883   :  { %4548 = vmatpush3.bf16.msra.mxu1 %v5791_v29  ;;  %4551 = vmatprep.mubr.msk.bf16.mxu1 %vm5543_vm0, %v7110_v0 }
 0x884   :  { %4549 = vmatprep.subr.bf16.mxu1 %v7110_v0 }
 0x887   :  { %4550 = vmatpush3.bf16.msra.mxu1 %v5794_v30 }
 0x888   :  { %4555 = vmatprep.subr.bf16.mxu1 %v7110_v0 }
 0x8e3   :  { %v852_v38 = vpop.permute.xlu1 %851 }
 0x8e4   :  { %v6018_v40 = vadd.f32 %v852_v38, %v844_v33 }
 0x8e6   :  { %5014 = vtanh.f32 %v6018_v40 }
 0x8f0   :  { %v5015_v41 = vpop.eup %5014 }
 0x8f1   :  { %857 = vrot.lane.b32.xlu1 %v5015_v41, %s5545_s23 }
 0x955   :  { %v1096_v46 = vpop.f32.mrb[12].mxu1 }
 0x956   :  { %v1098_v47 = vpop.f32.mrb[13].mxu1  ;;  %v4771_v36 = vadd.f32 %v1096_v46, %v6034_v11  ;;  %v6062_v46 = vld [vmem:[%s7107_s13 + $0x18] sm:$0xff]  }
 0x957   :  { %v4772_v57 = vadd.f32 %v1098_v47, %v6027_v45  ;;  %v1100_v50 = vpop.f32.mrb[14].mxu1 }
 0x958   :  { %v1101_v51 = vpop.f32.mrb[15].mxu1  ;;  %v4257_v33 = vmul.f32 -1.442695, %v4771_v36 }
 0x959   :  { %5016 = vtanh.f32 %v4772_v57 }
 0x95a   :  { %5018 = vpow2.f32 %v4257_v33  ;;  %v4258_v33 = vmul.f32 -1.442695, %v4772_v57  ;;  %v7118_v57 = vmov 0  }
 0x963   :  { %v5017_v52 = vpop.eup %5016  ;;  %v858_v53 = vpop.permute.xlu1 %857 }
 0x964   :  { %1120 = vrot.lane.b32.xlu0 %v5017_v52, %s5533_s30  ;;  %v860_v55 = vmul.f32 %v5013_v54, %v858_v53  ;;  %v5019_v38 = vpop.eup %5018  ;;  %v6041_v54 = vld [vmem:[%s7107_s13] sm:$0xff]  }
 0x965   :  { %v1111_v41 = vadd.f32 1.0, %v5019_v38  ;;  %4536 = vmatpush3.bf16.msra.mxu0 %v6041_v54 }
 0x966   :  { %v1211_v56 = vpack.c.bf16 %v860_v55, %v860_v55  ;;  %4537 = vmatprep.subr.bf16.mxu0 %v7110_v0  ;;  %v901_v55 = vadd.f32 %v5977_v31, %v5783_v10 }
 0x967   :  { %5020 = vrcp.f32 %v1111_v41 }
 0x968   :  { %1213 = vrot.lane.b32.xlu1 %v1211_v56, %s5533_s30  ;;  %v4239_v38 = vmul.f32 -1.442695, %v901_v55 }
 0x969   :  { %4538 = vmatpush3.bf16.msra.mxu0 %v6047_v34 }
 0x96a   :  { %4539 = vmatprep.subr.bf16.mxu0 %v7110_v0 }
 0x96d   :  { %4540 = vmatpush3.bf16.msra.mxu0 %v6054_v48 }
 0x96e   :  { %4541 = vmatprep.subr.bf16.mxu0 %v7110_v0 }
 0x971   :  { %v5021_v47 = vpop.eup %5020  ;;  %4542 = vmatpush3.bf16.msra.mxu0 %v6062_v46 }
 0x972   :  { %v1118_v44 = vmul.f32 0.0, %v5021_v47  ;;  %1218 = vmatprep.subr.bf16.mxu0 %v5833_v59 }
 0x9d6   :  { %v1121_v50 = vpop.permute.xlu0 %1120 }
 0x9d7   :  { %v1123_v51 = vmul.f32 %v5021_v47, %v1121_v50 }
 0x9d9   :  { %1125 = vrot.lane.b32.xlu0 %v1123_v51, %s5533_s30 }
 0xa4b   :  { %v1126_v52 = vpop.permute.xlu0 %1125 }
 0xa4c   :  { %v6064_v53 = vadd.f32 %v1126_v52, %v1118_v44 }
 0xa4e   :  { %5022 = vtanh.f32 %v6064_v53 }
 0xa4f   :  { %5024 = vtanh.f32 %v901_v55  ;;  %v6083_v55 = vpop.permute.xlu1 %1213 }
 0xa50   :  { %5026 = vpow2.f32 %v4258_v33 }
 0xa51   :  { %5028 = vpow2.f32 %v4239_v38 }
 0xa58   :  { %v5023_v56 = vpop.eup %5022 }
 0xa59   :  { %1131 = vrot.lane.b32.xlu0 %v5023_v56, %s5533_s30  ;;  %v5025_v36 = vpop.eup %5024 }
 0xa5a   :  { %v5027_v41 = vpop.eup %5026 }
 0xa5b   :  { %v1112_v47 = vadd.f32 1.0, %v5027_v41  ;;  %v5029_v50 = vpop.eup %5028 }
 0xa5c   :  { %v905_v51 = vadd.f32 1.0, %v5029_v50 }
 0xa5d   :  { %911 = vrot.lane.b32.xlu0 %v5025_v36, %s5545_s23  ;;  %5030 = vrcp.f32 %v1112_v47 }
 0xa5e   :  { %5032 = vrcp.f32 %v905_v51 }
 0xa67   :  { %v5031_v31 = vpop.eup %5030 }
 0xa68   :  { %v5033_v7 = vpop.eup %5032 }
 0xa69   :  { %v909_v36 = vmul.f32 %v5033_v7, %v5880_v23 }
 0xacb   :  { %v1132_v44 = vpop.permute.xlu0 %1131 }
 0xacc   :  { %v1134_v52 = vmul.f32 %v5031_v31, %v1132_v44 }
 0xace   :  { %v6073_v0 = vpack.c.bf16 %v1134_v52, %v1134_v52 }
 0xacf   :  { %v912_v56 = vpop.permute.xlu0 %911 }
 0xad0   :  { %v914_v10 = vmul.f32 %v5033_v7, %v912_v56  ;;  %4544 = vmatmul.mubr.msk.bf16.vlgmr.msra.gmra.mrb[16].mxu0 %vm673_vm2, %v6073_v0 }
 0xad1   :  { %1219 = vmatpush1.bf16.msra.mxu0 %v5835_v60  ;;  %1250 = vmatprep.mubr.bf16.mxu0 %v7118_v57 }
 0xad2   :  { %916 = vrot.lane.b32.xlu1 %v914_v10, %s5545_s23  ;;  %1220 = vmatprep.subr.bf16.mxu0 %v5837_v61  ;;  %v7119_v10 = vmov 0.0  }
 0xad5   :  { %1221 = vmatpush1.bf16.msra.mxu0 %v5841_v62 }
 0xad6   :  { %1259 = vmatprep.subr.bf16.mxu0 %v5847_v1 }
 0xad8   :  { %4265 = vmatmul.mubr.msk.bf16.vlgmr.msra.gmra.mrb[20].mxu0 %vm223_vm1, %v6083_v55 }
 0xad9   :  { %1260 = vmatpush1.bf16.msra.mxu0 %v5858_v16  ;;  %1291 = vmatprep.mubr.bf16.mxu0 %v7118_v57 }
 0xada   :  { %1261 = vmatprep.subr.bf16.mxu0 %v5863_v17 }
 0xadd   :  { %1262 = vmatpush1.bf16.msra.mxu0 %v5870_v19 }
 0xade   :  { %1263 = vmatprep.subr.bf16.mxu0 %v5878_v21 }
 0xae1   :  { %1264 = vmatpush1.bf16.msra.mxu0 %v5886_v24 }
 0xae2   :  { %1265 = vmatprep.subr.bf16.mxu0 %v5893_v25 }
 0xae5   :  { %1266 = vmatpush1.bf16.msra.mxu0 %v5899_v26 }
 0xae6   :  { %4563 = vmatprep.subr.bf16.mxu0 %v7119_v10 }
 0xae8   :  { %4266 = vmatmul.mubr.msk.bf16.vlgmr.msra.gmra.mrb[20].mxu0 %vm673_vm2, %v5984_v15 }
 0xae9   :  { %4564 = vmatpush3.bf16.msra.mxu0 %v5758_v2  ;;  %4567 = vmatprep.mubr.msk.bf16.mxu0 %vm5543_vm0, %v7119_v10  ;;  %v6112_v2 = vld [vmem:[%s7108_s14] ss:$0 sm:$0xff] }
 0xaea   :  { %4565 = vmatprep.subr.bf16.mxu0 %v7119_v10 }
 0xaed   :  { %4566 = vmatpush3.bf16.msra.mxu0 %v5762_v4 }
 0xaee   :  { %4571 = vmatprep.subr.bf16.mxu0 %v7119_v10 }
 0xb44   :  { %v917_v33 = vpop.permute.xlu1 %916 }
 0xb45   :  { %v6105_v38 = vadd.f32 %v917_v33, %v909_v36 }
 0xb47   :  { %7120 = vst [vmem:[#allocation18_spill] sm:$0xff] %v6105_v38  ;;  %5034 = vtanh.f32 %v6105_v38 }
 0xb51   :  { %v5035_v41 = vpop.eup %5034 }
 0xb52   :  { %922 = vrot.lane.b32.xlu1 %v5035_v41, %s5545_s23 }
 0xba3   :  { %v1203_v15 = vpop.f32.mrb[16].mxu0 }
 0xba4   :  { %v1204_v4 = vadd.f32 %v6112_v2, %v1203_v15  ;;  %v4545_v47 = vpop.f32.mrb[17].mxu0 }
 0xba5   :  { %v1206_v50 = vpop.f32.mrb[18].mxu0 }
 0xba6   :  { %1210 = vst.msk [vmem:[%s7109_s15] sm:$0xff] %vm1209_vm3, %v1204_v4  ;;  %v4546_v23 = vpop.f32.mrb[19].mxu0 }
 0xbbb   :  { %v1293_v51 = vpop.f32.mrb[20].mxu0 }
 0xbbc   :  { %v1295_v31 = vpop.f32.mrb[21].mxu0  ;;  %v4773_v15 = vadd.f32 %v1293_v51, %v5942_v49 }
 0xbbd   :  { %v4774_v44 = vadd.f32 %v1295_v31, %v5915_v39  ;;  %v1297_v52 = vpop.f32.mrb[22].mxu0 }
 0xbbe   :  { %v1298_v56 = vpop.f32.mrb[23].mxu0  ;;  %v4267_v47 = vmul.f32 -1.442695, %v4773_v15 }
 0xbbf   :  { %5036 = vtanh.f32 %v4774_v44 }
 0xbc0   :  { %5038 = vpow2.f32 %v4267_v47 }
 0xbc4   :  { %v923_v36 = vpop.permute.xlu1 %922 }
 0xbc5   :  { %v925_v33 = vmul.f32 %v5033_v7, %v923_v36  ;;  %v4268_v36 = vmul.f32 -1.442695, %v4774_v44 }
 0xbc7   :  { %v1332_v41 = vpack.c.bf16 %v925_v33, %v925_v33 }
 0xbc9   :  { %v5037_v38 = vpop.eup %5036  ;;  %1334 = vrot.lane.b32.xlu1 %v1332_v41, %s5533_s30 }
 0xbca   :  { %1317 = vrot.lane.b32.xlu0 %v5037_v38, %s5533_s30  ;;  %v5039_v4 = vpop.eup %5038 }
 0xbcb   :  { %v1308_v50 = vadd.f32 1.0, %v5039_v4 }
 0xbcd   :  { %5040 = vrcp.f32 %v1308_v50 }
 0xbd7   :  { %v5041_v31 = vpop.eup %5040 }
 0xc3b   :  { %v1335_v23 = vpop.permute.xlu1 %1334 }
 0xc3c   :  { %v1318_v52 = vpop.permute.xlu0 %1317  ;;  %4552 = vmatmul.mubr.msk.bf16.vlgmr.msra.gmra.mrb[16].mxu1 %vm223_vm1, %v1335_v23  ;;  %4568 = vmatmul.mubr.msk.bf16.vlgmr.msra.gmra.mrb[24].mxu0 %vm223_vm1, %v1335_v23 }
 0xc3d   :  { %v1320_v7 = vmul.f32 %v5041_v31, %v1318_v52  ;;  %4556 = vmatpush3.bf16.msra.mxu1 %v5801_v35  ;;  %4559 = vmatprep.mubr.msk.bf16.mxu1 %vm5543_vm0, %v7119_v10  ;;  %v1315_v35 = vmul.f32 %v5041_v31, %v5969_v14 }
 0xc3e   :  { %4557 = vmatprep.subr.bf16.mxu1 %v7119_v10  ;;  %4572 = vmatpush3.bf16.msra.mxu0 %v6041_v54 }
 0xc3f   :  { %1322 = vrot.lane.b32.xlu0 %v1320_v7, %s5533_s30  ;;  %4573 = vmatprep.subr.bf16.mxu0 %v7119_v10 }
 0xc40   :  { %4579 = vmatprep.mubr.msk.bf16.mxu0 %vm5543_vm0, %v7119_v10 }
 0xc41   :  { %4558 = vmatpush3.bf16.msra.mxu1 %v5806_v37 }
 0xc42   :  { %1513 = vmatprep.subr.bf16.mxu1 %v5946_v58  ;;  %4574 = vmatpush3.bf16.msra.mxu0 %v6047_v34 }
 0xc43   :  { %4575 = vmatprep.subr.bf16.mxu0 %v7119_v10 }
 0xc46   :  { %4576 = vmatpush3.bf16.msra.mxu0 %v6054_v48 }
 0xc47   :  { %4577 = vmatprep.subr.bf16.mxu0 %v7119_v10 }
 0xc48   :  { %4560 = vmatmul.mubr.msk.bf16.vlgmr.msra.gmra.mrb[16].mxu1 %vm223_vm1, %v6083_v55 }
 0xc49   :  { %1514 = vmatpush1.bf16.msra.mxu1 %v5948_v63  ;;  %1545 = vmatprep.mubr.bf16.mxu1 %v7118_v57 }
 0xc4a   :  { %1515 = vmatprep.subr.bf16.mxu1 %v5950_v3  ;;  %4578 = vmatpush3.bf16.msra.mxu0 %v6062_v46 }
 0xc4b   :  { %1679 = vmatprep.subr.bf16.mxu0 %v5833_v59 }
 0xc4d   :  { %1516 = vmatpush1.bf16.msra.mxu1 %v5954_v5 }
 0xc4e   :  { %1517 = vmatprep.subr.bf16.mxu1 %v5957_v6 }
 0xc51   :  { %1518 = vmatpush1.bf16.msra.mxu1 %v5960_v8 }
 0xc52   :  { %1519 = vmatprep.subr.bf16.mxu1 %v5963_v9 }
 0xc55   :  { %1520 = vmatpush1.bf16.msra.mxu1 %v5967_v12 }
 0xc56   :  { %1554 = vmatprep.subr.bf16.mxu1 %v5973_v22 }
 0xcb1   :  { %v1323_v37 = vpop.permute.xlu0 %1322 }
 0xcb2   :  { %v6154_v55 = vadd.f32 %v1323_v37, %v1315_v35 }
 0xcb4   :  { %5042 = vtanh.f32 %v6154_v55 }
 0xcb5   :  { %5044 = vpow2.f32 %v4268_v36 }
 0xcbe   :  { %v5043_v59 = vpop.eup %5042 }
 0xcbf   :  { %1328 = vrot.lane.b32.xlu0 %v5043_v59, %s5533_s30  ;;  %v5045_v50 = vpop.eup %5044 }
 0xcc0   :  { %v1309_v23 = vadd.f32 1.0, %v5045_v50 }
 0xd0f   :  { %v6158_v38 = vpop.f32.mrb[24].mxu0 }
 0xd10   :  { %v4569_v51 = vpop.f32.mrb[25].mxu0 }
 0xd11   :  { %v1481_v56 = vpop.f32.mrb[26].mxu0 }
 0xd12   :  { %v4570_v33 = vpop.f32.mrb[27].mxu0 }
 0xd1b   :  { %v1413_v41 = vpop.f32.mrb[16].mxu1 }
 0xd1c   :  { %v4775_v15 = vadd.f32 %v5824_v42, %v1413_v41  ;;  %v4561_v47 = vpop.f32.mrb[17].mxu1 }
 0xd1d   :  { %v1416_v14 = vpop.f32.mrb[18].mxu1 }
 0xd1e   :  { %5046 = vtanh.f32 %v4775_v15  ;;  %v4562_v4 = vpop.f32.mrb[19].mxu1  ;;  %v4271_v42 = vmul.f32 -1.442695, %v4775_v15 }
 0xd1f   :  { %5048 = vrcp.f32 %v1309_v23 }
 0xd20   :  { %5050 = vpow2.f32 %v4271_v42 }
 0xd28   :  { %v5047_v31 = vpop.eup %5046 }
 0xd29   :  { %1429 = vrot.lane.b32.xlu1 %v5047_v31, %s5545_s23  ;;  %v5049_v52 = vpop.eup %5048 }
 0xd2a   :  { %v5051_v44 = vpop.eup %5050 }
 0xd2b   :  { %v1423_v59 = vadd.f32 1.0, %v5051_v44 }
 0xd2d   :  { %5052 = vrcp.f32 %v1423_v59 }
 0xd31   :  { %v1329_v7 = vpop.permute.xlu0 %1328 }
 0xd32   :  { %v1331_v35 = vmul.f32 %v5049_v52, %v1329_v7 }
 0xd34   :  { %v6162_v37 = vpack.c.bf16 %v1331_v35, %v1331_v35 }
 0xd36   :  { %4274 = vmatmul.mubr.msk.bf16.vlgmr.msra.gmra.mrb[20].mxu1 %vm673_vm2, %v6162_v37 }
 0xd37   :  { %1555 = vmatpush1.bf16.msra.mxu1 %v5982_v13  ;;  %1586 = vmatprep.mubr.bf16.mxu1 %v7118_v57  ;;  %v5053_v51 = vpop.eup %5052 }
 0xd38   :  { %1556 = vmatprep.subr.bf16.mxu1 %v5986_v43 }
 0xd3b   :  { %1557 = vmatpush1.bf16.msra.mxu1 %v5992_v18 }
 0xd3c   :  { %1558 = vmatprep.subr.bf16.mxu1 %v5996_v20 }
 0xd3f   :  { %1559 = vmatpush1.bf16.msra.mxu1 %v5999_v27 }
 0xd40   :  { %1560 = vmatprep.subr.bf16.mxu1 %v6002_v28 }
 0xd43   :  { %1561 = vmatpush1.bf16.msra.mxu1 %v6005_v32 }
 0xd44   :  { %4583 = vmatprep.subr.bf16.mxu1 %v7119_v10 }
 0xd46   :  { %4275 = vmatmul.mubr.msk.bf16.vlgmr.msra.gmra.mrb[20].mxu1 %vm673_vm2, %v6073_v0  ;;  %v1427_v0 = vmul.f32 %v5053_v51, %v6018_v40 }
 0xd47   :  { %4584 = vmatpush3.bf16.msra.mxu1 %v5791_v29  ;;  %4587 = vmatprep.mubr.msk.bf16.mxu1 %vm5543_vm0, %v7119_v10 }
 0xd48   :  { %4585 = vmatprep.subr.bf16.mxu1 %v7119_v10 }
 0xd4b   :  { %4586 = vmatpush3.bf16.msra.mxu1 %v5794_v30 }
 0xd4c   :  { %4591 = vmatprep.subr.bf16.mxu1 %v7119_v10 }
 0xd9b   :  { %v1430_v56 = vpop.permute.xlu1 %1429 }
 0xd9c   :  { %v1432_v36 = vmul.f32 %v5053_v51, %v1430_v56 }
 0xd9e   :  { %1434 = vrot.lane.b32.xlu1 %v1432_v36, %s5545_s23 }
 0xe10   :  { %v1435_v29 = vpop.permute.xlu1 %1434 }
 0xe11   :  { %v6185_v33 = vadd.f32 %v1435_v29, %v1427_v0 }
 0xe13   :  { %5054 = vtanh.f32 %v6185_v33 }
 0xe19   :  { %v1588_v30 = vpop.f32.mrb[20].mxu1 }
 0xe1a   :  { %v1590_v41 = vpop.f32.mrb[21].mxu1  ;;  %v4776_v40 = vadd.f32 %v1588_v30, %v6034_v11  ;;  %v7121_v30 = vld [vmem:[#allocation17_spill] sm:$0xff] }
 0xe1b   :  { %v4777_v15 = vadd.f32 %v1590_v41, %v6027_v45  ;;  %v1592_v47 = vpop.f32.mrb[22].mxu1  ;;  %v1484_v41 = vadd.f32 %v6158_v38, %v7121_v30 }
 0xe1c   :  { %v1593_v14 = vpop.f32.mrb[23].mxu1  ;;  %v4276_v23 = vmul.f32 -1.442695, %v4776_v40 }
 0xe1d   :  { %v5055_v4 = vpop.eup %5054  ;;  %5056 = vtanh.f32 %v4777_v15  ;;  %v4277_v14 = vmul.f32 -1.442695, %v4777_v15 }
 0xe1e   :  { %1440 = vrot.lane.b32.xlu1 %v5055_v4, %s5545_s23  ;;  %5058 = vpow2.f32 %v4276_v23  ;;  %v4273_v4 = vmul.f32 -1.442695, %v1484_v41 }
 0xe27   :  { %v5057_v50 = vpop.eup %5056 }
 0xe28   :  { %1612 = vrot.lane.b32.xlu0 %v5057_v50, %s5533_s30  ;;  %v5059_v31 = vpop.eup %5058 }
 0xe29   :  { %v1603_v52 = vadd.f32 1.0, %v5059_v31 }
 0xe2b   :  { %5060 = vrcp.f32 %v1603_v52 }
 0xe35   :  { %v5061_v44 = vpop.eup %5060 }
 0xe36   :  { %v1610_v36 = vmul.f32 %v5061_v44, %v6064_v53 }
 0xe90   :  { %v1441_v7 = vpop.permute.xlu1 %1440 }
 0xe91   :  { %v1443_v35 = vmul.f32 %v5053_v51, %v1441_v7 }
 0xe93   :  { %v1672_v42 = vpack.c.bf16 %v1443_v35, %v1443_v35 }
 0xe95   :  { %1674 = vrot.lane.b32.xlu1 %v1672_v42, %s5533_s30 }
 0xe9a   :  { %v1613_v59 = vpop.permute.xlu0 %1612 }
 0xe9b   :  { %v1615_v56 = vmul.f32 %v5061_v44, %v1613_v59 }
 0xe9d   :  { %1617 = vrot.lane.b32.xlu0 %v1615_v56, %s5533_s30 }
 0xf07   :  { %v6212_v15 = vpop.permute.xlu1 %1674 }
 0xf0f   :  { %v1618_v0 = vpop.permute.xlu0 %1617 }
 0xf10   :  { %v6195_v29 = vadd.f32 %v1618_v0, %v1610_v36 }
 0xf12   :  { %5062 = vtanh.f32 %v6195_v29 }
 0xf13   :  { %5064 = vtanh.f32 %v1484_v41 }
 0xf14   :  { %5066 = vpow2.f32 %v4277_v14 }
 0xf15   :  { %5068 = vpow2.f32 %v4273_v4 }
 0xf1c   :  { %v5063_v51 = vpop.eup %5062 }
 0xf1d   :  { %1623 = vrot.lane.b32.xlu0 %v5063_v51, %s5533_s30  ;;  %v5065_v47 = vpop.eup %5064 }
 0xf1e   :  { %v5067_v53 = vpop.eup %5066 }
 0xf1f   :  { %v1604_v50 = vadd.f32 1.0, %v5067_v53  ;;  %v5069_v40 = vpop.eup %5068 }
 0xf20   :  { %v1488_v23 = vadd.f32 1.0, %v5069_v40 }
 0xf21   :  { %1494 = vrot.lane.b32.xlu0 %v5065_v47, %s5545_s23  ;;  %5070 = vrcp.f32 %v1604_v50 }
 0xf22   :  { %5072 = vrcp.f32 %v1488_v23 }
 0xf2b   :  { %v5071_v38 = vpop.eup %5070 }
 0xf2c   :  { %v5073_v35 = vpop.eup %5072 }
 0xf8f   :  { %v1624_v31 = vpop.permute.xlu0 %1623 }
 0xf90   :  { %v1626_v52 = vmul.f32 %v5071_v38, %v1624_v31 }
 0xf92   :  { %v6202_v7 = vpack.c.bf16 %v1626_v52, %v1626_v52 }
 0xf93   :  { %v1495_v42 = vpop.permute.xlu0 %1494 }
 0xf94   :  { %v1497_v44 = vmul.f32 %v5073_v35, %v1495_v42  ;;  %4580 = vmatmul.mubr.msk.bf16.vlgmr.msra.gmra.mrb[28].mxu0 %vm673_vm2, %v6202_v7  ;;  %v6253_v42 = vld [vmem:[#allocation7] sm:$0xff]  }
 0xf95   :  { %1680 = vmatpush1.bf16.msra.mxu0 %v5835_v60  ;;  %1711 = vmatprep.mubr.bf16.mxu0 %v7118_v57  ;;  %v6227_v60 = vld [vmem:[#allocation4] sm:$0xff]  }
 0xf96   :  { %1499 = vrot.lane.b32.xlu1 %v1497_v44, %s5545_s23  ;;  %1681 = vmatprep.subr.bf16.mxu0 %v5837_v61  ;;  %v6233_v61 = vld [vmem:[#allocation4 + $0x8] sm:$0xff]  }
 0xf97   :  { %v6264_v44 = vld [vmem:[#allocation7 + $0x8] sm:$0xff]  }
 0xf99   :  { %1682 = vmatpush1.bf16.msra.mxu0 %v5841_v62  ;;  %v7122_v62 = vld [vmem:[#allocation18_spill] sm:$0xff] }
 0xf9a   :  { %1720 = vmatprep.subr.bf16.mxu0 %v5847_v1  ;;  %v1492_v1 = vmul.f32 %v5073_v35, %v7122_v62 }
 0xf9c   :  { %4279 = vmatmul.mubr.msk.bf16.vlgmr.msra.gmra.mrb[32].mxu0 %vm223_vm1, %v6212_v15 }
 0xf9d   :  { %1721 = vmatpush1.bf16.msra.mxu0 %v5858_v16  ;;  %1752 = vmatprep.mubr.bf16.mxu0 %v7118_v57 }
 0xf9e   :  { %1722 = vmatprep.subr.bf16.mxu0 %v5863_v17 }
 0xfa1   :  { %1723 = vmatpush1.bf16.msra.mxu0 %v5870_v19 }
 0xfa2   :  { %1724 = vmatprep.subr.bf16.mxu0 %v5878_v21 }
 0xfa5   :  { %1725 = vmatpush1.bf16.msra.mxu0 %v5886_v24 }
 0xfa6   :  { %1726 = vmatprep.subr.bf16.mxu0 %v5893_v25 }
 0xfa9   :  { %1727 = vmatpush1.bf16.msra.mxu0 %v5899_v26 }
 0xfaa   :  { %4599 = vmatprep.subr.bf16.mxu0 %v7119_v10 }
 0xfac   :  { %4280 = vmatmul.mubr.msk.bf16.vlgmr.msra.gmra.mrb[32].mxu0 %vm673_vm2, %v6162_v37 }
 0xfad   :  { %4600 = vmatpush3.bf16.msra.mxu0 %v6227_v60  ;;  %4603 = vmatprep.mubr.msk.bf16.mxu0 %vm5543_vm0, %v7119_v10 }
 0xfae   :  { %4601 = vmatprep.subr.bf16.mxu0 %v7119_v10 }
 0xfb1   :  { %4602 = vmatpush3.bf16.msra.mxu0 %v6233_v61 }
 0xfb2   :  { %4607 = vmatprep.subr.bf16.mxu0 %v7119_v10 }
0x1008   :  { %v1500_v16 = vpop.permute.xlu1 %1499 }
0x1009   :  { %v6238_v17 = vadd.f32 %v1500_v16, %v1492_v1 }
0x100b   :  { %5074 = vtanh.f32 %v6238_v17 }
0x1015   :  { %v5075_v19 = vpop.eup %5074 }
0x1016   :  { %1505 = vrot.lane.b32.xlu1 %v5075_v19, %s5545_s23 }
0x1067   :  { %v1665_v21 = vpop.f32.mrb[28].mxu0 }
0x1068   :  { %v1666_v24 = vadd.f32 %v6112_v2, %v1665_v21  ;;  %v4581_v25 = vpop.f32.mrb[29].mxu0 }
0x1069   :  { %v1668_v26 = vpop.f32.mrb[30].mxu0 }
0x106a   :  { %1671 = vst.msk [vmem:[%s7109_s15 + $0x8] sm:$0xff] %vm1209_vm3, %v1666_v24  ;;  %v4582_v37 = vpop.f32.mrb[31].mxu0 }
0x107f   :  { %v1754_v59 = vpop.f32.mrb[32].mxu0 }
0x1080   :  { %v1756_v56 = vpop.f32.mrb[33].mxu0  ;;  %v4778_v53 = vadd.f32 %v1754_v59, %v5942_v49 }
0x1081   :  { %v4779_v36 = vadd.f32 %v1756_v56, %v5915_v39  ;;  %v1758_v0 = vpop.f32.mrb[34].mxu0 }
0x1082   :  { %v1759_v41 = vpop.f32.mrb[35].mxu0  ;;  %v4281_v50 = vmul.f32 -1.442695, %v4778_v53 }
0x1083   :  { %5076 = vtanh.f32 %v4779_v36  ;;  %v4282_v1 = vmul.f32 -1.442695, %v4779_v36 }
0x1084   :  { %5078 = vpow2.f32 %v4281_v50 }
0x1088   :  { %v1506_v51 = vpop.permute.xlu1 %1505 }
0x1089   :  { %v1508_v47 = vmul.f32 %v5073_v35, %v1506_v51 }
0x108b   :  { %v1793_v14 = vpack.c.bf16 %v1508_v47, %v1508_v47 }
0x108d   :  { %v5077_v4 = vpop.eup %5076  ;;  %1795 = vrot.lane.b32.xlu1 %v1793_v14, %s5533_s30 }
0x108e   :  { %1778 = vrot.lane.b32.xlu0 %v5077_v4, %s5533_s30  ;;  %v5079_v40 = vpop.eup %5078 }
0x108f   :  { %v1769_v23 = vadd.f32 1.0, %v5079_v40 }
0x1091   :  { %5080 = vrcp.f32 %v1769_v23 }
0x109b   :  { %v5081_v31 = vpop.eup %5080 }
0x10ff   :  { %v1796_v38 = vpop.permute.xlu1 %1795 }
0x1100   :  { %v1779_v52 = vpop.permute.xlu0 %1778  ;;  %4588 = vmatmul.mubr.msk.bf16.vlgmr.msra.gmra.mrb[24].mxu1 %vm223_vm1, %v1796_v38  ;;  %4604 = vmatmul.mubr.msk.bf16.vlgmr.msra.gmra.mrb[36].mxu0 %vm223_vm1, %v1796_v38 }
0x1101   :  { %v1781_v35 = vmul.f32 %v5081_v31, %v1779_v52  ;;  %4592 = vmatpush3.bf16.msra.mxu1 %v6253_v42  ;;  %4595 = vmatprep.mubr.msk.bf16.mxu1 %vm5543_vm0, %v7119_v10 }
0x1102   :  { %4593 = vmatprep.subr.bf16.mxu1 %v7119_v10  ;;  %4608 = vmatpush3.bf16.msra.mxu0 %v6041_v54 }
0x1103   :  { %1783 = vrot.lane.b32.xlu0 %v1781_v35, %s5533_s30  ;;  %4609 = vmatprep.subr.bf16.mxu0 %v7119_v10 }
0x1104   :  { %4615 = vmatprep.mubr.msk.bf16.mxu0 %vm5543_vm0, %v7119_v10 }
0x1105   :  { %4594 = vmatpush3.bf16.msra.mxu1 %v6264_v44 }
0x1106   :  { %1974 = vmatprep.subr.bf16.mxu1 %v5946_v58  ;;  %4610 = vmatpush3.bf16.msra.mxu0 %v6047_v34  ;;  %v6278_v58 = vld [vmem:[#allocation9 + $0x4] ss:$8 sps:$4 sm:$0xff]  }
0x1107   :  { %4611 = vmatprep.subr.bf16.mxu0 %v7119_v10 }
0x110a   :  { %4612 = vmatpush3.bf16.msra.mxu0 %v6054_v48 }
0x110b   :  { %4613 = vmatprep.subr.bf16.mxu0 %v7119_v10 }
0x110c   :  { %4596 = vmatmul.mubr.msk.bf16.vlgmr.msra.gmra.mrb[24].mxu1 %vm223_vm1, %v6212_v15 }
0x110d   :  { %1975 = vmatpush1.bf16.msra.mxu1 %v5948_v63  ;;  %2006 = vmatprep.mubr.bf16.mxu1 %v7118_v57  ;;  %v1776_v63 = vmul.f32 %v5081_v31, %v6154_v55 }
0x110e   :  { %1976 = vmatprep.subr.bf16.mxu1 %v5950_v3  ;;  %4614 = vmatpush3.bf16.msra.mxu0 %v6062_v46 }
0x110f   :  { %2140 = vmatprep.subr.bf16.mxu0 %v6278_v58 }
0x1111   :  { %1977 = vmatpush1.bf16.msra.mxu1 %v5954_v5 }
0x1112   :  { %1978 = vmatprep.subr.bf16.mxu1 %v5957_v6 }
0x1115   :  { %1979 = vmatpush1.bf16.msra.mxu1 %v5960_v8 }
0x1116   :  { %1980 = vmatprep.subr.bf16.mxu1 %v5963_v9 }
0x1119   :  { %1981 = vmatpush1.bf16.msra.mxu1 %v5967_v12 }
0x111a   :  { %2015 = vmatprep.subr.bf16.mxu1 %v5973_v22  ;;  %v6297_v22 = vld [vmem:[%s7100_s6] ss:$0 sm:$0xff] }
0x1175   :  { %v1784_v3 = vpop.permute.xlu0 %1783 }
0x1176   :  { %v6288_v15 = vadd.f32 %v1784_v3, %v1776_v63 }
0x1178   :  { %5082 = vtanh.f32 %v6288_v15 }
0x1179   :  { %5084 = vpow2.f32 %v4282_v1 }
0x1182   :  { %v5083_v62 = vpop.eup %5082 }
0x1183   :  { %1789 = vrot.lane.b32.xlu0 %v5083_v62, %s5533_s30  ;;  %v5085_v24 = vpop.eup %5084 }
0x1184   :  { %v1770_v25 = vadd.f32 1.0, %v5085_v24 }
0x11d3   :  { %v6292_v5 = vpop.f32.mrb[36].mxu0 }
0x11d4   :  { %v4605_v6 = vpop.f32.mrb[37].mxu0 }
0x11d5   :  { %v1942_v8 = vpop.f32.mrb[38].mxu0 }
0x11d6   :  { %v4606_v9 = vpop.f32.mrb[39].mxu0 }
0x11df   :  { %v1874_v12 = vpop.f32.mrb[24].mxu1 }
0x11e0   :  { %v4780_v55 = vadd.f32 %v6297_v22, %v1874_v12  ;;  %v4597_v16 = vpop.f32.mrb[25].mxu1 }
0x11e1   :  { %v1877_v19 = vpop.f32.mrb[26].mxu1 }
0x11e2   :  { %5086 = vtanh.f32 %v4780_v55  ;;  %v4598_v21 = vpop.f32.mrb[27].mxu1 }
0x11e3   :  { %5088 = vrcp.f32 %v1770_v25 }
0x11ec   :  { %v5087_v26 = vpop.eup %5086 }
0x11ed   :  { %1890 = vrot.lane.b32.xlu1 %v5087_v26, %s5545_s23  ;;  %v5089_v37 = vpop.eup %5088 }
0x11f5   :  { %v1790_v59 = vpop.permute.xlu0 %1789 }
0x11f6   :  { %v1792_v56 = vmul.f32 %v5089_v37, %v1790_v59 }
0x11f8   :  { %v6301_v36 = vpack.c.bf16 %v1792_v56, %v1792_v56 }
0x11fa   :  { %4288 = vmatmul.mubr.msk.bf16.vlgmr.msra.gmra.mrb[28].mxu1 %vm673_vm2, %v6301_v36 }
0x11fb   :  { %2016 = vmatpush1.bf16.msra.mxu1 %v5982_v13  ;;  %2047 = vmatprep.mubr.bf16.mxu1 %v7118_v57  ;;  %v6316_v13 = vld [vmem:[#allocation6] sm:$0xff]  }
0x11fc   :  { %2017 = vmatprep.subr.bf16.mxu1 %v5986_v43  ;;  %v6322_v43 = vld [vmem:[#allocation6 + $0x8] sm:$0xff]  }
0x11ff   :  { %2018 = vmatpush1.bf16.msra.mxu1 %v5992_v18  ;;  %v4285_v18 = vmul.f32 -1.442695, %v4780_v55  ;;  %v1945_v55 = vadd.f32 %v6292_v5, %v7121_v30 }
0x1200   :  { %2019 = vmatprep.subr.bf16.mxu1 %v5996_v20 }
0x1201   :  { %5090 = vpow2.f32 %v4285_v18  ;;  %v4287_v24 = vmul.f32 -1.442695, %v1945_v55 }
0x1203   :  { %2020 = vmatpush1.bf16.msra.mxu1 %v5999_v27 }
0x1204   :  { %2021 = vmatprep.subr.bf16.mxu1 %v6002_v28 }
0x1207   :  { %2022 = vmatpush1.bf16.msra.mxu1 %v6005_v32 }
0x1208   :  { %4619 = vmatprep.subr.bf16.mxu1 %v7119_v10 }
0x120a   :  { %4289 = vmatmul.mubr.msk.bf16.vlgmr.msra.gmra.mrb[28].mxu1 %vm673_vm2, %v6202_v7 }
0x120b   :  { %4620 = vmatpush3.bf16.msra.mxu1 %v6316_v13  ;;  %4623 = vmatprep.mubr.msk.bf16.mxu1 %vm5543_vm0, %v7119_v10  ;;  %v5091_v20 = vpop.eup %5090 }
0x120c   :  { %4621 = vmatprep.subr.bf16.mxu1 %v7119_v10  ;;  %v1884_v27 = vadd.f32 1.0, %v5091_v20 }
0x120e   :  { %5092 = vrcp.f32 %v1884_v27 }
0x120f   :  { %4622 = vmatpush3.bf16.msra.mxu1 %v6322_v43 }
0x1210   :  { %4627 = vmatprep.subr.bf16.mxu1 %v7119_v10 }
0x1218   :  { %v5093_v28 = vpop.eup %5092 }
0x1219   :  { %v1888_v0 = vmul.f32 %v5093_v28, %v6185_v33 }
0x125f   :  { %v1891_v32 = vpop.permute.xlu1 %1890 }
0x1260   :  { %v1893_v7 = vmul.f32 %v5093_v28, %v1891_v32  ;;  %v6349_v32 = vld [vmem:[#allocation9] ss:$8 sps:$4 sm:$0xff]  }
0x1262   :  { %1895 = vrot.lane.b32.xlu1 %v1893_v7, %s5545_s23  ;;  %v6354_v7 = vld [vmem:[#allocation9 + $0x14] ss:$8 sps:$4 sm:$0xff]  }
0x12d4   :  { %v1896_v41 = vpop.permute.xlu1 %1895 }
0x12d5   :  { %v6328_v51 = vadd.f32 %v1896_v41, %v1888_v0  ;;  %v6357_v0 = vld [vmem:[#allocation9 + $0x10] ss:$8 sps:$4 sm:$0xff]   ;;  %v6363_v41 = vld [vmem:[%s7102_s8 + $0x4] ss:$8 sps:$4 sm:$0xff]  }
0x12d7   :  { %5094 = vtanh.f32 %v6328_v51 }
0x12dd   :  { %v2049_v47 = vpop.f32.mrb[28].mxu1 }
0x12de   :  { %v2051_v14 = vpop.f32.mrb[29].mxu1  ;;  %v4781_v33 = vadd.f32 %v2049_v47, %v6034_v11 }
0x12df   :  { %v4782_v4 = vadd.f32 %v2051_v14, %v6027_v45  ;;  %v2053_v53 = vpop.f32.mrb[30].mxu1  ;;  %v6373_v14 = vld [vmem:[%s7102_s8] ss:$8 sps:$4 sm:$0xff]  }
0x12e0   :  { %v2054_v50 = vpop.f32.mrb[31].mxu1  ;;  %v4290_v38 = vmul.f32 -1.442695, %v4781_v33  ;;  %v6386_v53 = vld [vmem:[%s7102_s8 + $0x10] ss:$8 sps:$4 sm:$0xff]  }
0x12e1   :  { %v5095_v40 = vpop.eup %5094  ;;  %5096 = vtanh.f32 %v4782_v4  ;;  %v4291_v21 = vmul.f32 -1.442695, %v4782_v4  ;;  %v6380_v4 = vld [vmem:[%s7102_s8 + $0x14] ss:$8 sps:$4 sm:$0xff]   ;;  %v6392_v50 = vld [vmem:[%s7102_s8 + $0x24] ss:$8 sps:$4 sm:$0xff]  }
0x12e2   :  { %1901 = vrot.lane.b32.xlu1 %v5095_v40, %s5545_s23  ;;  %5098 = vpow2.f32 %v4290_v38  ;;  %v6398_v40 = vld [vmem:[%s7102_s8 + $0x20] ss:$8 sps:$4 sm:$0xff]   ;;  %v6410_v33 = vld [vmem:[%s7102_s8 + $0x30] ss:$8 sps:$4 sm:$0xff]  }
0x12eb   :  { %v5097_v23 = vpop.eup %5096 }
0x12ec   :  { %2073 = vrot.lane.b32.xlu0 %v5097_v23, %s5533_s30  ;;  %v5099_v31 = vpop.eup %5098  ;;  %v6404_v23 = vld [vmem:[%s7102_s8 + $0x34] ss:$8 sps:$4 sm:$0xff]  }
0x12ed   :  { %v2064_v52 = vadd.f32 1.0, %v5099_v31 }
0x12ef   :  { %5100 = vrcp.f32 %v2064_v52 }
0x12f9   :  { %v5101_v62 = vpop.eup %5100 }
0x12fa   :  { %v2071_v1 = vmul.f32 %v5101_v62, %v6195_v29 }
0x1354   :  { %v1902_v35 = vpop.permute.xlu1 %1901 }
0x1355   :  { %v1904_v63 = vmul.f32 %v5093_v28, %v1902_v35 }
0x1357   :  { %v2133_v3 = vpack.c.bf16 %v1904_v63, %v1904_v63 }
0x1359   :  { %2135 = vrot.lane.b32.xlu1 %v2133_v3, %s5533_s30 }
0x135e   :  { %v2074_v6 = vpop.permute.xlu0 %2073 }
0x135f   :  { %v2076_v8 = vmul.f32 %v5101_v62, %v2074_v6 }
0x1361   :  { %2078 = vrot.lane.b32.xlu0 %v2076_v8, %s5533_s30 }
0x13cb   :  { %v6366_v47 = vpop.permute.xlu1 %2135 }
0x13d3   :  { %v2079_v9 = vpop.permute.xlu0 %2078 }
0x13d4   :  { %v6338_v12 = vadd.f32 %v2079_v9, %v2071_v1 }
0x13d6   :  { %5102 = vtanh.f32 %v6338_v12 }
0x13d7   :  { %5104 = vtanh.f32 %v1945_v55 }
0x13d8   :  { %5106 = vpow2.f32 %v4291_v21 }
0x13d9   :  { %5108 = vpow2.f32 %v4287_v24 }
0x13e0   :  { %v5103_v16 = vpop.eup %5102 }
0x13e1   :  { %2084 = vrot.lane.b32.xlu0 %v5103_v16, %s5533_s30  ;;  %v5105_v19 = vpop.eup %5104 }
0x13e2   :  { %v5107_v29 = vpop.eup %5106 }
0x13e3   :  { %v2065_v25 = vadd.f32 1.0, %v5107_v29  ;;  %v5109_v26 = vpop.eup %5108 }
0x13e4   :  { %v1949_v37 = vadd.f32 1.0, %v5109_v26 }
0x13e5   :  { %1955 = vrot.lane.b32.xlu0 %v5105_v19, %s5545_s23  ;;  %5110 = vrcp.f32 %v2065_v25 }
0x13e6   :  { %5112 = vrcp.f32 %v1949_v37 }
0x13ef   :  { %v5111_v5 = vpop.eup %5110 }
0x13f0   :  { %v5113_v20 = vpop.eup %5112 }
0x13f1   :  { %v1953_v38 = vmul.f32 %v5113_v20, %v6238_v17 }
0x1453   :  { %v2085_v59 = vpop.permute.xlu0 %2084 }
0x1454   :  { %v2087_v56 = vmul.f32 %v5111_v5, %v2085_v59 }
0x1456   :  { %v6345_v18 = vpack.c.bf16 %v2087_v56, %v2087_v56 }
0x1457   :  { %v1956_v27 = vpop.permute.xlu0 %1955 }
0x1458   :  { %v1958_v28 = vmul.f32 %v5113_v20, %v1956_v27  ;;  %4616 = vmatmul.mubr.msk.bf16.vlgmr.msra.gmra.mrb[40].mxu0 %vm673_vm2, %v6345_v18  ;;  %v6464_v27 = vld [vmem:[#allocation10 + $0x14] ss:$8 sps:$4 sm:$0xff]  }
0x1459   :  { %2141 = vmatpush1.bf16.msra.mxu0 %v6349_v32  ;;  %2172 = vmatprep.mubr.bf16.mxu0 %v7118_v57 }
0x145a   :  { %1960 = vrot.lane.b32.xlu1 %v1958_v28, %s5545_s23  ;;  %2142 = vmatprep.subr.bf16.mxu0 %v6354_v7  ;;  %v6475_v28 = vld [vmem:[#allocation10 + $0x20] ss:$8 sps:$4 sm:$0xff]  }
0x145d   :  { %2143 = vmatpush1.bf16.msra.mxu0 %v6357_v0 }
0x145e   :  { %2181 = vmatprep.subr.bf16.mxu0 %v6363_v41 }
0x1460   :  { %4293 = vmatmul.mubr.msk.bf16.vlgmr.msra.gmra.mrb[44].mxu0 %vm223_vm1, %v6366_v47 }
0x1461   :  { %2182 = vmatpush1.bf16.msra.mxu0 %v6373_v14  ;;  %2213 = vmatprep.mubr.bf16.mxu0 %v7118_v57 }
0x1462   :  { %2183 = vmatprep.subr.bf16.mxu0 %v6380_v4 }
0x1465   :  { %2184 = vmatpush1.bf16.msra.mxu0 %v6386_v53 }
0x1466   :  { %2185 = vmatprep.subr.bf16.mxu0 %v6392_v50 }
0x1469   :  { %2186 = vmatpush1.bf16.msra.mxu0 %v6398_v40 }
0x146a   :  { %2187 = vmatprep.subr.bf16.mxu0 %v6404_v23 }
0x146d   :  { %2188 = vmatpush1.bf16.msra.mxu0 %v6410_v33 }
0x146e   :  { %4635 = vmatprep.subr.bf16.mxu0 %v7119_v10 }
0x1470   :  { %4294 = vmatmul.mubr.msk.bf16.vlgmr.msra.gmra.mrb[44].mxu0 %vm673_vm2, %v6301_v36 }
0x1471   :  { %4636 = vmatpush3.bf16.msra.mxu0 %v6227_v60  ;;  %4639 = vmatprep.mubr.msk.bf16.mxu0 %vm5543_vm0, %v7119_v10 }
0x1472   :  { %4637 = vmatprep.subr.bf16.mxu0 %v7119_v10 }
0x1475   :  { %4638 = vmatpush3.bf16.msra.mxu0 %v6233_v61 }
0x1476   :  { %4643 = vmatprep.subr.bf16.mxu0 %v7119_v10 }
0x14cc   :  { %v1961_v31 = vpop.permute.xlu1 %1960 }
0x14cd   :  { %v6423_v52 = vadd.f32 %v1961_v31, %v1953_v38  ;;  %v6481_v38 = vld [vmem:[#allocation10 + $0x30] ss:$8 sps:$4 sm:$0xff]  }
0x14cf   :  { %5114 = vtanh.f32 %v6423_v52 }
0x14d9   :  { %v5115_v35 = vpop.eup %5114 }
0x14da   :  { %1966 = vrot.lane.b32.xlu1 %v5115_v35, %s5545_s23 }
0x152b   :  { %v2126_v36 = vpop.f32.mrb[40].mxu0 }
0x152c   :  { %v2127_v63 = vadd.f32 %v6112_v2, %v2126_v36  ;;  %v4617_v3 = vpop.f32.mrb[41].mxu0 }
0x152d   :  { %v2129_v62 = vpop.f32.mrb[42].mxu0 }
0x152e   :  { %2132 = vst.msk [vmem:[%s7109_s15 + $0x10] sm:$0xff] %vm1209_vm3, %v2127_v63  ;;  %v4618_v6 = vpop.f32.mrb[43].mxu0 }
0x1543   :  { %v2215_v17 = vpop.f32.mrb[44].mxu0 }
0x1544   :  { %v2217_v8 = vpop.f32.mrb[45].mxu0  ;;  %v4783_v24 = vadd.f32 %v2215_v17, %v5942_v49 }
0x1545   :  { %v6433_v1 = vadd.f32 %v2217_v8, %v5915_v39  ;;  %v2219_v9 = vpop.f32.mrb[46].mxu0 }
0x1546   :  { %v2220_v55 = vpop.f32.mrb[47].mxu0  ;;  %v4295_v29 = vmul.f32 -1.442695, %v4783_v24 }
0x1547   :  { %5116 = vtanh.f32 %v6433_v1  ;;  %v4296_v17 = vmul.f32 -1.442695, %v6433_v1  ;;  %v6501_v1 = vld [vmem:[#allocation12] ss:$8 sps:$4 sm:$0xff]  }
0x1548   :  { %5118 = vpow2.f32 %v4295_v29 }
0x154c   :  { %v1967_v16 = vpop.permute.xlu1 %1966 }
0x154d   :  { %v1969_v19 = vmul.f32 %v5113_v20, %v1967_v16  ;;  %v6451_v20 = vld [vmem:[#allocation10 + $0x4] ss:$8 sps:$4 sm:$0xff]  }
0x154f   :  { %v2254_v2 = vpack.c.bf16 %v1969_v19, %v1969_v19 }
0x1551   :  { %v5117_v21 = vpop.eup %5116  ;;  %2256 = vrot.lane.b32.xlu1 %v2254_v2, %s5533_s30 }
0x1552   :  { %2239 = vrot.lane.b32.xlu0 %v5117_v21, %s5533_s30  ;;  %v5119_v25 = vpop.eup %5118 }
0x1553   :  { %v2230_v26 = vadd.f32 1.0, %v5119_v25 }
0x1555   :  { %5120 = vrcp.f32 %v2230_v26 }
0x155f   :  { %v5121_v5 = vpop.eup %5120 }
0x1560   :  { %v2237_v31 = vmul.f32 %v5121_v5, %v6288_v15 }
0x15c3   :  { %v2257_v37 = vpop.permute.xlu1 %2256 }
0x15c4   :  { %v2240_v59 = vpop.permute.xlu0 %2239  ;;  %4624 = vmatmul.mubr.msk.bf16.vlgmr.msra.gmra.mrb[32].mxu1 %vm223_vm1, %v2257_v37  ;;  %4640 = vmatmul.mubr.msk.bf16.vlgmr.msra.gmra.mrb[48].mxu0 %vm223_vm1, %v2257_v37 }
0x15c5   :  { %v2242_v56 = vmul.f32 %v5121_v5, %v2240_v59  ;;  %4628 = vmatpush3.bf16.msra.mxu1 %v6253_v42  ;;  %4631 = vmatprep.mubr.msk.bf16.mxu1 %vm5543_vm0, %v7119_v10  ;;  %v6505_v5 = vld [vmem:[#allocation12 + $0x14] ss:$8 sps:$4 sm:$0xff]   ;;  %v6508_v59 = vld [vmem:[#allocation12 + $0x10] ss:$8 sps:$4 sm:$0xff]  }
0x15c6   :  { %4629 = vmatprep.subr.bf16.mxu1 %v7119_v10  ;;  %4644 = vmatpush3.bf16.msra.mxu0 %v6041_v54  ;;  %v6460_v54 = vld [vmem:[#allocation10] ss:$8 sps:$4 sm:$0xff]  }
0x15c7   :  { %2244 = vrot.lane.b32.xlu0 %v2242_v56, %s5533_s30  ;;  %4645 = vmatprep.subr.bf16.mxu0 %v7119_v10  ;;  %v6511_v56 = vld [vmem:[#allocation12 + $0x24] ss:$8 sps:$4 sm:$0xff]  }
0x15c8   :  { %4651 = vmatprep.mubr.msk.bf16.mxu0 %vm5543_vm0, %v7119_v10 }
0x15c9   :  { %4630 = vmatpush3.bf16.msra.mxu1 %v6264_v44 }
0x15ca   :  { %2435 = vmatprep.subr.bf16.mxu1 %v6451_v20  ;;  %4646 = vmatpush3.bf16.msra.mxu0 %v6047_v34  ;;  %v6469_v34 = vld [vmem:[#allocation10 + $0x10] ss:$8 sps:$4 sm:$0xff]  }
0x15cb   :  { %4647 = vmatprep.subr.bf16.mxu0 %v7119_v10 }
0x15ce   :  { %4648 = vmatpush3.bf16.msra.mxu0 %v6054_v48  ;;  %v6472_v48 = vld [vmem:[#allocation10 + $0x24] ss:$8 sps:$4 sm:$0xff]  }
0x15cf   :  { %4649 = vmatprep.subr.bf16.mxu0 %v7119_v10 }
0x15d0   :  { %4632 = vmatmul.mubr.msk.bf16.vlgmr.msra.gmra.mrb[32].mxu1 %vm223_vm1, %v6366_v47  ;;  %v6478_v47 = vld [vmem:[#allocation10 + $0x34] ss:$8 sps:$4 sm:$0xff]  }
0x15d1   :  { %2436 = vmatpush1.bf16.msra.mxu1 %v6460_v54  ;;  %2467 = vmatprep.mubr.bf16.mxu1 %v7118_v57 }
0x15d2   :  { %2437 = vmatprep.subr.bf16.mxu1 %v6464_v27  ;;  %4650 = vmatpush3.bf16.msra.mxu0 %v6062_v46  ;;  %v6484_v46 = vld [vmem:[#allocation12 + $0x4] ss:$8 sps:$4 sm:$0xff]  }
0x15d3   :  { %2601 = vmatprep.subr.bf16.mxu0 %v6278_v58 }
0x15d5   :  { %2438 = vmatpush1.bf16.msra.mxu1 %v6469_v34 }
0x15d6   :  { %2439 = vmatprep.subr.bf16.mxu1 %v6472_v48 }
0x15d9   :  { %2440 = vmatpush1.bf16.msra.mxu1 %v6475_v28 }
0x15da   :  { %2441 = vmatprep.subr.bf16.mxu1 %v6478_v47 }
0x15dd   :  { %2442 = vmatpush1.bf16.msra.mxu1 %v6481_v38 }
0x15de   :  { %2476 = vmatprep.subr.bf16.mxu1 %v6484_v46 }
0x1639   :  { %v2245_v35 = vpop.permute.xlu0 %2244 }
0x163a   :  { %v6488_v36 = vadd.f32 %v2245_v35, %v2237_v31  ;;  %v6514_v31 = vld [vmem:[#allocation12 + $0x20] ss:$8 sps:$4 sm:$0xff]   ;;  %v6517_v35 = vld [vmem:[#allocation12 + $0x34] ss:$8 sps:$4 sm:$0xff]  }
0x163c   :  { %5122 = vtanh.f32 %v6488_v36 }
0x163d   :  { %5124 = vpow2.f32 %v4296_v17 }
0x1646   :  { %v5123_v63 = vpop.eup %5122 }
0x1647   :  { %2250 = vrot.lane.b32.xlu0 %v5123_v63, %s5533_s30  ;;  %v5125_v2 = vpop.eup %5124  ;;  %v6520_v63 = vld [vmem:[#allocation12 + $0x30] ss:$8 sps:$4 sm:$0xff]  }
0x1648   :  { %v2231_v21 = vadd.f32 1.0, %v5125_v2 }
0x1697   :  { %v6492_v3 = vpop.f32.mrb[48].mxu0 }
0x1698   :  { %v4641_v62 = vpop.f32.mrb[49].mxu0 }
0x1699   :  { %v2403_v6 = vpop.f32.mrb[50].mxu0 }
0x169a   :  { %v4642_v8 = vpop.f32.mrb[51].mxu0 }
0x16a3   :  { %v2335_v9 = vpop.f32.mrb[32].mxu1 }
0x16a4   :  { %v4785_v55 = vadd.f32 %v6297_v22, %v2335_v9  ;;  %v4633_v15 = vpop.f32.mrb[33].mxu1 }
0x16a5   :  { %v2338_v16 = vpop.f32.mrb[34].mxu1 }
0x16a6   :  { %5126 = vtanh.f32 %v4785_v55  ;;  %v4634_v19 = vpop.f32.mrb[35].mxu1  ;;  %v4299_v62 = vmul.f32 -1.442695, %v4785_v55 }
0x16a7   :  { %5128 = vrcp.f32 %v2231_v21 }
0x16a8   :  { %5130 = vpow2.f32 %v4299_v62 }
0x16b0   :  { %v5127_v24 = vpop.eup %5126 }
0x16b1   :  { %2351 = vrot.lane.b32.xlu1 %v5127_v24, %s5545_s23  ;;  %v5129_v29 = vpop.eup %5128 }
0x16b2   :  { %v5131_v6 = vpop.eup %5130 }
0x16b3   :  { %v2345_v17 = vadd.f32 1.0, %v5131_v6 }
0x16b5   :  { %5132 = vrcp.f32 %v2345_v17 }
0x16b9   :  { %v2251_v25 = vpop.permute.xlu0 %2250 }
0x16ba   :  { %v2253_v26 = vmul.f32 %v5129_v29, %v2251_v25 }
0x16bc   :  { %v6497_v37 = vpack.c.bf16 %v2253_v26, %v2253_v26 }
0x16be   :  { %4302 = vmatmul.mubr.msk.bf16.vlgmr.msra.gmra.mrb[36].mxu1 %vm673_vm2, %v6497_v37 }
0x16bf   :  { %2477 = vmatpush1.bf16.msra.mxu1 %v6501_v1  ;;  %2508 = vmatprep.mubr.bf16.mxu1 %v7118_v57  ;;  %v5133_v8 = vpop.eup %5132 }
0x16c0   :  { %2478 = vmatprep.subr.bf16.mxu1 %v6505_v5 }
0x16c3   :  { %2479 = vmatpush1.bf16.msra.mxu1 %v6508_v59 }
0x16c4   :  { %2480 = vmatprep.subr.bf16.mxu1 %v6511_v56 }
0x16c7   :  { %2481 = vmatpush1.bf16.msra.mxu1 %v6514_v31 }
0x16c8   :  { %2482 = vmatprep.subr.bf16.mxu1 %v6517_v35 }
0x16cb   :  { %2483 = vmatpush1.bf16.msra.mxu1 %v6520_v63 }
0x16cc   :  { %4655 = vmatprep.subr.bf16.mxu1 %v7119_v10 }
0x16ce   :  { %4303 = vmatmul.mubr.msk.bf16.vlgmr.msra.gmra.mrb[36].mxu1 %vm673_vm2, %v6345_v18  ;;  %v2349_v18 = vmul.f32 %v5133_v8, %v6328_v51 }
0x16cf   :  { %4656 = vmatpush3.bf16.msra.mxu1 %v6316_v13  ;;  %4659 = vmatprep.mubr.msk.bf16.mxu1 %vm5543_vm0, %v7119_v10 }
0x16d0   :  { %4657 = vmatprep.subr.bf16.mxu1 %v7119_v10 }
0x16d3   :  { %4658 = vmatpush3.bf16.msra.mxu1 %v6322_v43 }
0x16d4   :  { %4663 = vmatprep.subr.bf16.mxu1 %v7119_v10 }
0x1723   :  { %v2352_v9 = vpop.permute.xlu1 %2351 }
0x1724   :  { %v2354_v15 = vmul.f32 %v5133_v8, %v2352_v9 }
0x1726   :  { %2356 = vrot.lane.b32.xlu1 %v2354_v15, %s5545_s23 }
0x1798   :  { %v2357_v16 = vpop.permute.xlu1 %2356 }
0x1799   :  { %v6534_v19 = vadd.f32 %v2357_v16, %v2349_v18 }
0x179b   :  { %5134 = vtanh.f32 %v6534_v19 }
0x17a1   :  { %v2510_v2 = vpop.f32.mrb[36].mxu1 }
0x17a2   :  { %v2512_v21 = vpop.f32.mrb[37].mxu1  ;;  %v4786_v51 = vadd.f32 %v2510_v2, %v6034_v11  ;;  %v2406_v2 = vadd.f32 %v6492_v3, %v7121_v30 }
0x17a3   :  { %v4787_v55 = vadd.f32 %v2512_v21, %v6027_v45  ;;  %v2514_v24 = vpop.f32.mrb[38].mxu1 }
0x17a4   :  { %v2515_v29 = vpop.f32.mrb[39].mxu1  ;;  %v4304_v62 = vmul.f32 -1.442695, %v4786_v51 }
0x17a5   :  { %v5135_v25 = vpop.eup %5134  ;;  %5136 = vtanh.f32 %v4787_v55 }
0x17a6   :  { %2362 = vrot.lane.b32.xlu1 %v5135_v25, %s5545_s23  ;;  %5138 = vpow2.f32 %v4304_v62  ;;  %v4305_v62 = vmul.f32 -1.442695, %v4787_v55 }
0x17af   :  { %v5137_v26 = vpop.eup %5136 }
0x17b0   :  { %2534 = vrot.lane.b32.xlu0 %v5137_v26, %s5533_s30  ;;  %v5139_v6 = vpop.eup %5138 }
0x17b1   :  { %v2525_v17 = vadd.f32 1.0, %v5139_v6  ;;  %v4301_v6 = vmul.f32 -1.442695, %v2406_v2 }
0x17b3   :  { %5140 = vrcp.f32 %v2525_v17 }
0x17bd   :  { %v5141_v16 = vpop.eup %5140 }
0x17be   :  { %v2532_v29 = vmul.f32 %v5141_v16, %v6338_v12 }
0x1818   :  { %v2363_v9 = vpop.permute.xlu1 %2362 }
0x1819   :  { %v2365_v15 = vmul.f32 %v5133_v8, %v2363_v9 }
0x181b   :  { %v2594_v18 = vpack.c.bf16 %v2365_v15, %v2365_v15 }
0x181d   :  { %2596 = vrot.lane.b32.xlu1 %v2594_v18, %s5533_s30 }
0x1822   :  { %v2535_v21 = vpop.permute.xlu0 %2534 }
0x1823   :  { %v2537_v24 = vmul.f32 %v5141_v16, %v2535_v21 }
0x1825   :  { %2539 = vrot.lane.b32.xlu0 %v2537_v24, %s5533_s30 }
0x188f   :  { %v6561_v55 = vpop.permute.xlu1 %2596 }
0x1897   :  { %v2540_v25 = vpop.permute.xlu0 %2539 }
0x1898   :  { %v6544_v26 = vadd.f32 %v2540_v25, %v2532_v29 }
0x189a   :  { %5142 = vtanh.f32 %v6544_v26 }
0x189b   :  { %5144 = vtanh.f32 %v2406_v2 }
0x189c   :  { %5146 = vpow2.f32 %v4305_v62 }
0x189d   :  { %5148 = vpow2.f32 %v4301_v6 }
0x18a4   :  { %v5143_v8 = vpop.eup %5142 }
0x18a5   :  { %2545 = vrot.lane.b32.xlu0 %v5143_v8, %s5533_s30  ;;  %v5145_v51 = vpop.eup %5144 }
0x18a6   :  { %v5147_v12 = vpop.eup %5146 }
0x18a7   :  { %v2526_v17 = vadd.f32 1.0, %v5147_v12  ;;  %v5149_v9 = vpop.eup %5148 }
0x18a8   :  { %v2410_v15 = vadd.f32 1.0, %v5149_v9 }
0x18a9   :  { %2416 = vrot.lane.b32.xlu0 %v5145_v51, %s5545_s23  ;;  %5150 = vrcp.f32 %v2526_v17 }
0x18aa   :  { %5152 = vrcp.f32 %v2410_v15 }
0x18b3   :  { %v5151_v3 = vpop.eup %5150 }
0x18b4   :  { %v5153_v24 = vpop.eup %5152 }
0x18b5   :  { %v2414_v2 = vmul.f32 %v5153_v24, %v6423_v52 }
0x1917   :  { %v2546_v18 = vpop.permute.xlu0 %2545 }
0x1918   :  { %v2548_v16 = vmul.f32 %v5151_v3, %v2546_v18 }
0x191a   :  { %v6551_v21 = vpack.c.bf16 %v2548_v16, %v2548_v16 }
0x191b   :  { %v2417_v29 = vpop.permute.xlu0 %2416 }
0x191c   :  { %v2419_v25 = vmul.f32 %v5153_v24, %v2417_v29  ;;  %4652 = vmatmul.mubr.msk.bf16.vlgmr.msra.gmra.mrb[52].mxu0 %vm673_vm2, %v6551_v21 }
0x191d   :  { %2602 = vmatpush1.bf16.msra.mxu0 %v6349_v32  ;;  %2633 = vmatprep.mubr.bf16.mxu0 %v7118_v57 }
0x191e   :  { %2421 = vrot.lane.b32.xlu1 %v2419_v25, %s5545_s23  ;;  %2603 = vmatprep.subr.bf16.mxu0 %v6354_v7 }
0x1921   :  { %2604 = vmatpush1.bf16.msra.mxu0 %v6357_v0 }
0x1922   :  { %2642 = vmatprep.subr.bf16.mxu0 %v6363_v41 }
0x1924   :  { %4307 = vmatmul.mubr.msk.bf16.vlgmr.msra.gmra.mrb[56].mxu0 %vm223_vm1, %v6561_v55 }
0x1925   :  { %2643 = vmatpush1.bf16.msra.mxu0 %v6373_v14  ;;  %2674 = vmatprep.mubr.bf16.mxu0 %v7118_v57 }
0x1926   :  { %2644 = vmatprep.subr.bf16.mxu0 %v6380_v4 }
0x1929   :  { %2645 = vmatpush1.bf16.msra.mxu0 %v6386_v53 }
0x192a   :  { %2646 = vmatprep.subr.bf16.mxu0 %v6392_v50 }
0x192d   :  { %2647 = vmatpush1.bf16.msra.mxu0 %v6398_v40 }
0x192e   :  { %2648 = vmatprep.subr.bf16.mxu0 %v6404_v23 }
0x1931   :  { %2649 = vmatpush1.bf16.msra.mxu0 %v6410_v33 }
0x1932   :  { %4671 = vmatprep.subr.bf16.mxu0 %v7119_v10 }
0x1934   :  { %4308 = vmatmul.mubr.msk.bf16.vlgmr.msra.gmra.mrb[56].mxu0 %vm673_vm2, %v6497_v37  ;;  %v6590_v37 = vld [vmem:[%s7108_s14] ss:$0 sm:$0xff] }
0x1935   :  { %4672 = vmatpush3.bf16.msra.mxu0 %v6227_v60  ;;  %4675 = vmatprep.mubr.msk.bf16.mxu0 %vm5543_vm0, %v7119_v10 }
0x1936   :  { %4673 = vmatprep.subr.bf16.mxu0 %v7119_v10 }
0x1939   :  { %4674 = vmatpush3.bf16.msra.mxu0 %v6233_v61 }
0x193a   :  { %4679 = vmatprep.subr.bf16.mxu0 %v7119_v10 }
0x1990   :  { %v2422_v8 = vpop.permute.xlu1 %2421 }
0x1991   :  { %v6583_v51 = vadd.f32 %v2422_v8, %v2414_v2 }
0x1993   :  { %5154 = vtanh.f32 %v6583_v51 }
0x199d   :  { %v5155_v62 = vpop.eup %5154 }
0x199e   :  { %2427 = vrot.lane.b32.xlu1 %v5155_v62, %s5545_s23 }
0x19ef   :  { %v2587_v60 = vpop.f32.mrb[52].mxu0 }
0x19f0   :  { %v2588_v61 = vadd.f32 %v6590_v37, %v2587_v60  ;;  %v4653_v6 = vpop.f32.mrb[53].mxu0 }
0x19f1   :  { %v2590_v12 = vpop.f32.mrb[54].mxu0 }
0x19f2   :  { %2593 = vst.msk [vmem:[%s7109_s15 + $0x18] sm:$0xff] %vm1209_vm3, %v2588_v61  ;;  %v4654_v52 = vpop.f32.mrb[55].mxu0 }
0x1a07   :  { %v2676_v17 = vpop.f32.mrb[56].mxu0 }
0x1a08   :  { %v2678_v9 = vpop.f32.mrb[57].mxu0  ;;  %v4788_v8 = vadd.f32 %v2676_v17, %v5942_v49  ;;  %v6610_v17 = vld [vmem:[%s7107_s13] sm:$0xff]  }
0x1a09   :  { %v4789_v15 = vadd.f32 %v2678_v9, %v5915_v39  ;;  %v2680_v3 = vpop.f32.mrb[58].mxu0  ;;  %v6629_v9 = vld [vmem:[%s7107_s13 + $0x10] sm:$0xff]  }
0x1a0a   :  { %v2681_v18 = vpop.f32.mrb[59].mxu0  ;;  %v4309_v62 = vmul.f32 -1.442695, %v4788_v8 }
0x1a0b   :  { %5156 = vtanh.f32 %v4789_v15 }
0x1a0c   :  { %5158 = vpow2.f32 %v4309_v62 }
0x1a10   :  { %v2428_v16 = vpop.permute.xlu1 %2427 }
0x1a11   :  { %v2430_v29 = vmul.f32 %v5153_v24, %v2428_v16 }
0x1a13   :  { %v2715_v25 = vpack.c.bf16 %v2430_v29, %v2430_v29 }
0x1a15   :  { %v5157_v2 = vpop.eup %5156  ;;  %2717 = vrot.lane.b32.xlu1 %v2715_v25, %s5533_s30 }
0x1a16   :  { %2700 = vrot.lane.b32.xlu0 %v5157_v2, %s5533_s30  ;;  %v5159_v60 = vpop.eup %5158  ;;  %v4310_v2 = vmul.f32 -1.442695, %v4789_v15 }
0x1a17   :  { %v2691_v61 = vadd.f32 1.0, %v5159_v60 }
0x1a19   :  { %5160 = vrcp.f32 %v2691_v61 }
0x1a23   :  { %v5161_v12 = vpop.eup %5160 }
0x1a87   :  { %v2718_v6 = vpop.permute.xlu1 %2717 }
0x1a88   :  { %v2701_v52 = vpop.permute.xlu0 %2700  ;;  %4660 = vmatmul.mubr.msk.bf16.vlgmr.msra.gmra.mrb[40].mxu1 %vm223_vm1, %v2718_v6  ;;  %4676 = vmatmul.mubr.msk.bf16.vlgmr.msra.gmra.mrb[60].mxu0 %vm223_vm1, %v2718_v6 }
0x1a89   :  { %v2703_v24 = vmul.f32 %v5161_v12, %v2701_v52  ;;  %4664 = vmatpush3.bf16.msra.mxu1 %v6253_v42  ;;  %4667 = vmatprep.mubr.msk.bf16.mxu1 %vm5543_vm0, %v7119_v10  ;;  %v6622_v42 = vld [vmem:[%s7107_s13 + $0x8] sm:$0xff]  }
0x1a8a   :  { %4665 = vmatprep.subr.bf16.mxu1 %v7119_v10  ;;  %4680 = vmatpush3.bf16.msra.mxu0 %v6610_v17 }
0x1a8b   :  { %2705 = vrot.lane.b32.xlu0 %v2703_v24, %s5533_s30  ;;  %4681 = vmatprep.subr.bf16.mxu0 %v7119_v10 }
0x1a8c   :  { %4687 = vmatprep.mubr.msk.bf16.mxu0 %vm5543_vm0, %v7119_v10 }
0x1a8d   :  { %4666 = vmatpush3.bf16.msra.mxu1 %v6264_v44  ;;  %v6641_v44 = vld [vmem:[%s7107_s13 + $0x18] sm:$0xff]  }
0x1a8e   :  { %2896 = vmatprep.subr.bf16.mxu1 %v6451_v20  ;;  %4682 = vmatpush3.bf16.msra.mxu0 %v6622_v42 }
0x1a8f   :  { %4683 = vmatprep.subr.bf16.mxu0 %v7119_v10 }
0x1a92   :  { %4684 = vmatpush3.bf16.msra.mxu0 %v6629_v9 }
0x1a93   :  { %4685 = vmatprep.subr.bf16.mxu0 %v7119_v10 }
0x1a94   :  { %4668 = vmatmul.mubr.msk.bf16.vlgmr.msra.gmra.mrb[40].mxu1 %vm223_vm1, %v6561_v55  ;;  %v2698_v55 = vmul.f32 %v5161_v12, %v6488_v36 }
0x1a95   :  { %2897 = vmatpush1.bf16.msra.mxu1 %v6460_v54  ;;  %2928 = vmatprep.mubr.bf16.mxu1 %v7118_v57 }
0x1a96   :  { %2898 = vmatprep.subr.bf16.mxu1 %v6464_v27  ;;  %4686 = vmatpush3.bf16.msra.mxu0 %v6641_v44 }
0x1a97   :  { %3062 = vmatprep.subr.bf16.mxu0 %v6278_v58 }
0x1a99   :  { %2899 = vmatpush1.bf16.msra.mxu1 %v6469_v34 }
0x1a9a   :  { %2900 = vmatprep.subr.bf16.mxu1 %v6472_v48 }
0x1a9d   :  { %2901 = vmatpush1.bf16.msra.mxu1 %v6475_v28 }
0x1a9e   :  { %2902 = vmatprep.subr.bf16.mxu1 %v6478_v47 }
0x1aa1   :  { %2903 = vmatpush1.bf16.msra.mxu1 %v6481_v38 }
0x1aa2   :  { %2937 = vmatprep.subr.bf16.mxu1 %v6484_v46 }
0x1afd   :  { %v2706_v3 = vpop.permute.xlu0 %2705 }
0x1afe   :  { %v6652_v18 = vadd.f32 %v2706_v3, %v2698_v55 }
0x1b00   :  { %5162 = vtanh.f32 %v6652_v18 }
0x1b01   :  { %5164 = vpow2.f32 %v4310_v2 }
0x1b0a   :  { %v5163_v58 = vpop.eup %5162 }
0x1b0b   :  { %2711 = vrot.lane.b32.xlu0 %v5163_v58, %s5533_s30  ;;  %v5165_v12 = vpop.eup %5164 }
0x1b0c   :  { %v2692_v52 = vadd.f32 1.0, %v5165_v12 }
0x1b5b   :  { %v6656_v16 = vpop.f32.mrb[60].mxu0 }
0x1b5c   :  { %v4677_v29 = vpop.f32.mrb[61].mxu0 }
0x1b5d   :  { %v2864_v25 = vpop.f32.mrb[62].mxu0 }
0x1b5e   :  { %v4678_v8 = vpop.f32.mrb[63].mxu0 }
0x1b67   :  { %v2796_v62 = vpop.f32.mrb[40].mxu1 }
0x1b68   :  { %v4790_v60 = vadd.f32 %v6297_v22, %v2796_v62  ;;  %v4669_v61 = vpop.f32.mrb[41].mxu1 }
0x1b69   :  { %v2799_v36 = vpop.f32.mrb[42].mxu1 }
0x1b6a   :  { %5166 = vtanh.f32 %v4790_v60  ;;  %v4670_v6 = vpop.f32.mrb[43].mxu1  ;;  %v4313_v22 = vmul.f32 -1.442695, %v4790_v60 }
0x1b6b   :  { %5168 = vrcp.f32 %v2692_v52 }
0x1b6c   :  { %5170 = vpow2.f32 %v4313_v22 }
0x1b74   :  { %v5167_v24 = vpop.eup %5166 }
0x1b75   :  { %2812 = vrot.lane.b32.xlu1 %v5167_v24, %s5545_s23  ;;  %v5169_v55 = vpop.eup %5168 }
0x1b76   :  { %v5171_v15 = vpop.eup %5170 }
0x1b77   :  { %v2806_v25 = vadd.f32 1.0, %v5171_v15 }
0x1b79   :  { %5172 = vrcp.f32 %v2806_v25 }
0x1b7d   :  { %v2712_v3 = vpop.permute.xlu0 %2711 }
0x1b7e   :  { %v2714_v58 = vmul.f32 %v5169_v55, %v2712_v3 }
0x1b80   :  { %v6660_v29 = vpack.c.bf16 %v2714_v58, %v2714_v58 }
0x1b82   :  { %4316 = vmatmul.mubr.msk.bf16.vlgmr.msra.gmra.mrb[44].mxu1 %vm673_vm2, %v6660_v29 }
0x1b83   :  { %2938 = vmatpush1.bf16.msra.mxu1 %v6501_v1  ;;  %2969 = vmatprep.mubr.bf16.mxu1 %v7118_v57  ;;  %v5173_v2 = vpop.eup %5172 }
0x1b84   :  { %2939 = vmatprep.subr.bf16.mxu1 %v6505_v5 }
0x1b87   :  { %2940 = vmatpush1.bf16.msra.mxu1 %v6508_v59 }
0x1b88   :  { %2941 = vmatprep.subr.bf16.mxu1 %v6511_v56 }
0x1b8b   :  { %2942 = vmatpush1.bf16.msra.mxu1 %v6514_v31 }
0x1b8c   :  { %2943 = vmatprep.subr.bf16.mxu1 %v6517_v35 }
0x1b8f   :  { %2944 = vmatpush1.bf16.msra.mxu1 %v6520_v63 }
0x1b90   :  { %4691 = vmatprep.subr.bf16.mxu1 %v7119_v10 }
0x1b92   :  { %4317 = vmatmul.mubr.msk.bf16.vlgmr.msra.gmra.mrb[44].mxu1 %vm673_vm2, %v6551_v21 }
0x1b93   :  { %4692 = vmatpush3.bf16.msra.mxu1 %v6316_v13  ;;  %4695 = vmatprep.mubr.msk.bf16.mxu1 %vm5543_vm0, %v7119_v10  ;;  %v2810_v13 = vmul.f32 %v5173_v2, %v6534_v19 }
0x1b94   :  { %4693 = vmatprep.subr.bf16.mxu1 %v7119_v10 }
0x1b97   :  { %4694 = vmatpush3.bf16.msra.mxu1 %v6322_v43 }
0x1b98   :  { %4699 = vmatprep.subr.bf16.mxu1 %v7119_v10 }
0x1be7   :  { %v2813_v8 = vpop.permute.xlu1 %2812 }
0x1be8   :  { %v2815_v62 = vmul.f32 %v5173_v2, %v2813_v8 }
0x1bea   :  { %2817 = vrot.lane.b32.xlu1 %v2815_v62, %s5545_s23 }
0x1c5c   :  { %v2818_v21 = vpop.permute.xlu1 %2817 }
0x1c5d   :  { %v6683_v61 = vadd.f32 %v2818_v21, %v2810_v13 }
0x1c5f   :  { %5174 = vtanh.f32 %v6683_v61 }
0x1c65   :  { %v2971_v43 = vpop.f32.mrb[44].mxu1 }
0x1c66   :  { %v2973_v36 = vpop.f32.mrb[45].mxu1  ;;  %v4791_v19 = vadd.f32 %v2971_v43, %v6034_v11  ;;  %v2867_v43 = vadd.f32 %v6656_v16, %v7121_v30 }
0x1c67   :  { %v4792_v60 = vadd.f32 %v2973_v36, %v6027_v45  ;;  %v2975_v6 = vpop.f32.mrb[46].mxu1 }
0x1c68   :  { %v2976_v12 = vpop.f32.mrb[47].mxu1  ;;  %v4318_v55 = vmul.f32 -1.442695, %v4791_v19 }
0x1c69   :  { %v5175_v52 = vpop.eup %5174  ;;  %5176 = vtanh.f32 %v4792_v60 }
0x1c6a   :  { %2823 = vrot.lane.b32.xlu1 %v5175_v52, %s5545_s23  ;;  %5178 = vpow2.f32 %v4318_v55  ;;  %v4319_v52 = vmul.f32 -1.442695, %v4792_v60 }
0x1c73   :  { %v5177_v24 = vpop.eup %5176 }
0x1c74   :  { %2995 = vrot.lane.b32.xlu0 %v5177_v24, %s5533_s30  ;;  %v5179_v3 = vpop.eup %5178  ;;  %v4315_v24 = vmul.f32 -1.442695, %v2867_v43 }
0x1c75   :  { %v2986_v58 = vadd.f32 1.0, %v5179_v3 }
0x1c77   :  { %5180 = vrcp.f32 %v2986_v58 }
0x1c81   :  { %v5181_v8 = vpop.eup %5180 }
0x1c82   :  { %v2993_v21 = vmul.f32 %v5181_v8, %v6544_v26 }
0x1cdc   :  { %v2824_v22 = vpop.permute.xlu1 %2823 }
0x1cdd   :  { %v2826_v15 = vmul.f32 %v5173_v2, %v2824_v22 }
0x1cdf   :  { %v3055_v25 = vpack.c.bf16 %v2826_v15, %v2826_v15 }
0x1ce1   :  { %3057 = vrot.lane.b32.xlu1 %v3055_v25, %s5533_s30 }
0x1ce6   :  { %v2996_v62 = vpop.permute.xlu0 %2995 }
0x1ce7   :  { %v2998_v13 = vmul.f32 %v5181_v8, %v2996_v62 }
0x1ce9   :  { %3000 = vrot.lane.b32.xlu0 %v2998_v13, %s5533_s30 }
0x1d53   :  { %v6710_v60 = vpop.permute.xlu1 %3057 }
0x1d5b   :  { %v3001_v36 = vpop.permute.xlu0 %3000 }
0x1d5c   :  { %v6693_v6 = vadd.f32 %v3001_v36, %v2993_v21 }
0x1d5e   :  { %5182 = vtanh.f32 %v6693_v6 }
0x1d5f   :  { %5184 = vtanh.f32 %v2867_v43 }
0x1d60   :  { %5186 = vpow2.f32 %v4319_v52 }
0x1d61   :  { %5188 = vpow2.f32 %v4315_v24 }
0x1d68   :  { %v5183_v2 = vpop.eup %5182 }
0x1d69   :  { %3006 = vrot.lane.b32.xlu0 %v5183_v2, %s5533_s30  ;;  %v5185_v12 = vpop.eup %5184 }
0x1d6a   :  { %v5187_v26 = vpop.eup %5186 }
0x1d6b   :  { %v2987_v19 = vadd.f32 1.0, %v5187_v26  ;;  %v5189_v55 = vpop.eup %5188 }
0x1d6c   :  { %v2871_v3 = vadd.f32 1.0, %v5189_v55 }
0x1d6d   :  { %2877 = vrot.lane.b32.xlu0 %v5185_v12, %s5545_s23  ;;  %5190 = vrcp.f32 %v2987_v19 }
0x1d6e   :  { %5192 = vrcp.f32 %v2871_v3 }
0x1d77   :  { %v5191_v16 = vpop.eup %5190 }
0x1d78   :  { %v5193_v25 = vpop.eup %5192 }
0x1ddb   :  { %v3007_v58 = vpop.permute.xlu0 %3006 }
0x1ddc   :  { %v3009_v22 = vmul.f32 %v5191_v16, %v3007_v58 }
0x1dde   :  { %v6700_v15 = vpack.c.bf16 %v3009_v22, %v3009_v22 }
0x1ddf   :  { %v2878_v8 = vpop.permute.xlu0 %2877 }
0x1de0   :  { %v2880_v62 = vmul.f32 %v5193_v25, %v2878_v8  ;;  %4688 = vmatmul.mubr.msk.bf16.vlgmr.msra.gmra.mrb[64].mxu0 %vm673_vm2, %v6700_v15  ;;  %v6756_v8 = vld [vmem:[#allocation7 + $0x8] sm:$0xff]  }
0x1de1   :  { %3063 = vmatpush1.bf16.msra.mxu0 %v6349_v32  ;;  %3094 = vmatprep.mubr.bf16.mxu0 %v7118_v57  ;;  %v5332_v32 = vld [vmem:[#allocation4] sm:$0xff]  }
0x1de2   :  { %2882 = vrot.lane.b32.xlu1 %v2880_v62, %s5545_s23  ;;  %3064 = vmatprep.subr.bf16.mxu0 %v6354_v7  ;;  %v5333_v7 = vld [vmem:[#allocation4 + $0x8] sm:$0xff]  }
0x1de5   :  { %3065 = vmatpush1.bf16.msra.mxu0 %v6357_v0  ;;  %v2875_v0 = vmul.f32 %v5193_v25, %v6583_v51 }
0x1de6   :  { %3103 = vmatprep.subr.bf16.mxu0 %v6363_v41 }
0x1de8   :  { %4321 = vmatmul.mubr.msk.bf16.vlgmr.msra.gmra.mrb[68].mxu0 %vm223_vm1, %v6710_v60 }
0x1de9   :  { %3104 = vmatpush1.bf16.msra.mxu0 %v6373_v14  ;;  %3135 = vmatprep.mubr.bf16.mxu0 %v7118_v57 }
0x1dea   :  { %3105 = vmatprep.subr.bf16.mxu0 %v6380_v4 }
0x1ded   :  { %3106 = vmatpush1.bf16.msra.mxu0 %v6386_v53 }
0x1dee   :  { %3107 = vmatprep.subr.bf16.mxu0 %v6392_v50 }
0x1df1   :  { %3108 = vmatpush1.bf16.msra.mxu0 %v6398_v40 }
0x1df2   :  { %3109 = vmatprep.subr.bf16.mxu0 %v6404_v23 }
0x1df5   :  { %3110 = vmatpush1.bf16.msra.mxu0 %v6410_v33 }
0x1df6   :  { %4707 = vmatprep.subr.bf16.mxu0 %v7119_v10 }
0x1df8   :  { %4322 = vmatmul.mubr.msk.bf16.vlgmr.msra.gmra.mrb[68].mxu0 %vm673_vm2, %v6660_v29 }
0x1df9   :  { %4708 = vmatpush3.bf16.msra.mxu0 %v5332_v32  ;;  %4711 = vmatprep.mubr.msk.bf16.mxu0 %vm5543_vm0, %v7119_v10 }
0x1dfa   :  { %4709 = vmatprep.subr.bf16.mxu0 %v7119_v10 }
0x1dfd   :  { %4710 = vmatpush3.bf16.msra.mxu0 %v5333_v7 }
0x1dfe   :  { %4715 = vmatprep.subr.bf16.mxu0 %v7119_v10 }
0x1e54   :  { %v2883_v41 = vpop.permute.xlu1 %2882 }
0x1e55   :  { %v6730_v14 = vadd.f32 %v2883_v41, %v2875_v0 }
0x1e57   :  { %5194 = vtanh.f32 %v6730_v14 }
0x1e61   :  { %v5195_v4 = vpop.eup %5194 }
0x1e62   :  { %2888 = vrot.lane.b32.xlu1 %v5195_v4, %s5545_s23 }
0x1eb3   :  { %v3048_v53 = vpop.f32.mrb[64].mxu0 }
0x1eb4   :  { %v3049_v50 = vadd.f32 %v6590_v37, %v3048_v53  ;;  %v4689_v40 = vpop.f32.mrb[65].mxu0 }
0x1eb5   :  { %v3051_v23 = vpop.f32.mrb[66].mxu0 }
0x1eb6   :  { %3054 = vst.msk [vmem:[%s7109_s15 + $0x20] sm:$0xff] %vm1209_vm3, %v3049_v50  ;;  %v4690_v33 = vpop.f32.mrb[67].mxu0 }
0x1ecb   :  { %v3137_v51 = vpop.f32.mrb[68].mxu0 }
0x1ecc   :  { %v3139_v29 = vpop.f32.mrb[69].mxu0  ;;  %v4793_v24 = vadd.f32 %v3137_v51, %v5942_v49 }
0x1ecd   :  { %v4794_v13 = vadd.f32 %v3139_v29, %v5915_v39  ;;  %v3141_v21 = vpop.f32.mrb[70].mxu0 }
0x1ece   :  { %v3142_v36 = vpop.f32.mrb[71].mxu0  ;;  %v4323_v26 = vmul.f32 -1.442695, %v4793_v24 }
0x1ecf   :  { %5196 = vtanh.f32 %v4794_v13  ;;  %v4324_v32 = vmul.f32 -1.442695, %v4794_v13 }
0x1ed0   :  { %5198 = vpow2.f32 %v4323_v26 }
0x1ed4   :  { %v2889_v43 = vpop.permute.xlu1 %2888 }
0x1ed5   :  { %v2891_v2 = vmul.f32 %v5193_v25, %v2889_v43  ;;  %v6745_v25 = vld [vmem:[#allocation7] sm:$0xff]  }
0x1ed7   :  { %v3176_v12 = vpack.c.bf16 %v2891_v2, %v2891_v2 }
0x1ed9   :  { %v5197_v52 = vpop.eup %5196  ;;  %3178 = vrot.lane.b32.xlu1 %v3176_v12, %s5533_s30 }
0x1eda   :  { %3161 = vrot.lane.b32.xlu0 %v5197_v52, %s5533_s30  ;;  %v5199_v19 = vpop.eup %5198 }
0x1edb   :  { %v3152_v55 = vadd.f32 1.0, %v5199_v19 }
0x1edd   :  { %5200 = vrcp.f32 %v3152_v55 }
0x1ee7   :  { %v5201_v16 = vpop.eup %5200 }
0x1f4b   :  { %v3179_v3 = vpop.permute.xlu1 %3178 }
0x1f4c   :  { %v3162_v58 = vpop.permute.xlu0 %3161  ;;  %4696 = vmatmul.mubr.msk.bf16.vlgmr.msra.gmra.mrb[48].mxu1 %vm223_vm1, %v3179_v3  ;;  %4712 = vmatmul.mubr.msk.bf16.vlgmr.msra.gmra.mrb[72].mxu0 %vm223_vm1, %v3179_v3 }
0x1f4d   :  { %v3164_v22 = vmul.f32 %v5201_v16, %v3162_v58  ;;  %4700 = vmatpush3.bf16.msra.mxu1 %v6745_v25  ;;  %4703 = vmatprep.mubr.msk.bf16.mxu1 %vm5543_vm0, %v7119_v10 }
0x1f4e   :  { %4701 = vmatprep.subr.bf16.mxu1 %v7119_v10  ;;  %4716 = vmatpush3.bf16.msra.mxu0 %v6610_v17 }
0x1f4f   :  { %3166 = vrot.lane.b32.xlu0 %v3164_v22, %s5533_s30  ;;  %4717 = vmatprep.subr.bf16.mxu0 %v7119_v10 }
0x1f50   :  { %4723 = vmatprep.mubr.msk.bf16.mxu0 %vm5543_vm0, %v7119_v10 }
0x1f51   :  { %4702 = vmatpush3.bf16.msra.mxu1 %v6756_v8 }
0x1f52   :  { %3357 = vmatprep.subr.bf16.mxu1 %v6451_v20  ;;  %4718 = vmatpush3.bf16.msra.mxu0 %v6622_v42  ;;  %v6770_v20 = vld [vmem:[#allocation9 + $0x4] ss:$8 sps:$4 sm:$0xff]  }
0x1f53   :  { %4719 = vmatprep.subr.bf16.mxu0 %v7119_v10 }
0x1f56   :  { %4720 = vmatpush3.bf16.msra.mxu0 %v6629_v9 }
0x1f57   :  { %4721 = vmatprep.subr.bf16.mxu0 %v7119_v10 }
0x1f58   :  { %4704 = vmatmul.mubr.msk.bf16.vlgmr.msra.gmra.mrb[48].mxu1 %vm223_vm1, %v6710_v60 }
0x1f59   :  { %3358 = vmatpush1.bf16.msra.mxu1 %v6460_v54  ;;  %3389 = vmatprep.mubr.bf16.mxu1 %v7118_v57  ;;  %v3159_v54 = vmul.f32 %v5201_v16, %v6652_v18 }
0x1f5a   :  { %3359 = vmatprep.subr.bf16.mxu1 %v6464_v27  ;;  %4722 = vmatpush3.bf16.msra.mxu0 %v6641_v44 }
0x1f5b   :  { %3523 = vmatprep.subr.bf16.mxu0 %v6770_v20 }
0x1f5d   :  { %3360 = vmatpush1.bf16.msra.mxu1 %v6469_v34 }
0x1f5e   :  { %3361 = vmatprep.subr.bf16.mxu1 %v6472_v48 }
0x1f61   :  { %3362 = vmatpush1.bf16.msra.mxu1 %v6475_v28 }
0x1f62   :  { %3363 = vmatprep.subr.bf16.mxu1 %v6478_v47 }
0x1f65   :  { %3364 = vmatpush1.bf16.msra.mxu1 %v6481_v38 }
0x1f66   :  { %3398 = vmatprep.subr.bf16.mxu1 %v6484_v46  ;;  %v6789_v46 = vld [vmem:[%s7100_s6] ss:$0 sm:$0xff] }
0x1fc1   :  { %v3167_v27 = vpop.permute.xlu0 %3166 }
0x1fc2   :  { %v6780_v62 = vadd.f32 %v3167_v27, %v3159_v54 }
0x1fc4   :  { %5202 = vtanh.f32 %v6780_v62 }
0x1fc5   :  { %5204 = vpow2.f32 %v4324_v32 }
0x1fce   :  { %v5203_v60 = vpop.eup %5202 }
0x1fcf   :  { %3172 = vrot.lane.b32.xlu0 %v5203_v60, %s5533_s30  ;;  %v5205_v4 = vpop.eup %5204 }
0x1fd0   :  { %v3153_v53 = vadd.f32 1.0, %v5205_v4 }
0x201f   :  { %v6784_v34 = vpop.f32.mrb[72].mxu0 }
0x2020   :  { %v4713_v48 = vpop.f32.mrb[73].mxu0 }
0x2021   :  { %v3325_v28 = vpop.f32.mrb[74].mxu0 }
0x2022   :  { %v4714_v47 = vpop.f32.mrb[75].mxu0 }
0x2023   :  { %v3328_v47 = vadd.f32 %v6784_v34, %v7121_v30 }
0x202b   :  { %v3257_v38 = vpop.f32.mrb[48].mxu1 }
0x202c   :  { %v4795_v18 = vadd.f32 %v6789_v46, %v3257_v38  ;;  %v4705_v7 = vpop.f32.mrb[49].mxu1 }
0x202d   :  { %v3260_v0 = vpop.f32.mrb[50].mxu1 }
0x202e   :  { %5206 = vtanh.f32 %v4795_v18  ;;  %v4706_v41 = vpop.f32.mrb[51].mxu1  ;;  %v4329_v0 = vmul.f32 -1.442695, %v3328_v47 }
0x202f   :  { %5208 = vrcp.f32 %v3153_v53 }
0x2038   :  { %v5207_v50 = vpop.eup %5206 }
0x2039   :  { %3273 = vrot.lane.b32.xlu1 %v5207_v50, %s5545_s23  ;;  %v5209_v40 = vpop.eup %5208 }
0x2041   :  { %v3173_v23 = vpop.permute.xlu0 %3172 }
0x2042   :  { %v3175_v33 = vmul.f32 %v5209_v40, %v3173_v23 }
0x2044   :  { %v6793_v51 = vpack.c.bf16 %v3175_v33, %v3175_v33 }
0x2046   :  { %4330 = vmatmul.mubr.msk.bf16.vlgmr.msra.gmra.mrb[52].mxu1 %vm673_vm2, %v6793_v51 }
0x2047   :  { %3399 = vmatpush1.bf16.msra.mxu1 %v6501_v1  ;;  %3430 = vmatprep.mubr.bf16.mxu1 %v7118_v57  ;;  %v5338_v1 = vld [vmem:[#allocation6] sm:$0xff]  }
0x2048   :  { %3400 = vmatprep.subr.bf16.mxu1 %v6505_v5  ;;  %v5339_v5 = vld [vmem:[#allocation6 + $0x8] sm:$0xff]  }
0x204b   :  { %3401 = vmatpush1.bf16.msra.mxu1 %v6508_v59  ;;  %v4327_v59 = vmul.f32 -1.442695, %v4795_v18 }
0x204c   :  { %3402 = vmatprep.subr.bf16.mxu1 %v6511_v56 }
0x204d   :  { %5210 = vpow2.f32 %v4327_v59  ;;  %v6843_v59 = vld [vmem:[#allocation9 + $0x14] ss:$8 sps:$4 sm:$0xff]  }
0x204f   :  { %3403 = vmatpush1.bf16.msra.mxu1 %v6514_v31 }
0x2050   :  { %3404 = vmatprep.subr.bf16.mxu1 %v6517_v35 }
0x2053   :  { %3405 = vmatpush1.bf16.msra.mxu1 %v6520_v63 }
0x2054   :  { %4727 = vmatprep.subr.bf16.mxu1 %v7119_v10 }
0x2056   :  { %4331 = vmatmul.mubr.msk.bf16.vlgmr.msra.gmra.mrb[52].mxu1 %vm673_vm2, %v6700_v15 }
0x2057   :  { %4728 = vmatpush3.bf16.msra.mxu1 %v5338_v1  ;;  %4731 = vmatprep.mubr.msk.bf16.mxu1 %vm5543_vm0, %v7119_v10  ;;  %v5211_v56 = vpop.eup %5210 }
0x2058   :  { %4729 = vmatprep.subr.bf16.mxu1 %v7119_v10  ;;  %v3267_v31 = vadd.f32 1.0, %v5211_v56  ;;  %v6846_v56 = vld [vmem:[#allocation9 + $0x10] ss:$8 sps:$4 sm:$0xff]  }
0x205a   :  { %5212 = vrcp.f32 %v3267_v31  ;;  %v6852_v31 = vld [vmem:[%s7102_s8 + $0x4] ss:$8 sps:$4 sm:$0xff]  }
0x205b   :  { %4730 = vmatpush3.bf16.msra.mxu1 %v5339_v5  ;;  %v6838_v5 = vld [vmem:[#allocation9] ss:$8 sps:$4 sm:$0xff]  }
0x205c   :  { %4735 = vmatprep.subr.bf16.mxu1 %v7119_v10 }
0x2064   :  { %v5213_v35 = vpop.eup %5212 }
0x2065   :  { %v3271_v15 = vmul.f32 %v5213_v35, %v6683_v61 }
0x20ab   :  { %v3274_v63 = vpop.permute.xlu1 %3273 }
0x20ac   :  { %v3276_v29 = vmul.f32 %v5213_v35, %v3274_v63  ;;  %v6862_v63 = vld [vmem:[%s7102_s8] ss:$8 sps:$4 sm:$0xff]  }
0x20ae   :  { %3278 = vrot.lane.b32.xlu1 %v3276_v29, %s5545_s23  ;;  %v6869_v29 = vld [vmem:[%s7102_s8 + $0x14] ss:$8 sps:$4 sm:$0xff]  }
0x2120   :  { %v3279_v13 = vpop.permute.xlu1 %3278 }
0x2121   :  { %v6814_v21 = vadd.f32 %v3279_v13, %v3271_v15  ;;  %v6875_v15 = vld [vmem:[%s7102_s8 + $0x10] ss:$8 sps:$4 sm:$0xff]   ;;  %v6881_v13 = vld [vmem:[%s7102_s8 + $0x24] ss:$8 sps:$4 sm:$0xff]  }
0x2123   :  { %5214 = vtanh.f32 %v6814_v21 }
0x2129   :  { %v3432_v36 = vpop.f32.mrb[52].mxu1 }
0x212a   :  { %v3434_v43 = vpop.f32.mrb[53].mxu1  ;;  %v4796_v61 = vadd.f32 %v3432_v36, %v6034_v11  ;;  %v6887_v36 = vld [vmem:[%s7102_s8 + $0x20] ss:$8 sps:$4 sm:$0xff]  }
0x212b   :  { %v4797_v2 = vadd.f32 %v3434_v43, %v6027_v45  ;;  %v3436_v12 = vpop.f32.mrb[54].mxu1  ;;  %v6893_v43 = vld [vmem:[%s7102_s8 + $0x34] ss:$8 sps:$4 sm:$0xff]  }
0x212c   :  { %v3437_v52 = vpop.f32.mrb[55].mxu1  ;;  %v4332_v19 = vmul.f32 -1.442695, %v4796_v61  ;;  %v6902_v12 = vld [vmem:[#allocation10 + $0x4] ss:$8 sps:$4 sm:$0xff]  }
0x212d   :  { %v5215_v24 = vpop.eup %5214  ;;  %5216 = vtanh.f32 %v4797_v2  ;;  %v4333_v7 = vmul.f32 -1.442695, %v4797_v2  ;;  %v6899_v2 = vld [vmem:[%s7102_s8 + $0x30] ss:$8 sps:$4 sm:$0xff]   ;;  %v6907_v52 = vld [vmem:[#allocation10] ss:$8 sps:$4 sm:$0xff]  }
0x212e   :  { %3284 = vrot.lane.b32.xlu1 %v5215_v24, %s5545_s23  ;;  %5218 = vpow2.f32 %v4332_v19  ;;  %v6911_v24 = vld [vmem:[#allocation10 + $0x14] ss:$8 sps:$4 sm:$0xff]   ;;  %v6917_v61 = vld [vmem:[#allocation10 + $0x24] ss:$8 sps:$4 sm:$0xff]   ;;  %v6920_v19 = vld [vmem:[#allocation10 + $0x20] ss:$8 sps:$4 sm:$0xff]  }
0x2137   :  { %v5217_v26 = vpop.eup %5216 }
0x2138   :  { %3456 = vrot.lane.b32.xlu0 %v5217_v26, %s5533_s30  ;;  %v5219_v55 = vpop.eup %5218  ;;  %v6914_v26 = vld [vmem:[#allocation10 + $0x10] ss:$8 sps:$4 sm:$0xff]  }
0x2139   :  { %v3447_v3 = vadd.f32 1.0, %v5219_v55  ;;  %v6926_v55 = vld [vmem:[#allocation10 + $0x30] ss:$8 sps:$4 sm:$0xff]  }
0x213b   :  { %5220 = vrcp.f32 %v3447_v3  ;;  %v6929_v3 = vld [vmem:[#allocation12 + $0x4] ss:$8 sps:$4 sm:$0xff]  }
0x2145   :  { %v5221_v54 = vpop.eup %5220 }
0x2146   :  { %v3454_v48 = vmul.f32 %v5221_v54, %v6693_v6 }
0x21a0   :  { %v3285_v16 = vpop.permute.xlu1 %3284 }
0x21a1   :  { %v3287_v58 = vmul.f32 %v5213_v35, %v3285_v16 }
0x21a3   :  { %v3516_v22 = vpack.c.bf16 %v3287_v58, %v3287_v58 }
0x21a5   :  { %3518 = vrot.lane.b32.xlu1 %v3516_v22, %s5533_s30 }
0x21aa   :  { %v3457_v27 = vpop.permute.xlu0 %3456 }
0x21ab   :  { %v3459_v60 = vmul.f32 %v5221_v54, %v3457_v27 }
0x21ad   :  { %3461 = vrot.lane.b32.xlu0 %v3459_v60, %s5533_s30 }
0x2217   :  { %v6855_v35 = vpop.permute.xlu1 %3518 }
0x221f   :  { %v3462_v28 = vpop.permute.xlu0 %3461 }
0x2220   :  { %v6824_v32 = vadd.f32 %v3462_v28, %v3454_v48 }
0x2222   :  { %5222 = vtanh.f32 %v6824_v32 }
0x2223   :  { %5224 = vtanh.f32 %v3328_v47 }
0x2224   :  { %5226 = vpow2.f32 %v4333_v7 }
0x2225   :  { %5228 = vpow2.f32 %v4329_v0 }
0x222c   :  { %v5223_v38 = vpop.eup %5222 }
0x222d   :  { %3467 = vrot.lane.b32.xlu0 %v5223_v38, %s5533_s30  ;;  %v5225_v18 = vpop.eup %5224 }
0x222e   :  { %v5227_v6 = vpop.eup %5226 }
0x222f   :  { %v3448_v41 = vadd.f32 1.0, %v5227_v6  ;;  %v5229_v4 = vpop.eup %5228 }
0x2230   :  { %v3332_v53 = vadd.f32 1.0, %v5229_v4 }
0x2231   :  { %3338 = vrot.lane.b32.xlu0 %v5225_v18, %s5545_s23  ;;  %5230 = vrcp.f32 %v3448_v41 }
0x2232   :  { %5232 = vrcp.f32 %v3332_v53 }
0x223b   :  { %v5231_v30 = vpop.eup %5230 }
0x223c   :  { %v6833_v23 = vpop.eup %5232 }
0x223d   :  { %v3336_v16 = vmul.f32 %v6833_v23, %v6730_v14 }
0x229f   :  { %v3468_v34 = vpop.permute.xlu0 %3467 }
0x22a0   :  { %v3470_v50 = vmul.f32 %v5231_v30, %v3468_v34 }
0x22a2   :  { %v6831_v40 = vpack.c.bf16 %v3470_v50, %v3470_v50 }
0x22a3   :  { %v3339_v33 = vpop.permute.xlu0 %3338 }
0x22a4   :  { %v3341_v1 = vmul.f32 %v6833_v23, %v3339_v33  ;;  %4724 = vmatmul.mubr.msk.bf16.vlgmr.msra.gmra.mrb[76].mxu0 %vm673_vm2, %v6831_v40 }
0x22a5   :  { %3524 = vmatpush1.bf16.msra.mxu0 %v6838_v5  ;;  %3555 = vmatprep.mubr.bf16.mxu0 %v7118_v57 }
0x22a6   :  { %3343 = vrot.lane.b32.xlu1 %v3341_v1, %s5545_s23  ;;  %3525 = vmatprep.subr.bf16.mxu0 %v6843_v59 }
0x22a9   :  { %3526 = vmatpush1.bf16.msra.mxu0 %v6846_v56 }
0x22aa   :  { %3564 = vmatprep.subr.bf16.mxu0 %v6852_v31 }
0x22ac   :  { %4335 = vmatmul.mubr.msk.bf16.vlgmr.msra.gmra.mrb[80].mxu0 %vm223_vm1, %v6855_v35 }
0x22ad   :  { %3565 = vmatpush1.bf16.msra.mxu0 %v6862_v63  ;;  %3596 = vmatprep.mubr.bf16.mxu0 %v7118_v57 }
0x22ae   :  { %3566 = vmatprep.subr.bf16.mxu0 %v6869_v29 }
0x22b1   :  { %3567 = vmatpush1.bf16.msra.mxu0 %v6875_v15 }
0x22b2   :  { %3568 = vmatprep.subr.bf16.mxu0 %v6881_v13 }
0x22b5   :  { %3569 = vmatpush1.bf16.msra.mxu0 %v6887_v36 }
0x22b6   :  { %3570 = vmatprep.subr.bf16.mxu0 %v6893_v43 }
0x22b9   :  { %3571 = vmatpush1.bf16.msra.mxu0 %v6899_v2 }
0x22ba   :  { %3753 = vmatprep.subr.bf16.mxu0 %v6902_v12 }
0x22bc   :  { %4336 = vmatmul.mubr.msk.bf16.vlgmr.msra.gmra.mrb[80].mxu0 %vm673_vm2, %v6793_v51  ;;  %v6923_v51 = vld [vmem:[#allocation10 + $0x34] ss:$8 sps:$4 sm:$0xff]  }
0x22bd   :  { %3754 = vmatpush1.bf16.msra.mxu0 %v6907_v52  ;;  %3785 = vmatprep.mubr.bf16.mxu0 %v7118_v57 }
0x22be   :  { %3755 = vmatprep.subr.bf16.mxu0 %v6911_v24 }
0x22c1   :  { %3756 = vmatpush1.bf16.msra.mxu0 %v6914_v26 }
0x22c2   :  { %3757 = vmatprep.subr.bf16.mxu0 %v6917_v61 }
0x22c5   :  { %3758 = vmatpush1.bf16.msra.mxu0 %v6920_v19 }
0x22c6   :  { %3759 = vmatprep.subr.bf16.mxu0 %v6923_v51 }
0x22c9   :  { %3760 = vmatpush1.bf16.msra.mxu0 %v6926_v55 }
0x22ca   :  { %3794 = vmatprep.subr.bf16.mxu0 %v6929_v3 }
0x2318   :  { %v3344_v58 = vpop.permute.xlu1 %3343 }
0x2319   :  { %v3346_v22 = vadd.f32 %v3344_v58, %v3336_v16 }
0x231b   :  { %5234 = vtanh.f32 %v3346_v22 }
0x2325   :  { %v5235_v54 = vpop.eup %5234 }
0x2326   :  { %3349 = vrot.lane.b32.xlu1 %v5235_v54, %s5545_s23 }
0x2377   :  { %v3509_v27 = vpop.f32.mrb[76].mxu0 }
0x2378   :  { %v3510_v60 = vadd.f32 %v6590_v37, %v3509_v27  ;;  %v4725_v48 = vpop.f32.mrb[77].mxu0 }
0x2379   :  { %v3512_v28 = vpop.f32.mrb[78].mxu0 }
0x237a   :  { %3515 = vst.msk [vmem:[%s7109_s15 + $0x28] sm:$0xff] %vm1209_vm3, %v3510_v60  ;;  %v4726_v47 = vpop.f32.mrb[79].mxu0 }
0x238f   :  { %v3598_v38 = vpop.f32.mrb[80].mxu0 }
0x2390   :  { %v3600_v18 = vpop.f32.mrb[81].mxu0  ;;  %v4798_v53 = vadd.f32 %v3598_v38, %v5942_v49 }
0x2391   :  { %v4799_v14 = vadd.f32 %v3600_v18, %v5915_v39  ;;  %v3602_v7 = vpop.f32.mrb[82].mxu0 }
0x2392   :  { %v3603_v0 = vpop.f32.mrb[83].mxu0  ;;  %v4337_v30 = vmul.f32 -1.442695, %v4798_v53 }
0x2393   :  { %5236 = vtanh.f32 %v4799_v14  ;;  %v6983_v0 = vld [vmem:[#allocation12 + $0x10] ss:$8 sps:$4 sm:$0xff]  }
0x2394   :  { %5238 = vpow2.f32 %v4337_v30 }
0x2398   :  { %v3350_v6 = vpop.permute.xlu1 %3349 }
0x2399   :  { %v3352_v41 = vmul.f32 %v6833_v23, %v3350_v6  ;;  %v6986_v6 = vld [vmem:[#allocation12 + $0x24] ss:$8 sps:$4 sm:$0xff]  }
0x239b   :  { %v3637_v4 = vpack.c.bf16 %v3352_v41, %v3352_v41  ;;  %v6989_v41 = vld [vmem:[#allocation12 + $0x20] ss:$8 sps:$4 sm:$0xff]  }
0x239d   :  { %v5237_v37 = vpop.eup %5236  ;;  %3639 = vrot.lane.b32.xlu1 %v3637_v4, %s5533_s30  ;;  %v6992_v4 = vld [vmem:[#allocation12 + $0x34] ss:$8 sps:$4 sm:$0xff]  }
0x239e   :  { %3622 = vrot.lane.b32.xlu0 %v5237_v37, %s5533_s30  ;;  %v5239_v34 = vpop.eup %5238  ;;  %v6995_v37 = vld [vmem:[#allocation12 + $0x30] ss:$8 sps:$4 sm:$0xff]  }
0x239f   :  { %v3613_v50 = vadd.f32 1.0, %v5239_v34 }
0x23a1   :  { %5240 = vrcp.f32 %v3613_v50 }
0x23ab   :  { %v5241_v1 = vpop.eup %5240 }
0x240f   :  { %v3640_v33 = vpop.permute.xlu1 %3639 }
0x2410   :  { %v3623_v16 = vpop.permute.xlu0 %3622  ;;  %4732 = vmatmul.mubr.msk.bf16.vlgmr.msra.gmra.mrb[56].mxu1 %vm223_vm1, %v3640_v33 }
0x2411   :  { %v3625_v58 = vmul.f32 %v5241_v1, %v3623_v16  ;;  %4736 = vmatpush3.bf16.msra.mxu1 %v6745_v25  ;;  %4739 = vmatprep.mubr.msk.bf16.mxu1 %vm5543_vm0, %v7119_v10  ;;  %v3620_v25 = vmul.f32 %v5241_v1, %v6780_v62 }
0x2412   :  { %4737 = vmatprep.subr.bf16.mxu1 %v7119_v10 }
0x2413   :  { %3627 = vrot.lane.b32.xlu0 %v3625_v58, %s5533_s30 }
0x2415   :  { %4738 = vmatpush3.bf16.msra.mxu1 %v6756_v8 }
0x2416   :  { %4743 = vmatprep.subr.bf16.mxu1 %v7119_v10 }
0x241c   :  { %4740 = vmatmul.mubr.msk.bf16.vlgmr.msra.gmra.mrb[56].mxu1 %vm223_vm1, %v6855_v35  ;;  %v4338_v35 = vmul.f32 -1.442695, %v4799_v14  ;;  %v6976_v14 = vld [vmem:[#allocation12] ss:$8 sps:$4 sm:$0xff]  }
0x241d   :  { %4744 = vmatpush3.bf16.msra.mxu1 %v6610_v17  ;;  %4751 = vmatprep.mubr.msk.bf16.mxu1 %vm5543_vm0, %v7119_v10 }
0x241e   :  { %4745 = vmatprep.subr.bf16.mxu1 %v7119_v10 }
0x2421   :  { %4746 = vmatpush3.bf16.msra.mxu1 %v6622_v42 }
0x2422   :  { %4747 = vmatprep.subr.bf16.mxu1 %v7119_v10 }
0x2425   :  { %4748 = vmatpush3.bf16.msra.mxu1 %v6629_v9 }
0x2426   :  { %4749 = vmatprep.subr.bf16.mxu1 %v7119_v10 }
0x2429   :  { %4750 = vmatpush3.bf16.msra.mxu1 %v6641_v44 }
0x242a   :  { %3919 = vmatprep.subr.bf16.mxu1 %v6770_v20 }
0x2485   :  { %v3628_v17 = vpop.permute.xlu0 %3627 }
0x2486   :  { %v6966_v8 = vadd.f32 %v3628_v17, %v3620_v25 }
0x2488   :  { %5242 = vtanh.f32 %v6966_v8 }
0x2489   :  { %5244 = vpow2.f32 %v4338_v35 }
0x2492   :  { %v5243_v23 = vpop.eup %5242 }
0x2493   :  { %3633 = vrot.lane.b32.xlu0 %v5243_v23, %s5533_s30  ;;  %v5245_v20 = vpop.eup %5244 }
0x2494   :  { %v3614_v28 = vadd.f32 1.0, %v5245_v20 }
0x24ef   :  { %v3718_v22 = vpop.f32.mrb[56].mxu1 }
0x24f0   :  { %v4800_v54 = vadd.f32 %v6789_v46, %v3718_v22  ;;  %v4741_v27 = vpop.f32.mrb[57].mxu1  ;;  %v6980_v46 = vld [vmem:[#allocation12 + $0x14] ss:$8 sps:$4 sm:$0xff]  }
0x24f1   :  { %v3721_v60 = vpop.f32.mrb[58].mxu1 }
0x24f2   :  { %5246 = vtanh.f32 %v4800_v54  ;;  %v4742_v48 = vpop.f32.mrb[59].mxu1 }
0x24f3   :  { %5248 = vrcp.f32 %v3614_v28 }
0x24fc   :  { %v5247_v62 = vpop.eup %5246 }
0x24fd   :  { %3734 = vrot.lane.b32.xlu1 %v5247_v62, %s5545_s23  ;;  %v5249_v47 = vpop.eup %5248 }
0x2505   :  { %v3634_v38 = vpop.permute.xlu0 %3633 }
0x2506   :  { %v3636_v18 = vmul.f32 %v5249_v47, %v3634_v38 }
0x2508   :  { %v6972_v7 = vpack.c.bf16 %v3636_v18, %v3636_v18 }
0x250a   :  { %4342 = vmatmul.mubr.msk.bf16.vlgmr.msra.gmra.mrb[84].mxu0 %vm673_vm2, %v6972_v7 }
0x250b   :  { %3795 = vmatpush1.bf16.msra.mxu0 %v6976_v14  ;;  %3826 = vmatprep.mubr.bf16.mxu0 %v7118_v57 }
0x250c   :  { %3796 = vmatprep.subr.bf16.mxu0 %v6980_v46 }
0x250f   :  { %3797 = vmatpush1.bf16.msra.mxu0 %v6983_v0 }
0x2510   :  { %3798 = vmatprep.subr.bf16.mxu0 %v6986_v6 }
0x2513   :  { %3799 = vmatpush1.bf16.msra.mxu0 %v6989_v41 }
0x2514   :  { %3800 = vmatprep.subr.bf16.mxu0 %v6992_v4 }
0x2517   :  { %3801 = vmatpush1.bf16.msra.mxu0 %v6995_v37 }
0x2518   :  { %4037 = vmatprep.subr.bf16.mxu0 %v6902_v12  ;;  %v4341_v12 = vmul.f32 -1.442695, %v4800_v54 }
0x251a   :  { %4343 = vmatmul.mubr.msk.bf16.vlgmr.msra.gmra.mrb[84].mxu0 %vm673_vm2, %v6831_v40  ;;  %5250 = vpow2.f32 %v4341_v12 }
0x251b   :  { %4038 = vmatpush1.bf16.msra.mxu0 %v6907_v52  ;;  %4069 = vmatprep.mubr.bf16.mxu0 %v7118_v57 }
0x251c   :  { %4039 = vmatprep.subr.bf16.mxu0 %v6911_v24 }
0x251f   :  { %4040 = vmatpush1.bf16.msra.mxu0 %v6914_v26 }
0x2520   :  { %4041 = vmatprep.subr.bf16.mxu0 %v6917_v61 }
0x2523   :  { %4042 = vmatpush1.bf16.msra.mxu0 %v6920_v19 }
0x2524   :  { %4043 = vmatprep.subr.bf16.mxu0 %v6923_v51  ;;  %v5251_v40 = vpop.eup %5250 }
0x2525   :  { %v3728_v52 = vadd.f32 1.0, %v5251_v40 }
0x2527   :  { %4044 = vmatpush1.bf16.msra.mxu0 %v6926_v55  ;;  %5252 = vrcp.f32 %v3728_v52 }
0x2528   :  { %4078 = vmatprep.subr.bf16.mxu0 %v6929_v3 }
0x2531   :  { %v5253_v53 = vpop.eup %5252 }
0x2532   :  { %v3732_v26 = vmul.f32 %v5253_v53, %v6814_v21 }
0x256f   :  { %v3735_v30 = vpop.permute.xlu1 %3734 }
0x2570   :  { %v3737_v24 = vmul.f32 %v5253_v53, %v3735_v30 }
0x2572   :  { %3739 = vrot.lane.b32.xlu1 %v3737_v24, %s5545_s23 }
0x25e4   :  { %v3740_v61 = vpop.permute.xlu1 %3739 }
0x25e5   :  { %v3742_v19 = vadd.f32 %v3740_v61, %v3732_v26 }
0x25e7   :  { %5254 = vtanh.f32 %v3742_v19 }
0x25ed   :  { %v3828_v51 = vpop.f32.mrb[84].mxu0 }
0x25ee   :  { %v3830_v34 = vpop.f32.mrb[85].mxu0  ;;  %v4801_v16 = vadd.f32 %v3828_v51, %v6034_v11 }
0x25ef   :  { %v4802_v55 = vadd.f32 %v3830_v34, %v6027_v45  ;;  %v3832_v3 = vpop.f32.mrb[86].mxu0 }
0x25f0   :  { %v3833_v50 = vpop.f32.mrb[87].mxu0  ;;  %v4344_v58 = vmul.f32 -1.442695, %v4801_v16 }
0x25f1   :  { %v5255_v33 = vpop.eup %5254  ;;  %5256 = vtanh.f32 %v4802_v55  ;;  %v4345_v62 = vmul.f32 -1.442695, %v4802_v55 }
0x25f2   :  { %3745 = vrot.lane.b32.xlu1 %v5255_v33, %s5545_s23  ;;  %5258 = vpow2.f32 %v4344_v58 }
0x25fb   :  { %v5257_v1 = vpop.eup %5256 }
0x25fc   :  { %3852 = vrot.lane.b32.xlu0 %v5257_v1, %s5533_s30  ;;  %v5259_v21 = vpop.eup %5258 }
0x25fd   :  { %v3843_v25 = vadd.f32 1.0, %v5259_v21 }
0x25ff   :  { %5260 = vrcp.f32 %v3843_v25 }
0x2609   :  { %v5261_v22 = vpop.eup %5260 }
0x260a   :  { %v3850_v60 = vmul.f32 %v5261_v22, %v6824_v32 }
0x2664   :  { %v3746_v17 = vpop.permute.xlu1 %3745 }
0x2665   :  { %v3748_v23 = vmul.f32 %v5253_v53, %v3746_v17 }
0x2667   :  { %v3912_v35 = vpack.c.bf16 %v3748_v23, %v3748_v23 }
0x2669   :  { %3914 = vrot.lane.b32.xlu1 %v3912_v35, %s5533_s30 }
0x266e   :  { %v3853_v54 = vpop.permute.xlu0 %3852 }
0x266f   :  { %v3855_v27 = vmul.f32 %v5261_v22, %v3853_v54 }
0x2671   :  { %3857 = vrot.lane.b32.xlu0 %v3855_v27, %s5533_s30 }
0x26db   :  { %v3915_v32 = vpop.permute.xlu1 %3914 }
0x26e3   :  { %v3858_v48 = vpop.permute.xlu0 %3857 }
0x26e4   :  { %v7019_v20 = vadd.f32 %v3858_v48, %v3850_v60 }
0x26e6   :  { %5262 = vtanh.f32 %v7019_v20 }
0x26e7   :  { %5264 = vpow2.f32 %v4345_v62 }
0x26f0   :  { %v5263_v28 = vpop.eup %5262 }
0x26f1   :  { %3863 = vrot.lane.b32.xlu0 %v5263_v28, %s5533_s30  ;;  %v5265_v47 = vpop.eup %5264 }
0x26f2   :  { %v3844_v38 = vadd.f32 1.0, %v5265_v47 }
0x26f4   :  { %5266 = vrcp.f32 %v3844_v38 }
0x26fe   :  { %v5267_v18 = vpop.eup %5266 }
0x2763   :  { %v3864_v12 = vpop.permute.xlu0 %3863 }
0x2764   :  { %v3866_v40 = vmul.f32 %v5267_v18, %v3864_v12 }
0x2766   :  { %v7023_v52 = vpack.c.bf16 %v3866_v40, %v3866_v40 }
0x2768   :  { %4752 = vmatmul.mubr.msk.bf16.vlgmr.msra.gmra.mrb[60].mxu1 %vm673_vm2, %v7023_v52 }
0x2769   :  { %3920 = vmatpush1.bf16.msra.mxu1 %v6838_v5  ;;  %3951 = vmatprep.mubr.bf16.mxu1 %v7118_v57  ;;  %v5367_v5 = vld [vmem:[%s7107_s13] sm:$0xff]  }
0x276a   :  { %3921 = vmatprep.subr.bf16.mxu1 %v6843_v59 }
0x276d   :  { %3922 = vmatpush1.bf16.msra.mxu1 %v6846_v56  ;;  %v7058_v56 = vld [vmem:[%s7108_s14] ss:$0 sm:$0xff] }
0x276e   :  { %3960 = vmatprep.subr.bf16.mxu1 %v6852_v31 }
0x2770   :  { %4347 = vmatmul.mubr.msk.bf16.vlgmr.msra.gmra.mrb[64].mxu1 %vm223_vm1, %v3915_v32 }
0x2771   :  { %3961 = vmatpush1.bf16.msra.mxu1 %v6862_v63  ;;  %3992 = vmatprep.mubr.bf16.mxu1 %v7118_v57 }
0x2772   :  { %3962 = vmatprep.subr.bf16.mxu1 %v6869_v29 }
0x2775   :  { %3963 = vmatpush1.bf16.msra.mxu1 %v6875_v15 }
0x2776   :  { %3964 = vmatprep.subr.bf16.mxu1 %v6881_v13 }
0x2779   :  { %3965 = vmatpush1.bf16.msra.mxu1 %v6887_v36 }
0x277a   :  { %3966 = vmatprep.subr.bf16.mxu1 %v6893_v43 }
0x277d   :  { %3967 = vmatpush1.bf16.msra.mxu1 %v6899_v2 }
0x277e   :  { %4755 = vmatprep.subr.bf16.mxu1 %v7119_v10 }
0x2780   :  { %4348 = vmatmul.mubr.msk.bf16.vlgmr.msra.gmra.mrb[64].mxu1 %vm673_vm2, %v6972_v7 }
0x2781   :  { %4756 = vmatpush3.bf16.msra.mxu1 %v5367_v5  ;;  %4763 = vmatprep.mubr.msk.bf16.mxu1 %vm5543_vm0, %v7119_v10 }
0x2782   :  { %4757 = vmatprep.subr.bf16.mxu1 %v7119_v10 }
0x2785   :  { %4758 = vmatpush3.bf16.msra.mxu1 %v6622_v42 }
0x2786   :  { %4759 = vmatprep.subr.bf16.mxu1 %v7119_v10 }
0x2789   :  { %4760 = vmatpush3.bf16.msra.mxu1 %v6629_v9 }
0x278a   :  { %4761 = vmatprep.subr.bf16.mxu1 %v7119_v10 }
0x278d   :  { %4762 = vmatpush3.bf16.msra.mxu1 %v6641_v44 }
0x283b   :  { %v3905_v59 = vpop.f32.mrb[60].mxu1 }
0x283c   :  { %v3906_v31 = vadd.f32 %v7058_v56, %v3905_v59  ;;  %v4753_v63 = vpop.f32.mrb[61].mxu1 }
0x283d   :  { %v3908_v29 = vpop.f32.mrb[62].mxu1 }
0x283e   :  { %3911 = vst.msk [vmem:[%s7109_s15 + $0x30] sm:$0xff] %vm1209_vm3, %v3906_v31  ;;  %v4754_v42 = vpop.f32.mrb[63].mxu1 }
0x2853   :  { %v3994_v9 = vpop.f32.mrb[64].mxu1 }
0x2854   :  { %v3996_v10 = vpop.f32.mrb[65].mxu1  ;;  %v4803_v43 = vadd.f32 %v3994_v9, %v5942_v49 }
0x2855   :  { %v4804_v44 = vadd.f32 %v3996_v10, %v5915_v39  ;;  %v3998_v15 = vpop.f32.mrb[66].mxu1 }
0x2856   :  { %v3999_v13 = vpop.f32.mrb[67].mxu1  ;;  %v4349_v2 = vmul.f32 -1.442695, %v4803_v43 }
0x2857   :  { %5268 = vtanh.f32 %v4804_v44  ;;  %v4350_v34 = vmul.f32 -1.442695, %v4804_v44 }
0x2858   :  { %5270 = vpow2.f32 %v4349_v2 }
0x2861   :  { %v5269_v36 = vpop.eup %5268 }
0x2862   :  { %4018 = vrot.lane.b32.xlu0 %v5269_v36, %s5533_s30  ;;  %v5271_v7 = vpop.eup %5270 }
0x2863   :  { %v4009_v53 = vadd.f32 1.0, %v5271_v7 }
0x2865   :  { %5272 = vrcp.f32 %v4009_v53 }
0x286f   :  { %v5273_v30 = vpop.eup %5272 }
0x2870   :  { %v4016_v39 = vmul.f32 %v5273_v30, %v6966_v8 }
0x28d4   :  { %v4019_v24 = vpop.permute.xlu0 %4018 }
0x28d5   :  { %v4021_v26 = vmul.f32 %v5273_v30, %v4019_v24 }
0x28d7   :  { %4023 = vrot.lane.b32.xlu1 %v4021_v26, %s5533_s30 }
0x2949   :  { %v4024_v61 = vpop.permute.xlu1 %4023 }
0x294a   :  { %v4026_v19 = vadd.f32 %v4024_v61, %v4016_v39 }
0x294c   :  { %5274 = vtanh.f32 %v4026_v19 }
0x294d   :  { %5276 = vpow2.f32 %v4350_v34 }
0x2956   :  { %v5275_v51 = vpop.eup %5274 }
0x2957   :  { %4029 = vrot.lane.b32.xlu0 %v5275_v51, %s5533_s30  ;;  %v5277_v49 = vpop.eup %5276 }
0x2958   :  { %v4010_v55 = vadd.f32 1.0, %v5277_v49 }
0x295a   :  { %5278 = vrcp.f32 %v4010_v55 }
0x2964   :  { %v5279_v3 = vpop.eup %5278 }
0x29c9   :  { %v4030_v50 = vpop.permute.xlu0 %4029 }
0x29ca   :  { %v4032_v33 = vmul.f32 %v5279_v3, %v4030_v50 }
0x29cc   :  { %v4033_v1 = vpack.c.bf16 %v4032_v33, %v4032_v33 }
0x29ce   :  { %4351 = vmatmul.mubr.msk.bf16.vlgmr.msra.gmra.mrb[88].mxu0 %vm673_vm2, %v4033_v1 }
0x29cf   :  { %4079 = vmatpush1.bf16.msra.mxu0 %v6976_v14  ;;  %4110 = vmatprep.mubr.bf16.mxu0 %v7118_v57 }
0x29d0   :  { %4080 = vmatprep.subr.bf16.mxu0 %v6980_v46 }
0x29d3   :  { %4081 = vmatpush1.bf16.msra.mxu0 %v6983_v0 }
0x29d4   :  { %4082 = vmatprep.subr.bf16.mxu0 %v6986_v6 }
0x29d7   :  { %4083 = vmatpush1.bf16.msra.mxu0 %v6989_v41 }
0x29d8   :  { %4084 = vmatprep.subr.bf16.mxu0 %v6992_v4 }
0x29db   :  { %4085 = vmatpush1.bf16.msra.mxu0 %v6995_v37 }
0x29de   :  { %4352 = vmatmul.mubr.msk.bf16.vlgmr.msra.gmra.mrb[88].mxu0 %vm673_vm2, %v7023_v52 }
0x2ab1   :  { %v4112_v8 = vpop.f32.mrb[88].mxu0 }
0x2ab2   :  { %v4114_v16 = vpop.f32.mrb[89].mxu0  ;;  %v4805_v0 = vadd.f32 %v4112_v8, %v6034_v11 }
0x2ab3   :  { %v4806_v14 = vadd.f32 %v4114_v16, %v6027_v45  ;;  %v4116_v57 = vpop.f32.mrb[90].mxu0 }
0x2ab4   :  { %v4117_v58 = vpop.f32.mrb[91].mxu0  ;;  %v4353_v6 = vmul.f32 -1.442695, %v4805_v0 }
0x2ab5   :  { %5280 = vtanh.f32 %v4806_v14  ;;  %v4354_v22 = vmul.f32 -1.442695, %v4806_v14 }
0x2ab6   :  { %5282 = vpow2.f32 %v4353_v6 }
0x2abf   :  { %v5281_v46 = vpop.eup %5280 }
0x2ac0   :  { %4136 = vrot.lane.b32.xlu1 %v5281_v46, %s5533_s30  ;;  %v5283_v41 = vpop.eup %5282 }
0x2ac1   :  { %v4127_v4 = vadd.f32 1.0, %v5283_v41 }
0x2ac3   :  { %5284 = vrcp.f32 %v4127_v4 }
0x2acd   :  { %v5285_v37 = vpop.eup %5284 }
0x2ace   :  { %v4134_v45 = vmul.f32 %v5285_v37, %v7019_v20 }
0x2b32   :  { %v4137_v21 = vpop.permute.xlu1 %4136 }
0x2b33   :  { %v4139_v25 = vmul.f32 %v5285_v37, %v4137_v21 }
0x2b35   :  { %4141 = vrot.lane.b32.xlu0 %v4139_v25, %s5533_s30 }
0x2ba7   :  { %v4142_v17 = vpop.permute.xlu0 %4141 }
0x2ba8   :  { %v4144_v23 = vadd.f32 %v4142_v17, %v4134_v45 }
0x2baa   :  { %5286 = vtanh.f32 %v4144_v23 }
0x2bab   :  { %5288 = vpow2.f32 %v4354_v22 }
0x2bb4   :  { %v5287_v35 = vpop.eup %5286 }
0x2bb5   :  { %4147 = vrot.lane.b32.xlu1 %v5287_v35, %s5533_s30  ;;  %v5289_v11 = vpop.eup %5288 }
0x2bb6   :  { %v4128_v54 = vadd.f32 1.0, %v5289_v11 }
0x2bb8   :  { %5290 = vrcp.f32 %v4128_v54 }
0x2bc2   :  { %v5291_v27 = vpop.eup %5290 }
0x2c27   :  { %v4148_v60 = vpop.permute.xlu1 %4147 }
0x2c28   :  { %v4150_v48 = vmul.f32 %v5291_v27, %v4148_v60 }
0x2c2a   :  { %v4151_v28 = vpack.c.bf16 %v4150_v48, %v4150_v48 }
0x2c2c   :  { %4764 = vmatmul.mubr.msk.bf16.vlgmr.msra.gmra.mrb[68].mxu1 %vm673_vm2, %v4151_v28 }
0x2cff   :  { %v4189_v62 = vpop.f32.mrb[68].mxu1 }
0x2d00   :  { %v4190_v20 = vadd.f32 %v7058_v56, %v4189_v62  ;;  %v4765_v47 = vpop.f32.mrb[69].mxu1 }
0x2d01   :  { %v4192_v38 = vpop.f32.mrb[70].mxu1 }
0x2d02   :  { %4195 = vst.msk [vmem:[%s7109_s15 + $0x38] sm:$0xff] %vm1209_vm3, %v4190_v20  ;;  %v4766_v18 = vpop.f32.mrb[71].mxu1 }
0x2d03   :  { %4200 = vsyncpa [#allocation3], 1 }
0x2d04   :  { %4201 = vsyncpa [#allocation5], 1 }
0x2d05   :  { %4202 = vsyncpa [#allocation8], 1 }
0x2d06   :  { %4203 = vsyncpa [#allocation11], 1 }

</bundles_post_ra>
